<compile_context>
chip_gen: v7x
topology: tpu7x:2x2x1
jax: 0.10.0
libtpu: 0.0.40
codegen_flags: <defaults>
</compile_context>

<pallas_src>
import functools
import math

import jax
import jax.numpy as jnp
from jax.experimental import pallas as pl
from jax.experimental.pallas import tpu as pltpu


LANE = 128      # hidden dim padded to a multiple of the vreg lane width
SUBLANE = 8     # batch / feature dims padded to a multiple of the sublanes
MAX_T_BLK = 32  # cap on the fully-unrolled timesteps per grid step


def _round_up(x, m):
    return (x + m - 1) // m * m


def _vmem_budget_bytes():
    """Explicit scoped-VMEM budget (default limits are far below physical)."""
    cap = None
    try:
        info = pltpu.get_tpu_info()
        cap = getattr(info, "vmem_capacity_bytes", None)
        cap = int(cap) if cap else None
    except Exception:
        cap = None
    if not cap or cap <= 0:
        cap = 64 * 1024 * 1024   # conservative fallback (v7x physical VMEM)
    # leave headroom for compiler-internal scratch; cap at ~100 MiB on
    # 128 MiB chips (v5e/v6e), ~48 MiB on v7x.
    return max(32 * 1024 * 1024, min(cap - 16 * 1024 * 1024, 100 * 1024 * 1024))


def _choose_t_blk(seq_len, bp, in_pad, hp, budget):
    """Size the per-grid-step time block from the VMEM budget."""
    # double-buffered bf16 input + output tiles, both directions:
    per_t = 2 * 2 * bp * (in_pad + hp) * 2
    # single-buffered bf16 weight scratch (both dirs) + f32 h/c scratch +
    # resident final-hidden output blocks:
    fixed = 2 * (in_pad + hp) * 4 * hp * 2 + 8 * bp * hp * 4
    avail = max(budget // 2 - fixed, per_t)
    t = int(avail // per_t)
    return max(1, min(t, MAX_T_BLK, seq_len))


# ----------------------------- Pallas kernel -----------------------------

def _bilstm_block_kernel(xf_ref, xb_ref, wif_hbm, whf_hbm, wib_hbm, whb_hbm,
                         outf_ref, outb_ref,
                         hf_fin_ref, cf_fin_ref, hb_fin_ref, cb_fin_ref,
                         hf_scr, cf_scr, hb_scr, cb_scr,
                         wif_scr, whf_scr, wib_scr, whb_scr, dma_sem,
                         *, t_blk, hp, last_blk, last_i):
    """One grid step = t_blk timesteps of BOTH direction scans.

    xf/xb   : (t_blk, Bp, in_pad) bf16 raw layer-input tiles (bwd stream is
              pre-reversed in the wrapper, so both scans run forward).
    w*_hbm  : ANY-space (HBM) weight refs, copied once into VMEM scratch.
    """
    blk = pl.program_id(0)

    @pl.when(blk == 0)
    def _init():
        hf_scr[...] = jnp.zeros_like(hf_scr)
        cf_scr[...] = jnp.zeros_like(cf_scr)
        hb_scr[...] = jnp.zeros_like(hb_scr)
        cb_scr[...] = jnp.zeros_like(cb_scr)
        # Fetch weights once per layer call into single-buffered VMEM scratch
        # (no pipeline double-buffering -> half the weight VMEM footprint).
        copies = [
            pltpu.make_async_copy(wif_hbm, wif_scr, dma_sem.at[0]),
            pltpu.make_async_copy(whf_hbm, whf_scr, dma_sem.at[1]),
            pltpu.make_async_copy(wib_hbm, wib_scr, dma_sem.at[2]),
            pltpu.make_async_copy(whb_hbm, whb_scr, dma_sem.at[3]),
        ]
        for cp in copies:
            cp.start()
        for cp in copies:
            cp.wait()

    def sigmoid(v):
        # sigmoid(x) == 0.5*tanh(0.5*x) + 0.5 : one EUP push instead of
        # exp + reciprocal (EUP is the single-slot unit on all generations).
        return 0.5 * jnp.tanh(0.5 * v) + 0.5

    def cell(x_t, h, c, wih_ref, whh_ref):
        # Weight refs are read at the dot site (not hoisted across the
        # unrolled loop) so the compiler is free to re-load rather than keep
        # >64 vregs of weights live.
        gates = jnp.dot(x_t, wih_ref[...], preferred_element_type=jnp.float32)
        gates = gates + jnp.dot(h.astype(jnp.bfloat16), whh_ref[...],
                                preferred_element_type=jnp.float32)
        # gate order i, f, g, o; hp is 128-aligned so slices are lane-aligned.
        i_g = sigmoid(gates[:, 0 * hp:1 * hp])
        f_g = sigmoid(gates[:, 1 * hp:2 * hp])
        g_g = jnp.tanh(gates[:, 2 * hp:3 * hp])
        o_g = sigmoid(gates[:, 3 * hp:4 * hp])
        c_new = f_g * c + i_g * g_g
        h_new = o_g * jnp.tanh(c_new)
        return h_new, c_new

    hf, cf = hf_scr[...], cf_scr[...]
    hb, cb = hb_scr[...], cb_scr[...]

    # Fully-unrolled loop over the t_blk timesteps of this block (t_blk is a
    # compile-time constant): gives the scheduler visibility to overlap the
    # two independent direction chains (MXU pushes vs EUP/VPU gate math).
    for i in range(t_blk):
        hf, cf = cell(xf_ref[i], hf, cf, wif_scr, whf_scr)
        outf_ref[i] = hf.astype(outf_ref.dtype)

        hb, cb = cell(xb_ref[i], hb, cb, wib_scr, whb_scr)
        outb_ref[i] = hb.astype(outb_ref.dtype)

        # torch's stackedRNN keeps the hidden produced while processing input
        # index seq_len-1: for the fwd scan that is the real last timestep
        # (static position last_blk/last_i, independent of tail padding); for
        # the bwd (pre-reversed) scan it is the very first processed step.
        if i == last_i:
            @pl.when(blk == last_blk)
            def _store_f(h=hf, c=cf):
                hf_fin_ref[...] = h.astype(hf_fin_ref.dtype)
                cf_fin_ref[...] = c.astype(cf_fin_ref.dtype)
        if i == 0:
            @pl.when(blk == 0)
            def _store_b(h=hb, c=cb):
                hb_fin_ref[...] = h.astype(hb_fin_ref.dtype)
                cb_fin_ref[...] = c.astype(cb_fin_ref.dtype)

    hf_scr[...] = hf
    cf_scr[...] = cf
    hb_scr[...] = hb
    cb_scr[...] = cb


def _bilstm_layer(xf, xb, wif_t, whf_t, wib_t, whb_t, t_blk, seq_len,
                  vmem_limit):
    """Fused fwd+bwd recurrent scan (with in-kernel input projection).

    xf / xb     : (seq_pad, Bp, in_pad) bf16 layer inputs (bwd pre-reversed).
    w*_t        : (in_pad|Hp, 4Hp) bf16 padded+transposed weights.
    Returns (out_f, out_b_rev, h_f, c_f, h_b, c_b) in padded shapes.
    """
    seq_pad, bp, in_pad = xf.shape
    hp = whf_t.shape[0]
    assert seq_pad % t_blk == 0
    nblk = seq_pad // t_blk
    last = seq_len - 1

    kernel = functools.partial(_bilstm_block_kernel, t_blk=t_blk, hp=hp,
                               last_blk=last // t_blk, last_i=last % t_blk)

    time_map = lambda b: (b, 0, 0)
    const_map = lambda b: (0, 0)

    grid_spec = pltpu.PrefetchScalarGridSpec(
        num_scalar_prefetch=0,
        grid=(nblk,),
        in_specs=[
            pl.BlockSpec((t_blk, bp, in_pad), time_map),
            pl.BlockSpec((t_blk, bp, in_pad), time_map),
            # weights stay in HBM; copied once into VMEM scratch in-kernel.
            pl.BlockSpec(memory_space=pl.ANY),
            pl.BlockSpec(memory_space=pl.ANY),
            pl.BlockSpec(memory_space=pl.ANY),
            pl.BlockSpec(memory_space=pl.ANY),
        ],
        out_specs=[
            pl.BlockSpec((t_blk, bp, hp), time_map),
            pl.BlockSpec((t_blk, bp, hp), time_map),
            pl.BlockSpec((bp, hp), const_map),
            pl.BlockSpec((bp, hp), const_map),
            pl.BlockSpec((bp, hp), const_map),
            pl.BlockSpec((bp, hp), const_map),
        ],
        scratch_shapes=[
            pltpu.VMEM((bp, hp), jnp.float32),        # hf
            pltpu.VMEM((bp, hp), jnp.float32),        # cf
            pltpu.VMEM((bp, hp), jnp.float32),        # hb
            pltpu.VMEM((bp, hp), jnp.float32),        # cb
            pltpu.VMEM((in_pad, 4 * hp), jnp.bfloat16),   # wif
            pltpu.VMEM((hp, 4 * hp), jnp.bfloat16),       # whf
            pltpu.VMEM((in_pad, 4 * hp), jnp.bfloat16),   # wib
            pltpu.VMEM((hp, 4 * hp), jnp.bfloat16),       # whb
            pltpu.SemaphoreType.DMA((4,)),
        ],
    )

    out_shapes = (
        jax.ShapeDtypeStruct((seq_pad, bp, hp), jnp.bfloat16),
        jax.ShapeDtypeStruct((seq_pad, bp, hp), jnp.bfloat16),
        jax.ShapeDtypeStruct((bp, hp), jnp.float32),
        jax.ShapeDtypeStruct((bp, hp), jnp.float32),
        jax.ShapeDtypeStruct((bp, hp), jnp.float32),
        jax.ShapeDtypeStruct((bp, hp), jnp.float32),
    )

    return pl.pallas_call(
        kernel,
        out_shape=out_shapes,
        grid_spec=grid_spec,
        compiler_params=pltpu.CompilerParams(
            dimension_semantics=("arbitrary",),
            vmem_limit_bytes=int(vmem_limit)),
    )(xf, xb, wif_t, whf_t, wib_t, whb_t)


# --------------------------- parameter prep -------------------------------

def _pad_gate_weight_t(w, H, Hp, in_real, in_pad):
    """(4H, in) torch-layout weight -> zero-padded, transposed (in_pad, 4Hp) bf16."""
    w = jnp.asarray(w, jnp.float32)
    wp = jnp.zeros((4 * Hp, in_pad), jnp.float32)
    for k in range(4):
        wp = wp.at[k * Hp:k * Hp + H, :in_real].set(w[k * H:(k + 1) * H, :])
    return wp.T.astype(jnp.bfloat16)


def _prepare_params(params, input_size, in_pad0, H, Hp):
    """Pad + transpose + bf16-cast weights once (not per call / per layer)."""
    prepared = []
    for layer, (w_ih, w_hh) in enumerate(params):
        in_real = input_size if layer == 0 else H
        in_pad = in_pad0 if layer == 0 else Hp
        w_ih_t = _pad_gate_weight_t(w_ih, H, Hp, in_real, in_pad)  # (in_pad,4Hp)
        w_hh_t = _pad_gate_weight_t(w_hh, H, Hp, H, Hp)            # (Hp,4Hp)
        prepared.append((w_ih_t, w_hh_t))
    return prepared


# --------------------------- module-level glue ----------------------------

def bidirectional_rnn(x, fwd_params, bwd_params, hidden_size):
    """bidirectionalRNN.forward with collect_hidden=False.

    x: (seq_len, bsz, input_size) float32
    fwd_params/bwd_params: list of (w_ih:(4H,in), w_hh:(4H,H)) per layer.
    Returns (output:(seq,bsz,2H), (h:(L,bsz,2H), c:(L,bsz,2H))).
    """
    seq_len, bsz, input_size = x.shape
    H = hidden_size
    Hp = _round_up(H, LANE)
    Bp = _round_up(bsz, SUBLANE)
    In_pad = _round_up(input_size, SUBLANE)

    budget = _vmem_budget_bytes()
    t_blk = _choose_t_blk(seq_len, Bp, max(In_pad, Hp), Hp, budget)
    seq_pad = _round_up(seq_len, t_blk)   # padded/masked tail, never t_blk=1

    fwd_p = _prepare_params(fwd_params, input_size, In_pad, H, Hp)
    bwd_p = _prepare_params(bwd_params, input_size, In_pad, H, Hp)

    x_bf = jnp.asarray(x, jnp.bfloat16)
    # fwd stream in natural time order; bwd stream pre-reversed so both
    # directions are a plain forward scan over their own stream.
    xf = jnp.zeros((seq_pad, Bp, In_pad), jnp.bfloat16)
    xf = xf.at[:seq_len, :bsz, :input_size].set(x_bf)
    xb = jnp.zeros((seq_pad, Bp, In_pad), jnp.bfloat16)
    xb = xb.at[:seq_len, :bsz, :input_size].set(x_bf[::-1])

    inp_f, inp_b = xf, xb
    h_list, c_list = [], []
    for (wif_t, whf_t), (wib_t, whb_t) in zip(fwd_p, bwd_p):
        outf, outb, hf, cf, hb, cb = _bilstm_layer(
            inp_f, inp_b, wif_t, whf_t, wib_t, whb_t, t_blk, seq_len, budget)
        # padded-tail content of outf/outb is harmless: later layers process
        # it after all real steps and its outputs are sliced away below.
        inp_f, inp_b = outf, outb
        h_list.append(jnp.concatenate([hf[:bsz, :H], hb[:bsz, :H]], axis=-1))
        c_list.append(jnp.concatenate([cf[:bsz, :H], cb[:bsz, :H]], axis=-1))

    out_f = inp_f[:seq_len, :bsz, :H].astype(jnp.float32)
    out_b = jnp.flip(inp_b[:seq_len], axis=0)[:, :bsz, :H].astype(jnp.float32)
    output = jnp.concatenate([out_f, out_b], axis=-1)
    # TODO(synk): the original torch code calls torch.cat on python lists of
    # per-layer tensors (a latent bug); we implement the intended semantics:
    # concat fwd/bwd hidden states of each layer along the last dim.
    hiddens = (jnp.stack(h_list, 0), jnp.stack(c_list, 0))
    return output, hiddens


# ---------------------------- parameter init ------------------------------

def init_params(key, num_layers, input_size, hidden_size):
    """uniform(-1/sqrt(H), 1/sqrt(H)) like RNNCell.reset_parameters."""
    stdev = 1.0 / math.sqrt(hidden_size)
    params = []
    for layer in range(num_layers):
        in_sz = input_size if layer == 0 else hidden_size
        key, k1, k2 = jax.random.split(key, 3)
        w_ih = jax.random.uniform(k1, (4 * hidden_size, in_sz),
                                  jnp.float32, -stdev, stdev)
        w_hh = jax.random.uniform(k2, (4 * hidden_size, hidden_size),
                                  jnp.float32, -stdev, stdev)
        params.append((w_ih, w_hh))
    return key, params


# ------------------------- pure-JAX reference -----------------------------

def _ref_lstm_layer(x, w_ih, w_hh, reverse):
    seq_len, bsz, _ = x.shape
    H = w_hh.shape[1]
    h = jnp.zeros((bsz, H), jnp.float32)
    c = jnp.zeros((bsz, H), jnp.float32)
    outs = [None] * seq_len
    h_col = c_col = None
    order = range(seq_len - 1, -1, -1) if reverse else range(seq_len)
    for s in order:
        gates = x[s] @ w_ih.T + h @ w_hh.T
        i_g, f_g, g_g, o_g = jnp.split(gates, 4, axis=1)
        i_g = jax.nn.sigmoid(i_g)
        f_g = jax.nn.sigmoid(f_g)
        g_g = jnp.tanh(g_g)
        o_g = jax.nn.sigmoid(o_g)
        c = f_g * c + i_g * g_g
        h = o_g * jnp.tanh(c)
        outs[s] = h
        if s == seq_len - 1:
            h_col, c_col = h, c
    return jnp.stack(outs, 0), h_col, c_col


def _ref_bidirectional(x, fwd_params, bwd_params):
    def stack(x, params, reverse):
        inp = x
        hs, cs = [], []
        for (w_ih, w_hh) in params:
            inp, h, c = _ref_lstm_layer(inp, w_ih, w_hh, reverse)
            hs.append(h)
            cs.append(c)
        return inp, jnp.stack(hs, 0), jnp.stack(cs, 0)
    fo, fh, fc = stack(x, fwd_params, False)
    bo, bh, bc = stack(x, bwd_params, True)
    return (jnp.concatenate([fo, bo], -1),
            (jnp.concatenate([fh, bh], -1), jnp.concatenate([fc, bc], -1)))


# --------------------------------- main -----------------------------------

if __name__ == "__main__":
    SEQ, BSZ, IN, HID, LAYERS = 8, 4, 16, 32, 2

    key = jax.random.PRNGKey(0)
    key, kx = jax.random.split(key)
    x = jax.random.normal(kx, (SEQ, BSZ, IN), jnp.float32)

    key, fwd_params = init_params(key, LAYERS, IN, HID)   # self.fwd
    key, bwd_params = init_params(key, LAYERS, IN, HID)   # self.bckwrd (new_like)

    output, (h_n, c_n) = bidirectional_rnn(x, fwd_params, bwd_params,
                                           hidden_size=HID)
    output = jax.block_until_ready(output)
    h_n = jax.block_until_ready(h_n)
    c_n = jax.block_until_ready(c_n)

    # correctness check against a pure-JAX f32 reference.  Tolerance is
    # loosened vs the f32-only kernel because weights/activations on the
    # matmul path are bf16 (f32 accumulation).
    ref_out, (ref_h, ref_c) = _ref_bidirectional(x, fwd_params, bwd_params)
    assert output.shape == (SEQ, BSZ, 2 * HID)
    assert h_n.shape == (LAYERS, BSZ, 2 * HID)
    assert c_n.shape == (LAYERS, BSZ, 2 * HID)
    assert jnp.allclose(output, ref_out, atol=3e-2, rtol=3e-2)
    assert jnp.allclose(h_n, ref_h, atol=3e-2, rtol=3e-2)
    assert jnp.allclose(c_n, ref_c, atol=3e-2, rtol=3e-2)

    print("KERNEL_OK")
</pallas_src>

<mosaic_0001>
module attributes {stable_mosaic.version = 11 : i64} {
  func.func @_bilstm_block_kernel(%arg0: i32, %arg1: memref<8x8x16xbf16, #tpu.memory_space<vmem>>, %arg2: memref<8x8x16xbf16, #tpu.memory_space<vmem>>, %arg3: memref<16x512xbf16, #tpu.memory_space<any>>, %arg4: memref<128x512xbf16, #tpu.memory_space<any>>, %arg5: memref<16x512xbf16, #tpu.memory_space<any>>, %arg6: memref<128x512xbf16, #tpu.memory_space<any>>, %arg7: memref<8x8x128xbf16, #tpu.memory_space<vmem>>, %arg8: memref<8x8x128xbf16, #tpu.memory_space<vmem>>, %arg9: memref<8x128xf32, #tpu.memory_space<vmem>>, %arg10: memref<8x128xf32, #tpu.memory_space<vmem>>, %arg11: memref<8x128xf32, #tpu.memory_space<vmem>>, %arg12: memref<8x128xf32, #tpu.memory_space<vmem>>, %arg13: memref<8x128xf32, #tpu.memory_space<vmem>>, %arg14: memref<8x128xf32, #tpu.memory_space<vmem>>, %arg15: memref<8x128xf32, #tpu.memory_space<vmem>>, %arg16: memref<8x128xf32, #tpu.memory_space<vmem>>, %arg17: memref<16x512xbf16, #tpu.memory_space<vmem>>, %arg18: memref<128x512xbf16, #tpu.memory_space<vmem>>, %arg19: memref<16x512xbf16, #tpu.memory_space<vmem>>, %arg20: memref<128x512xbf16, #tpu.memory_space<vmem>>, %arg21: memref<4x!tpu.dma_semaphore, #tpu.memory_space<semaphore_mem>>) attributes {dimension_semantics = [#tpu.dimension_semantics<arbitrary>], iteration_bounds = array<i64: 1>, scalar_prefetch = 0 : i64, scratch_operands = 9 : i64, tpu.core_type = #tpu.core_type<tc>, window_params = [{transform_indices = @transform_0, window_bounds = array<i64: 8, 8, 16>}, {transform_indices = @transform_1, window_bounds = array<i64: 8, 8, 16>}, {}, {}, {}, {}, {transform_indices = @transform_6, window_bounds = array<i64: 8, 8, 128>}, {transform_indices = @transform_7, window_bounds = array<i64: 8, 8, 128>}, {pipeline_mode = #tpu.pipeline_mode<synchronous>, transform_indices = @transform_8, window_bounds = array<i64: 8, 128>}, {pipeline_mode = #tpu.pipeline_mode<synchronous>, transform_indices = @transform_9, window_bounds = array<i64: 8, 128>}, {pipeline_mode = #tpu.pipeline_mode<synchronous>, transform_indices = @transform_10, window_bounds = array<i64: 8, 128>}, {pipeline_mode = #tpu.pipeline_mode<synchronous>, transform_indices = @transform_11, window_bounds = array<i64: 8, 128>}]} {
    %c0_i32 = arith.constant 0 : i32
    %0 = arith.cmpi eq, %arg0, %c0_i32 : i32
    %1 = arith.extui %0 : i1 to i32
    %c0_i32_0 = arith.constant 0 : i32
    %2 = arith.cmpi ne, %1, %c0_i32_0 : i32
    scf.if %2 {
      %cst_348 = arith.constant 0.000000e+00 : f32
      %705 = vector.broadcast %cst_348 : f32 to vector<8x128xf32>
      %c0_349 = arith.constant 0 : index
      %c0_350 = arith.constant 0 : index
      %706 = vector.load %arg13[%c0_349, %c0_350] : memref<8x128xf32, #tpu.memory_space<vmem>>, vector<8x128xf32>
      tpu.vector_store %arg13[%c0_349, %c0_350], %705 {strides = array<i32>} : memref<8x128xf32, #tpu.memory_space<vmem>>, vector<8x128xf32>,
      %cst_351 = arith.constant 0.000000e+00 : f32
      %707 = vector.broadcast %cst_351 : f32 to vector<8x128xf32>
      %c0_352 = arith.constant 0 : index
      %c0_353 = arith.constant 0 : index
      %708 = vector.load %arg14[%c0_352, %c0_353] : memref<8x128xf32, #tpu.memory_space<vmem>>, vector<8x128xf32>
      tpu.vector_store %arg14[%c0_352, %c0_353], %707 {strides = array<i32>} : memref<8x128xf32, #tpu.memory_space<vmem>>, vector<8x128xf32>,
      %cst_354 = arith.constant 0.000000e+00 : f32
      %709 = vector.broadcast %cst_354 : f32 to vector<8x128xf32>
      %c0_355 = arith.constant 0 : index
      %c0_356 = arith.constant 0 : index
      %710 = vector.load %arg15[%c0_355, %c0_356] : memref<8x128xf32, #tpu.memory_space<vmem>>, vector<8x128xf32>
      tpu.vector_store %arg15[%c0_355, %c0_356], %709 {strides = array<i32>} : memref<8x128xf32, #tpu.memory_space<vmem>>, vector<8x128xf32>,
      %cst_357 = arith.constant 0.000000e+00 : f32
      %711 = vector.broadcast %cst_357 : f32 to vector<8x128xf32>
      %c0_358 = arith.constant 0 : index
      %c0_359 = arith.constant 0 : index
      %712 = vector.load %arg16[%c0_358, %c0_359] : memref<8x128xf32, #tpu.memory_space<vmem>>, vector<8x128xf32>
      tpu.vector_store %arg16[%c0_358, %c0_359], %711 {strides = array<i32>} : memref<8x128xf32, #tpu.memory_space<vmem>>, vector<8x128xf32>,
      %c0_i32_360 = arith.constant 0 : i32
      %713 = tpu.memref_slice %arg21[%c0_i32_360] : memref<4x!tpu.dma_semaphore, #tpu.memory_space<semaphore_mem>> -> memref<1x!tpu.dma_semaphore, #tpu.memory_space<semaphore_mem>>
      %714 = tpu.memref_squeeze %713 : memref<1x!tpu.dma_semaphore, #tpu.memory_space<semaphore_mem>> -> memref<!tpu.dma_semaphore, #tpu.memory_space<semaphore_mem>>
      tpu.enqueue_dma source(%arg3 : memref<16x512xbf16, #tpu.memory_space<any>>) target(%arg17 : memref<16x512xbf16, #tpu.memory_space<vmem>>) target_semaphore(%714 : memref<!tpu.dma_semaphore, #tpu.memory_space<semaphore_mem>>)
      %c1_i32 = arith.constant 1 : i32
      %715 = tpu.memref_slice %arg21[%c1_i32] : memref<4x!tpu.dma_semaphore, #tpu.memory_space<semaphore_mem>> -> memref<1x!tpu.dma_semaphore, #tpu.memory_space<semaphore_mem>>
      %716 = tpu.memref_squeeze %715 : memref<1x!tpu.dma_semaphore, #tpu.memory_space<semaphore_mem>> -> memref<!tpu.dma_semaphore, #tpu.memory_space<semaphore_mem>>
      tpu.enqueue_dma source(%arg4 : memref<128x512xbf16, #tpu.memory_space<any>>) target(%arg18 : memref<128x512xbf16, #tpu.memory_space<vmem>>) target_semaphore(%716 : memref<!tpu.dma_semaphore, #tpu.memory_space<semaphore_mem>>)
      %c2_i32 = arith.constant 2 : i32
      %717 = tpu.memref_slice %arg21[%c2_i32] : memref<4x!tpu.dma_semaphore, #tpu.memory_space<semaphore_mem>> -> memref<1x!tpu.dma_semaphore, #tpu.memory_space<semaphore_mem>>
      %718 = tpu.memref_squeeze %717 : memref<1x!tpu.dma_semaphore, #tpu.memory_space<semaphore_mem>> -> memref<!tpu.dma_semaphore, #tpu.memory_space<semaphore_mem>>
      tpu.enqueue_dma source(%arg5 : memref<16x512xbf16, #tpu.memory_space<any>>) target(%arg19 : memref<16x512xbf16, #tpu.memory_space<vmem>>) target_semaphore(%718 : memref<!tpu.dma_semaphore, #tpu.memory_space<semaphore_mem>>)
      %c3_i32 = arith.constant 3 : i32
      %719 = tpu.memref_slice %arg21[%c3_i32] : memref<4x!tpu.dma_semaphore, #tpu.memory_space<semaphore_mem>> -> memref<1x!tpu.dma_semaphore, #tpu.memory_space<semaphore_mem>>
      %720 = tpu.memref_squeeze %719 : memref<1x!tpu.dma_semaphore, #tpu.memory_space<semaphore_mem>> -> memref<!tpu.dma_semaphore, #tpu.memory_space<semaphore_mem>>
      tpu.enqueue_dma source(%arg6 : memref<128x512xbf16, #tpu.memory_space<any>>) target(%arg20 : memref<128x512xbf16, #tpu.memory_space<vmem>>) target_semaphore(%720 : memref<!tpu.dma_semaphore, #tpu.memory_space<semaphore_mem>>)
      %c0_i32_361 = arith.constant 0 : i32
      %721 = tpu.memref_slice %arg21[%c0_i32_361] : memref<4x!tpu.dma_semaphore, #tpu.memory_space<semaphore_mem>> -> memref<1x!tpu.dma_semaphore, #tpu.memory_space<semaphore_mem>>
      %722 = tpu.memref_squeeze %721 : memref<1x!tpu.dma_semaphore, #tpu.memory_space<semaphore_mem>> -> memref<!tpu.dma_semaphore, #tpu.memory_space<semaphore_mem>>
      tpu.wait_dma2 semaphore(%722 : memref<!tpu.dma_semaphore, #tpu.memory_space<semaphore_mem>>) src(%arg3 : memref<16x512xbf16, #tpu.memory_space<any>>) dst(%arg17 : memref<16x512xbf16, #tpu.memory_space<vmem>>)
      %c1_i32_362 = arith.constant 1 : i32
      %723 = tpu.memref_slice %arg21[%c1_i32_362] : memref<4x!tpu.dma_semaphore, #tpu.memory_space<semaphore_mem>> -> memref<1x!tpu.dma_semaphore, #tpu.memory_space<semaphore_mem>>
      %724 = tpu.memref_squeeze %723 : memref<1x!tpu.dma_semaphore, #tpu.memory_space<semaphore_mem>> -> memref<!tpu.dma_semaphore, #tpu.memory_space<semaphore_mem>>
      tpu.wait_dma2 semaphore(%724 : memref<!tpu.dma_semaphore, #tpu.memory_space<semaphore_mem>>) src(%arg4 : memref<128x512xbf16, #tpu.memory_space<any>>) dst(%arg18 : memref<128x512xbf16, #tpu.memory_space<vmem>>)
      %c2_i32_363 = arith.constant 2 : i32
      %725 = tpu.memref_slice %arg21[%c2_i32_363] : memref<4x!tpu.dma_semaphore, #tpu.memory_space<semaphore_mem>> -> memref<1x!tpu.dma_semaphore, #tpu.memory_space<semaphore_mem>>
      %726 = tpu.memref_squeeze %725 : memref<1x!tpu.dma_semaphore, #tpu.memory_space<semaphore_mem>> -> memref<!tpu.dma_semaphore, #tpu.memory_space<semaphore_mem>>
      tpu.wait_dma2 semaphore(%726 : memref<!tpu.dma_semaphore, #tpu.memory_space<semaphore_mem>>) src(%arg5 : memref<16x512xbf16, #tpu.memory_space<any>>) dst(%arg19 : memref<16x512xbf16, #tpu.memory_space<vmem>>)
      %c3_i32_364 = arith.constant 3 : i32
      %727 = tpu.memref_slice %arg21[%c3_i32_364] : memref<4x!tpu.dma_semaphore, #tpu.memory_space<semaphore_mem>> -> memref<1x!tpu.dma_semaphore, #tpu.memory_space<semaphore_mem>>
      %728 = tpu.memref_squeeze %727 : memref<1x!tpu.dma_semaphore, #tpu.memory_space<semaphore_mem>> -> memref<!tpu.dma_semaphore, #tpu.memory_space<semaphore_mem>>
      tpu.wait_dma2 semaphore(%728 : memref<!tpu.dma_semaphore, #tpu.memory_space<semaphore_mem>>) src(%arg6 : memref<128x512xbf16, #tpu.memory_space<any>>) dst(%arg20 : memref<128x512xbf16, #tpu.memory_space<vmem>>)
    } else {
    }
    %c0 = arith.constant 0 : index
    %c0_1 = arith.constant 0 : index
    %3 = vector.load %arg13[%c0, %c0_1] : memref<8x128xf32, #tpu.memory_space<vmem>>, vector<8x128xf32>
    %c0_2 = arith.constant 0 : index
    %c0_3 = arith.constant 0 : index
    %4 = vector.load %arg14[%c0_2, %c0_3] : memref<8x128xf32, #tpu.memory_space<vmem>>, vector<8x128xf32>
    %c0_4 = arith.constant 0 : index
    %c0_5 = arith.constant 0 : index
    %5 = vector.load %arg15[%c0_4, %c0_5] : memref<8x128xf32, #tpu.memory_space<vmem>>, vector<8x128xf32>
    %c0_6 = arith.constant 0 : index
    %c0_7 = arith.constant 0 : index
    %6 = vector.load %arg16[%c0_6, %c0_7] : memref<8x128xf32, #tpu.memory_space<vmem>>, vector<8x128xf32>
    %c0_8 = arith.constant 0 : index
    %c0_9 = arith.constant 0 : index
    %c0_10 = arith.constant 0 : index
    %7 = vector.load %arg1[%c0_8, %c0_9, %c0_10] : memref<8x8x16xbf16, #tpu.memory_space<vmem>>, vector<1x8x16xbf16>
    %8 = vector.shape_cast %7 : vector<1x8x16xbf16> to vector<8x16xbf16>
    %c0_11 = arith.constant 0 : index
    %c0_12 = arith.constant 0 : index
    %9 = vector.load %arg17[%c0_11, %c0_12] : memref<16x512xbf16, #tpu.memory_space<vmem>>, vector<16x512xbf16>
    %cst = arith.constant dense<0.000000e+00> : vector<8x512xf32>
    %10 = tpu.matmul %8, %9, %cst {dimension_numbers = #tpu.dot_dimension_numbers<[1], [0], [0], [1], [0, 0, 1, 1], [], []>} : vector<8x16xbf16>, vector<16x512xbf16>, vector<8x512xf32> -> vector<8x512xf32>
    %11 = arith.truncf %3 : vector<8x128xf32> to vector<8x128xbf16>
    %c0_13 = arith.constant 0 : index
    %c0_14 = arith.constant 0 : index
    %12 = vector.load %arg18[%c0_13, %c0_14] : memref<128x512xbf16, #tpu.memory_space<vmem>>, vector<128x512xbf16>
    %cst_15 = arith.constant dense<0.000000e+00> : vector<8x512xf32>
    %13 = tpu.matmul %11, %12, %cst_15 {dimension_numbers = #tpu.dot_dimension_numbers<[1], [0], [0], [1], [0, 0, 1, 1], [], []>} : vector<8x128xbf16>, vector<128x512xbf16>, vector<8x512xf32> -> vector<8x512xf32>
    %14 = arith.addf %10, %13 : vector<8x512xf32>
    %15 = vector.extract_strided_slice %14 {offsets = [0, 0], sizes = [8, 128], strides = [1, 1]} : vector<8x512xf32> to vector<8x128xf32>
    %cst_16 = arith.constant 5.000000e-01 : f32
    %16 = vector.broadcast %cst_16 : f32 to vector<8x128xf32>
    %17 = arith.mulf %16, %15 : vector<8x128xf32>
    %18 = math.tanh %17 : vector<8x128xf32>
    %cst_17 = arith.constant 5.000000e-01 : f32
    %19 = vector.broadcast %cst_17 : f32 to vector<8x128xf32>
    %20 = arith.mulf %19, %18 : vector<8x128xf32>
    %cst_18 = arith.constant 5.000000e-01 : f32
    %21 = vector.broadcast %cst_18 : f32 to vector<8x128xf32>
    %22 = arith.addf %20, %21 : vector<8x128xf32>
    %23 = vector.extract_strided_slice %14 {offsets = [0, 128], sizes = [8, 128], strides = [1, 1]} : vector<8x512xf32> to vector<8x128xf32>
    %cst_19 = arith.constant 5.000000e-01 : f32
    %24 = vector.broadcast %cst_19 : f32 to vector<8x128xf32>
    %25 = arith.mulf %24, %23 : vector<8x128xf32>
    %26 = math.tanh %25 : vector<8x128xf32>
    %cst_20 = arith.constant 5.000000e-01 : f32
    %27 = vector.broadcast %cst_20 : f32 to vector<8x128xf32>
    %28 = arith.mulf %27, %26 : vector<8x128xf32>
    %cst_21 = arith.constant 5.000000e-01 : f32
    %29 = vector.broadcast %cst_21 : f32 to vector<8x128xf32>
    %30 = arith.addf %28, %29 : vector<8x128xf32>
    %31 = vector.extract_strided_slice %14 {offsets = [0, 256], sizes = [8, 128], strides = [1, 1]} : vector<8x512xf32> to vector<8x128xf32>
    %32 = math.tanh %31 : vector<8x128xf32>
    %33 = vector.extract_strided_slice %14 {offsets = [0, 384], sizes = [8, 128], strides = [1, 1]} : vector<8x512xf32> to vector<8x128xf32>
    %cst_22 = arith.constant 5.000000e-01 : f32
    %34 = vector.broadcast %cst_22 : f32 to vector<8x128xf32>
    %35 = arith.mulf %34, %33 : vector<8x128xf32>
    %36 = math.tanh %35 : vector<8x128xf32>
    %cst_23 = arith.constant 5.000000e-01 : f32
    %37 = vector.broadcast %cst_23 : f32 to vector<8x128xf32>
    %38 = arith.mulf %37, %36 : vector<8x128xf32>
    %cst_24 = arith.constant 5.000000e-01 : f32
    %39 = vector.broadcast %cst_24 : f32 to vector<8x128xf32>
    %40 = arith.addf %38, %39 : vector<8x128xf32>
    %41 = arith.mulf %30, %4 : vector<8x128xf32>
    %42 = arith.mulf %22, %32 : vector<8x128xf32>
    %43 = arith.addf %41, %42 : vector<8x128xf32>
    %44 = math.tanh %43 : vector<8x128xf32>
    %45 = arith.mulf %40, %44 : vector<8x128xf32>
    %46 = arith.truncf %45 : vector<8x128xf32> to vector<8x128xbf16>
    %c0_25 = arith.constant 0 : index
    %c0_26 = arith.constant 0 : index
    %c0_27 = arith.constant 0 : index
    %47 = vector.load %arg7[%c0_25, %c0_26, %c0_27] : memref<8x8x128xbf16, #tpu.memory_space<vmem>>, vector<1x8x128xbf16>
    %48 = vector.shape_cast %47 : vector<1x8x128xbf16> to vector<8x128xbf16>
    %49 = vector.shape_cast %46 : vector<8x128xbf16> to vector<1x8x128xbf16>
    tpu.vector_store %arg7[%c0_25, %c0_26, %c0_27], %49 {strides = array<i32>} : memref<8x8x128xbf16, #tpu.memory_space<vmem>>, vector<1x8x128xbf16>,
    %c0_28 = arith.constant 0 : index
    %c0_29 = arith.constant 0 : index
    %c0_30 = arith.constant 0 : index
    %50 = vector.load %arg2[%c0_28, %c0_29, %c0_30] : memref<8x8x16xbf16, #tpu.memory_space<vmem>>, vector<1x8x16xbf16>
    %51 = vector.shape_cast %50 : vector<1x8x16xbf16> to vector<8x16xbf16>
    %c0_31 = arith.constant 0 : index
    %c0_32 = arith.constant 0 : index
    %52 = vector.load %arg19[%c0_31, %c0_32] : memref<16x512xbf16, #tpu.memory_space<vmem>>, vector<16x512xbf16>
    %cst_33 = arith.constant dense<0.000000e+00> : vector<8x512xf32>
    %53 = tpu.matmul %51, %52, %cst_33 {dimension_numbers = #tpu.dot_dimension_numbers<[1], [0], [0], [1], [0, 0, 1, 1], [], []>} : vector<8x16xbf16>, vector<16x512xbf16>, vector<8x512xf32> -> vector<8x512xf32>
    %54 = arith.truncf %5 : vector<8x128xf32> to vector<8x128xbf16>
    %c0_34 = arith.constant 0 : index
    %c0_35 = arith.constant 0 : index
    %55 = vector.load %arg20[%c0_34, %c0_35] : memref<128x512xbf16, #tpu.memory_space<vmem>>, vector<128x512xbf16>
    %cst_36 = arith.constant dense<0.000000e+00> : vector<8x512xf32>
    %56 = tpu.matmul %54, %55, %cst_36 {dimension_numbers = #tpu.dot_dimension_numbers<[1], [0], [0], [1], [0, 0, 1, 1], [], []>} : vector<8x128xbf16>, vector<128x512xbf16>, vector<8x512xf32> -> vector<8x512xf32>
    %57 = arith.addf %53, %56 : vector<8x512xf32>
    %58 = vector.extract_strided_slice %57 {offsets = [0, 0], sizes = [8, 128], strides = [1, 1]} : vector<8x512xf32> to vector<8x128xf32>
    %cst_37 = arith.constant 5.000000e-01 : f32
    %59 = vector.broadcast %cst_37 : f32 to vector<8x128xf32>
    %60 = arith.mulf %59, %58 : vector<8x128xf32>
    %61 = math.tanh %60 : vector<8x128xf32>
    %cst_38 = arith.constant 5.000000e-01 : f32
    %62 = vector.broadcast %cst_38 : f32 to vector<8x128xf32>
    %63 = arith.mulf %62, %61 : vector<8x128xf32>
    %cst_39 = arith.constant 5.000000e-01 : f32
    %64 = vector.broadcast %cst_39 : f32 to vector<8x128xf32>
    %65 = arith.addf %63, %64 : vector<8x128xf32>
    %66 = vector.extract_strided_slice %57 {offsets = [0, 128], sizes = [8, 128], strides = [1, 1]} : vector<8x512xf32> to vector<8x128xf32>
    %cst_40 = arith.constant 5.000000e-01 : f32
    %67 = vector.broadcast %cst_40 : f32 to vector<8x128xf32>
    %68 = arith.mulf %67, %66 : vector<8x128xf32>
    %69 = math.tanh %68 : vector<8x128xf32>
    %cst_41 = arith.constant 5.000000e-01 : f32
    %70 = vector.broadcast %cst_41 : f32 to vector<8x128xf32>
    %71 = arith.mulf %70, %69 : vector<8x128xf32>
    %cst_42 = arith.constant 5.000000e-01 : f32
    %72 = vector.broadcast %cst_42 : f32 to vector<8x128xf32>
    %73 = arith.addf %71, %72 : vector<8x128xf32>
    %74 = vector.extract_strided_slice %57 {offsets = [0, 256], sizes = [8, 128], strides = [1, 1]} : vector<8x512xf32> to vector<8x128xf32>
    %75 = math.tanh %74 : vector<8x128xf32>
    %76 = vector.extract_strided_slice %57 {offsets = [0, 384], sizes = [8, 128], strides = [1, 1]} : vector<8x512xf32> to vector<8x128xf32>
    %cst_43 = arith.constant 5.000000e-01 : f32
    %77 = vector.broadcast %cst_43 : f32 to vector<8x128xf32>
    %78 = arith.mulf %77, %76 : vector<8x128xf32>
    %79 = math.tanh %78 : vector<8x128xf32>
    %cst_44 = arith.constant 5.000000e-01 : f32
    %80 = vector.broadcast %cst_44 : f32 to vector<8x128xf32>
    %81 = arith.mulf %80, %79 : vector<8x128xf32>
    %cst_45 = arith.constant 5.000000e-01 : f32
    %82 = vector.broadcast %cst_45 : f32 to vector<8x128xf32>
    %83 = arith.addf %81, %82 : vector<8x128xf32>
    %84 = arith.mulf %73, %6 : vector<8x128xf32>
    %85 = arith.mulf %65, %75 : vector<8x128xf32>
    %86 = arith.addf %84, %85 : vector<8x128xf32>
    %87 = math.tanh %86 : vector<8x128xf32>
    %88 = arith.mulf %83, %87 : vector<8x128xf32>
    %89 = arith.truncf %88 : vector<8x128xf32> to vector<8x128xbf16>
    %c0_46 = arith.constant 0 : index
    %c0_47 = arith.constant 0 : index
    %c0_48 = arith.constant 0 : index
    %90 = vector.load %arg8[%c0_46, %c0_47, %c0_48] : memref<8x8x128xbf16, #tpu.memory_space<vmem>>, vector<1x8x128xbf16>
    %91 = vector.shape_cast %90 : vector<1x8x128xbf16> to vector<8x128xbf16>
    %92 = vector.shape_cast %89 : vector<8x128xbf16> to vector<1x8x128xbf16>
    tpu.vector_store %arg8[%c0_46, %c0_47, %c0_48], %92 {strides = array<i32>} : memref<8x8x128xbf16, #tpu.memory_space<vmem>>, vector<1x8x128xbf16>,
    %c0_i32_49 = arith.constant 0 : i32
    %93 = arith.cmpi eq, %arg0, %c0_i32_49 : i32
    %94 = arith.extui %93 : i1 to i32
    %c0_i32_50 = arith.constant 0 : i32
    %95 = arith.cmpi ne, %94, %c0_i32_50 : i32
    scf.if %95 {
      %c0_348 = arith.constant 0 : index
      %c0_349 = arith.constant 0 : index
      %705 = vector.load %arg11[%c0_348, %c0_349] : memref<8x128xf32, #tpu.memory_space<vmem>>, vector<8x128xf32>
      tpu.vector_store %arg11[%c0_348, %c0_349], %88 {strides = array<i32>} : memref<8x128xf32, #tpu.memory_space<vmem>>, vector<8x128xf32>,
      %c0_350 = arith.constant 0 : index
      %c0_351 = arith.constant 0 : index
      %706 = vector.load %arg12[%c0_350, %c0_351] : memref<8x128xf32, #tpu.memory_space<vmem>>, vector<8x128xf32>
      tpu.vector_store %arg12[%c0_350, %c0_351], %86 {strides = array<i32>} : memref<8x128xf32, #tpu.memory_space<vmem>>, vector<8x128xf32>,
    } else {
    }
    %c1 = arith.constant 1 : index
    %c0_51 = arith.constant 0 : index
    %c0_52 = arith.constant 0 : index
    %96 = vector.load %arg1[%c1, %c0_51, %c0_52] : memref<8x8x16xbf16, #tpu.memory_space<vmem>>, vector<1x8x16xbf16>
    %97 = vector.shape_cast %96 : vector<1x8x16xbf16> to vector<8x16xbf16>
    %c0_53 = arith.constant 0 : index
    %c0_54 = arith.constant 0 : index
    %98 = vector.load %arg17[%c0_53, %c0_54] : memref<16x512xbf16, #tpu.memory_space<vmem>>, vector<16x512xbf16>
    %cst_55 = arith.constant dense<0.000000e+00> : vector<8x512xf32>
    %99 = tpu.matmul %97, %98, %cst_55 {dimension_numbers = #tpu.dot_dimension_numbers<[1], [0], [0], [1], [0, 0, 1, 1], [], []>} : vector<8x16xbf16>, vector<16x512xbf16>, vector<8x512xf32> -> vector<8x512xf32>
    %100 = arith.truncf %45 : vector<8x128xf32> to vector<8x128xbf16>
    %c0_56 = arith.constant 0 : index
    %c0_57 = arith.constant 0 : index
    %101 = vector.load %arg18[%c0_56, %c0_57] : memref<128x512xbf16, #tpu.memory_space<vmem>>, vector<128x512xbf16>
    %cst_58 = arith.constant dense<0.000000e+00> : vector<8x512xf32>
    %102 = tpu.matmul %100, %101, %cst_58 {dimension_numbers = #tpu.dot_dimension_numbers<[1], [0], [0], [1], [0, 0, 1, 1], [], []>} : vector<8x128xbf16>, vector<128x512xbf16>, vector<8x512xf32> -> vector<8x512xf32>
    %103 = arith.addf %99, %102 : vector<8x512xf32>
    %104 = vector.extract_strided_slice %103 {offsets = [0, 0], sizes = [8, 128], strides = [1, 1]} : vector<8x512xf32> to vector<8x128xf32>
    %cst_59 = arith.constant 5.000000e-01 : f32
    %105 = vector.broadcast %cst_59 : f32 to vector<8x128xf32>
    %106 = arith.mulf %105, %104 : vector<8x128xf32>
    %107 = math.tanh %106 : vector<8x128xf32>
    %cst_60 = arith.constant 5.000000e-01 : f32
    %108 = vector.broadcast %cst_60 : f32 to vector<8x128xf32>
    %109 = arith.mulf %108, %107 : vector<8x128xf32>
    %cst_61 = arith.constant 5.000000e-01 : f32
    %110 = vector.broadcast %cst_61 : f32 to vector<8x128xf32>
    %111 = arith.addf %109, %110 : vector<8x128xf32>
    %112 = vector.extract_strided_slice %103 {offsets = [0, 128], sizes = [8, 128], strides = [1, 1]} : vector<8x512xf32> to vector<8x128xf32>
    %cst_62 = arith.constant 5.000000e-01 : f32
    %113 = vector.broadcast %cst_62 : f32 to vector<8x128xf32>
    %114 = arith.mulf %113, %112 : vector<8x128xf32>
    %115 = math.tanh %114 : vector<8x128xf32>
    %cst_63 = arith.constant 5.000000e-01 : f32
    %116 = vector.broadcast %cst_63 : f32 to vector<8x128xf32>
    %117 = arith.mulf %116, %115 : vector<8x128xf32>
    %cst_64 = arith.constant 5.000000e-01 : f32
    %118 = vector.broadcast %cst_64 : f32 to vector<8x128xf32>
    %119 = arith.addf %117, %118 : vector<8x128xf32>
    %120 = vector.extract_strided_slice %103 {offsets = [0, 256], sizes = [8, 128], strides = [1, 1]} : vector<8x512xf32> to vector<8x128xf32>
    %121 = math.tanh %120 : vector<8x128xf32>
    %122 = vector.extract_strided_slice %103 {offsets = [0, 384], sizes = [8, 128], strides = [1, 1]} : vector<8x512xf32> to vector<8x128xf32>
    %cst_65 = arith.constant 5.000000e-01 : f32
    %123 = vector.broadcast %cst_65 : f32 to vector<8x128xf32>
    %124 = arith.mulf %123, %122 : vector<8x128xf32>
    %125 = math.tanh %124 : vector<8x128xf32>
    %cst_66 = arith.constant 5.000000e-01 : f32
    %126 = vector.broadcast %cst_66 : f32 to vector<8x128xf32>
    %127 = arith.mulf %126, %125 : vector<8x128xf32>
    %cst_67 = arith.constant 5.000000e-01 : f32
    %128 = vector.broadcast %cst_67 : f32 to vector<8x128xf32>
    %129 = arith.addf %127, %128 : vector<8x128xf32>
    %130 = arith.mulf %119, %43 : vector<8x128xf32>
    %131 = arith.mulf %111, %121 : vector<8x128xf32>
    %132 = arith.addf %130, %131 : vector<8x128xf32>
    %133 = math.tanh %132 : vector<8x128xf32>
    %134 = arith.mulf %129, %133 : vector<8x128xf32>
    %135 = arith.truncf %134 : vector<8x128xf32> to vector<8x128xbf16>
    %c1_68 = arith.constant 1 : index
    %c0_69 = arith.constant 0 : index
    %c0_70 = arith.constant 0 : index
    %136 = vector.load %arg7[%c1_68, %c0_69, %c0_70] : memref<8x8x128xbf16, #tpu.memory_space<vmem>>, vector<1x8x128xbf16>
    %137 = vector.shape_cast %136 : vector<1x8x128xbf16> to vector<8x128xbf16>
    %138 = vector.shape_cast %135 : vector<8x128xbf16> to vector<1x8x128xbf16>
    tpu.vector_store %arg7[%c1_68, %c0_69, %c0_70], %138 {strides = array<i32>} : memref<8x8x128xbf16, #tpu.memory_space<vmem>>, vector<1x8x128xbf16>,
    %c1_71 = arith.constant 1 : index
    %c0_72 = arith.constant 0 : index
    %c0_73 = arith.constant 0 : index
    %139 = vector.load %arg2[%c1_71, %c0_72, %c0_73] : memref<8x8x16xbf16, #tpu.memory_space<vmem>>, vector<1x8x16xbf16>
    %140 = vector.shape_cast %139 : vector<1x8x16xbf16> to vector<8x16xbf16>
    %c0_74 = arith.constant 0 : index
    %c0_75 = arith.constant 0 : index
    %141 = vector.load %arg19[%c0_74, %c0_75] : memref<16x512xbf16, #tpu.memory_space<vmem>>, vector<16x512xbf16>
    %cst_76 = arith.constant dense<0.000000e+00> : vector<8x512xf32>
    %142 = tpu.matmul %140, %141, %cst_76 {dimension_numbers = #tpu.dot_dimension_numbers<[1], [0], [0], [1], [0, 0, 1, 1], [], []>} : vector<8x16xbf16>, vector<16x512xbf16>, vector<8x512xf32> -> vector<8x512xf32>
    %143 = arith.truncf %88 : vector<8x128xf32> to vector<8x128xbf16>
    %c0_77 = arith.constant 0 : index
    %c0_78 = arith.constant 0 : index
    %144 = vector.load %arg20[%c0_77, %c0_78] : memref<128x512xbf16, #tpu.memory_space<vmem>>, vector<128x512xbf16>
    %cst_79 = arith.constant dense<0.000000e+00> : vector<8x512xf32>
    %145 = tpu.matmul %143, %144, %cst_79 {dimension_numbers = #tpu.dot_dimension_numbers<[1], [0], [0], [1], [0, 0, 1, 1], [], []>} : vector<8x128xbf16>, vector<128x512xbf16>, vector<8x512xf32> -> vector<8x512xf32>
    %146 = arith.addf %142, %145 : vector<8x512xf32>
    %147 = vector.extract_strided_slice %146 {offsets = [0, 0], sizes = [8, 128], strides = [1, 1]} : vector<8x512xf32> to vector<8x128xf32>
    %cst_80 = arith.constant 5.000000e-01 : f32
    %148 = vector.broadcast %cst_80 : f32 to vector<8x128xf32>
    %149 = arith.mulf %148, %147 : vector<8x128xf32>
    %150 = math.tanh %149 : vector<8x128xf32>
    %cst_81 = arith.constant 5.000000e-01 : f32
    %151 = vector.broadcast %cst_81 : f32 to vector<8x128xf32>
    %152 = arith.mulf %151, %150 : vector<8x128xf32>
    %cst_82 = arith.constant 5.000000e-01 : f32
    %153 = vector.broadcast %cst_82 : f32 to vector<8x128xf32>
    %154 = arith.addf %152, %153 : vector<8x128xf32>
    %155 = vector.extract_strided_slice %146 {offsets = [0, 128], sizes = [8, 128], strides = [1, 1]} : vector<8x512xf32> to vector<8x128xf32>
    %cst_83 = arith.constant 5.000000e-01 : f32
    %156 = vector.broadcast %cst_83 : f32 to vector<8x128xf32>
    %157 = arith.mulf %156, %155 : vector<8x128xf32>
    %158 = math.tanh %157 : vector<8x128xf32>
    %cst_84 = arith.constant 5.000000e-01 : f32
    %159 = vector.broadcast %cst_84 : f32 to vector<8x128xf32>
    %160 = arith.mulf %159, %158 : vector<8x128xf32>
    %cst_85 = arith.constant 5.000000e-01 : f32
    %161 = vector.broadcast %cst_85 : f32 to vector<8x128xf32>
    %162 = arith.addf %160, %161 : vector<8x128xf32>
    %163 = vector.extract_strided_slice %146 {offsets = [0, 256], sizes = [8, 128], strides = [1, 1]} : vector<8x512xf32> to vector<8x128xf32>
    %164 = math.tanh %163 : vector<8x128xf32>
    %165 = vector.extract_strided_slice %146 {offsets = [0, 384], sizes = [8, 128], strides = [1, 1]} : vector<8x512xf32> to vector<8x128xf32>
    %cst_86 = arith.constant 5.000000e-01 : f32
    %166 = vector.broadcast %cst_86 : f32 to vector<8x128xf32>
    %167 = arith.mulf %166, %165 : vector<8x128xf32>
    %168 = math.tanh %167 : vector<8x128xf32>
    %cst_87 = arith.constant 5.000000e-01 : f32
    %169 = vector.broadcast %cst_87 : f32 to vector<8x128xf32>
    %170 = arith.mulf %169, %168 : vector<8x128xf32>
    %cst_88 = arith.constant 5.000000e-01 : f32
    %171 = vector.broadcast %cst_88 : f32 to vector<8x128xf32>
    %172 = arith.addf %170, %171 : vector<8x128xf32>
    %173 = arith.mulf %162, %86 : vector<8x128xf32>
    %174 = arith.mulf %154, %164 : vector<8x128xf32>
    %175 = arith.addf %173, %174 : vector<8x128xf32>
    %176 = math.tanh %175 : vector<8x128xf32>
    %177 = arith.mulf %172, %176 : vector<8x128xf32>
    %178 = arith.truncf %177 : vector<8x128xf32> to vector<8x128xbf16>
    %c1_89 = arith.constant 1 : index
    %c0_90 = arith.constant 0 : index
    %c0_91 = arith.constant 0 : index
    %179 = vector.load %arg8[%c1_89, %c0_90, %c0_91] : memref<8x8x128xbf16, #tpu.memory_space<vmem>>, vector<1x8x128xbf16>
    %180 = vector.shape_cast %179 : vector<1x8x128xbf16> to vector<8x128xbf16>
    %181 = vector.shape_cast %178 : vector<8x128xbf16> to vector<1x8x128xbf16>
    tpu.vector_store %arg8[%c1_89, %c0_90, %c0_91], %181 {strides = array<i32>} : memref<8x8x128xbf16, #tpu.memory_space<vmem>>, vector<1x8x128xbf16>,
    %c2 = arith.constant 2 : index
    %c0_92 = arith.constant 0 : index
    %c0_93 = arith.constant 0 : index
    %182 = vector.load %arg1[%c2, %c0_92, %c0_93] : memref<8x8x16xbf16, #tpu.memory_space<vmem>>, vector<1x8x16xbf16>
    %183 = vector.shape_cast %182 : vector<1x8x16xbf16> to vector<8x16xbf16>
    %c0_94 = arith.constant 0 : index
    %c0_95 = arith.constant 0 : index
    %184 = vector.load %arg17[%c0_94, %c0_95] : memref<16x512xbf16, #tpu.memory_space<vmem>>, vector<16x512xbf16>
    %cst_96 = arith.constant dense<0.000000e+00> : vector<8x512xf32>
    %185 = tpu.matmul %183, %184, %cst_96 {dimension_numbers = #tpu.dot_dimension_numbers<[1], [0], [0], [1], [0, 0, 1, 1], [], []>} : vector<8x16xbf16>, vector<16x512xbf16>, vector<8x512xf32> -> vector<8x512xf32>
    %186 = arith.truncf %134 : vector<8x128xf32> to vector<8x128xbf16>
    %c0_97 = arith.constant 0 : index
    %c0_98 = arith.constant 0 : index
    %187 = vector.load %arg18[%c0_97, %c0_98] : memref<128x512xbf16, #tpu.memory_space<vmem>>, vector<128x512xbf16>
    %cst_99 = arith.constant dense<0.000000e+00> : vector<8x512xf32>
    %188 = tpu.matmul %186, %187, %cst_99 {dimension_numbers = #tpu.dot_dimension_numbers<[1], [0], [0], [1], [0, 0, 1, 1], [], []>} : vector<8x128xbf16>, vector<128x512xbf16>, vector<8x512xf32> -> vector<8x512xf32>
    %189 = arith.addf %185, %188 : vector<8x512xf32>
    %190 = vector.extract_strided_slice %189 {offsets = [0, 0], sizes = [8, 128], strides = [1, 1]} : vector<8x512xf32> to vector<8x128xf32>
    %cst_100 = arith.constant 5.000000e-01 : f32
    %191 = vector.broadcast %cst_100 : f32 to vector<8x128xf32>
    %192 = arith.mulf %191, %190 : vector<8x128xf32>
    %193 = math.tanh %192 : vector<8x128xf32>
    %cst_101 = arith.constant 5.000000e-01 : f32
    %194 = vector.broadcast %cst_101 : f32 to vector<8x128xf32>
    %195 = arith.mulf %194, %193 : vector<8x128xf32>
    %cst_102 = arith.constant 5.000000e-01 : f32
    %196 = vector.broadcast %cst_102 : f32 to vector<8x128xf32>
    %197 = arith.addf %195, %196 : vector<8x128xf32>
    %198 = vector.extract_strided_slice %189 {offsets = [0, 128], sizes = [8, 128], strides = [1, 1]} : vector<8x512xf32> to vector<8x128xf32>
    %cst_103 = arith.constant 5.000000e-01 : f32
    %199 = vector.broadcast %cst_103 : f32 to vector<8x128xf32>
    %200 = arith.mulf %199, %198 : vector<8x128xf32>
    %201 = math.tanh %200 : vector<8x128xf32>
    %cst_104 = arith.constant 5.000000e-01 : f32
    %202 = vector.broadcast %cst_104 : f32 to vector<8x128xf32>
    %203 = arith.mulf %202, %201 : vector<8x128xf32>
    %cst_105 = arith.constant 5.000000e-01 : f32
    %204 = vector.broadcast %cst_105 : f32 to vector<8x128xf32>
    %205 = arith.addf %203, %204 : vector<8x128xf32>
    %206 = vector.extract_strided_slice %189 {offsets = [0, 256], sizes = [8, 128], strides = [1, 1]} : vector<8x512xf32> to vector<8x128xf32>
    %207 = math.tanh %206 : vector<8x128xf32>
    %208 = vector.extract_strided_slice %189 {offsets = [0, 384], sizes = [8, 128], strides = [1, 1]} : vector<8x512xf32> to vector<8x128xf32>
    %cst_106 = arith.constant 5.000000e-01 : f32
    %209 = vector.broadcast %cst_106 : f32 to vector<8x128xf32>
    %210 = arith.mulf %209, %208 : vector<8x128xf32>
    %211 = math.tanh %210 : vector<8x128xf32>
    %cst_107 = arith.constant 5.000000e-01 : f32
    %212 = vector.broadcast %cst_107 : f32 to vector<8x128xf32>
    %213 = arith.mulf %212, %211 : vector<8x128xf32>
    %cst_108 = arith.constant 5.000000e-01 : f32
    %214 = vector.broadcast %cst_108 : f32 to vector<8x128xf32>
    %215 = arith.addf %213, %214 : vector<8x128xf32>
    %216 = arith.mulf %205, %132 : vector<8x128xf32>
    %217 = arith.mulf %197, %207 : vector<8x128xf32>
    %218 = arith.addf %216, %217 : vector<8x128xf32>
    %219 = math.tanh %218 : vector<8x128xf32>
    %220 = arith.mulf %215, %219 : vector<8x128xf32>
    %221 = arith.truncf %220 : vector<8x128xf32> to vector<8x128xbf16>
    %c2_109 = arith.constant 2 : index
    %c0_110 = arith.constant 0 : index
    %c0_111 = arith.constant 0 : index
    %222 = vector.load %arg7[%c2_109, %c0_110, %c0_111] : memref<8x8x128xbf16, #tpu.memory_space<vmem>>, vector<1x8x128xbf16>
    %223 = vector.shape_cast %222 : vector<1x8x128xbf16> to vector<8x128xbf16>
    %224 = vector.shape_cast %221 : vector<8x128xbf16> to vector<1x8x128xbf16>
    tpu.vector_store %arg7[%c2_109, %c0_110, %c0_111], %224 {strides = array<i32>} : memref<8x8x128xbf16, #tpu.memory_space<vmem>>, vector<1x8x128xbf16>,
    %c2_112 = arith.constant 2 : index
    %c0_113 = arith.constant 0 : index
    %c0_114 = arith.constant 0 : index
    %225 = vector.load %arg2[%c2_112, %c0_113, %c0_114] : memref<8x8x16xbf16, #tpu.memory_space<vmem>>, vector<1x8x16xbf16>
    %226 = vector.shape_cast %225 : vector<1x8x16xbf16> to vector<8x16xbf16>
    %c0_115 = arith.constant 0 : index
    %c0_116 = arith.constant 0 : index
    %227 = vector.load %arg19[%c0_115, %c0_116] : memref<16x512xbf16, #tpu.memory_space<vmem>>, vector<16x512xbf16>
    %cst_117 = arith.constant dense<0.000000e+00> : vector<8x512xf32>
    %228 = tpu.matmul %226, %227, %cst_117 {dimension_numbers = #tpu.dot_dimension_numbers<[1], [0], [0], [1], [0, 0, 1, 1], [], []>} : vector<8x16xbf16>, vector<16x512xbf16>, vector<8x512xf32> -> vector<8x512xf32>
    %229 = arith.truncf %177 : vector<8x128xf32> to vector<8x128xbf16>
    %c0_118 = arith.constant 0 : index
    %c0_119 = arith.constant 0 : index
    %230 = vector.load %arg20[%c0_118, %c0_119] : memref<128x512xbf16, #tpu.memory_space<vmem>>, vector<128x512xbf16>
    %cst_120 = arith.constant dense<0.000000e+00> : vector<8x512xf32>
    %231 = tpu.matmul %229, %230, %cst_120 {dimension_numbers = #tpu.dot_dimension_numbers<[1], [0], [0], [1], [0, 0, 1, 1], [], []>} : vector<8x128xbf16>, vector<128x512xbf16>, vector<8x512xf32> -> vector<8x512xf32>
    %232 = arith.addf %228, %231 : vector<8x512xf32>
    %233 = vector.extract_strided_slice %232 {offsets = [0, 0], sizes = [8, 128], strides = [1, 1]} : vector<8x512xf32> to vector<8x128xf32>
    %cst_121 = arith.constant 5.000000e-01 : f32
    %234 = vector.broadcast %cst_121 : f32 to vector<8x128xf32>
    %235 = arith.mulf %234, %233 : vector<8x128xf32>
    %236 = math.tanh %235 : vector<8x128xf32>
    %cst_122 = arith.constant 5.000000e-01 : f32
    %237 = vector.broadcast %cst_122 : f32 to vector<8x128xf32>
    %238 = arith.mulf %237, %236 : vector<8x128xf32>
    %cst_123 = arith.constant 5.000000e-01 : f32
    %239 = vector.broadcast %cst_123 : f32 to vector<8x128xf32>
    %240 = arith.addf %238, %239 : vector<8x128xf32>
    %241 = vector.extract_strided_slice %232 {offsets = [0, 128], sizes = [8, 128], strides = [1, 1]} : vector<8x512xf32> to vector<8x128xf32>
    %cst_124 = arith.constant 5.000000e-01 : f32
    %242 = vector.broadcast %cst_124 : f32 to vector<8x128xf32>
    %243 = arith.mulf %242, %241 : vector<8x128xf32>
    %244 = math.tanh %243 : vector<8x128xf32>
    %cst_125 = arith.constant 5.000000e-01 : f32
    %245 = vector.broadcast %cst_125 : f32 to vector<8x128xf32>
    %246 = arith.mulf %245, %244 : vector<8x128xf32>
    %cst_126 = arith.constant 5.000000e-01 : f32
    %247 = vector.broadcast %cst_126 : f32 to vector<8x128xf32>
    %248 = arith.addf %246, %247 : vector<8x128xf32>
    %249 = vector.extract_strided_slice %232 {offsets = [0, 256], sizes = [8, 128], strides = [1, 1]} : vector<8x512xf32> to vector<8x128xf32>
    %250 = math.tanh %249 : vector<8x128xf32>
    %251 = vector.extract_strided_slice %232 {offsets = [0, 384], sizes = [8, 128], strides = [1, 1]} : vector<8x512xf32> to vector<8x128xf32>
    %cst_127 = arith.constant 5.000000e-01 : f32
    %252 = vector.broadcast %cst_127 : f32 to vector<8x128xf32>
    %253 = arith.mulf %252, %251 : vector<8x128xf32>
    %254 = math.tanh %253 : vector<8x128xf32>
    %cst_128 = arith.constant 5.000000e-01 : f32
    %255 = vector.broadcast %cst_128 : f32 to vector<8x128xf32>
    %256 = arith.mulf %255, %254 : vector<8x128xf32>
    %cst_129 = arith.constant 5.000000e-01 : f32
    %257 = vector.broadcast %cst_129 : f32 to vector<8x128xf32>
    %258 = arith.addf %256, %257 : vector<8x128xf32>
    %259 = arith.mulf %248, %175 : vector<8x128xf32>
    %260 = arith.mulf %240, %250 : vector<8x128xf32>
    %261 = arith.addf %259, %260 : vector<8x128xf32>
    %262 = math.tanh %261 : vector<8x128xf32>
    %263 = arith.mulf %258, %262 : vector<8x128xf32>
    %264 = arith.truncf %263 : vector<8x128xf32> to vector<8x128xbf16>
    %c2_130 = arith.constant 2 : index
    %c0_131 = arith.constant 0 : index
    %c0_132 = arith.constant 0 : index
    %265 = vector.load %arg8[%c2_130, %c0_131, %c0_132] : memref<8x8x128xbf16, #tpu.memory_space<vmem>>, vector<1x8x128xbf16>
    %266 = vector.shape_cast %265 : vector<1x8x128xbf16> to vector<8x128xbf16>
    %267 = vector.shape_cast %264 : vector<8x128xbf16> to vector<1x8x128xbf16>
    tpu.vector_store %arg8[%c2_130, %c0_131, %c0_132], %267 {strides = array<i32>} : memref<8x8x128xbf16, #tpu.memory_space<vmem>>, vector<1x8x128xbf16>,
    %c3 = arith.constant 3 : index
    %c0_133 = arith.constant 0 : index
    %c0_134 = arith.constant 0 : index
    %268 = vector.load %arg1[%c3, %c0_133, %c0_134] : memref<8x8x16xbf16, #tpu.memory_space<vmem>>, vector<1x8x16xbf16>
    %269 = vector.shape_cast %268 : vector<1x8x16xbf16> to vector<8x16xbf16>
    %c0_135 = arith.constant 0 : index
    %c0_136 = arith.constant 0 : index
    %270 = vector.load %arg17[%c0_135, %c0_136] : memref<16x512xbf16, #tpu.memory_space<vmem>>, vector<16x512xbf16>
    %cst_137 = arith.constant dense<0.000000e+00> : vector<8x512xf32>
    %271 = tpu.matmul %269, %270, %cst_137 {dimension_numbers = #tpu.dot_dimension_numbers<[1], [0], [0], [1], [0, 0, 1, 1], [], []>} : vector<8x16xbf16>, vector<16x512xbf16>, vector<8x512xf32> -> vector<8x512xf32>
    %272 = arith.truncf %220 : vector<8x128xf32> to vector<8x128xbf16>
    %c0_138 = arith.constant 0 : index
    %c0_139 = arith.constant 0 : index
    %273 = vector.load %arg18[%c0_138, %c0_139] : memref<128x512xbf16, #tpu.memory_space<vmem>>, vector<128x512xbf16>
    %cst_140 = arith.constant dense<0.000000e+00> : vector<8x512xf32>
    %274 = tpu.matmul %272, %273, %cst_140 {dimension_numbers = #tpu.dot_dimension_numbers<[1], [0], [0], [1], [0, 0, 1, 1], [], []>} : vector<8x128xbf16>, vector<128x512xbf16>, vector<8x512xf32> -> vector<8x512xf32>
    %275 = arith.addf %271, %274 : vector<8x512xf32>
    %276 = vector.extract_strided_slice %275 {offsets = [0, 0], sizes = [8, 128], strides = [1, 1]} : vector<8x512xf32> to vector<8x128xf32>
    %cst_141 = arith.constant 5.000000e-01 : f32
    %277 = vector.broadcast %cst_141 : f32 to vector<8x128xf32>
    %278 = arith.mulf %277, %276 : vector<8x128xf32>
    %279 = math.tanh %278 : vector<8x128xf32>
    %cst_142 = arith.constant 5.000000e-01 : f32
    %280 = vector.broadcast %cst_142 : f32 to vector<8x128xf32>
    %281 = arith.mulf %280, %279 : vector<8x128xf32>
    %cst_143 = arith.constant 5.000000e-01 : f32
    %282 = vector.broadcast %cst_143 : f32 to vector<8x128xf32>
    %283 = arith.addf %281, %282 : vector<8x128xf32>
    %284 = vector.extract_strided_slice %275 {offsets = [0, 128], sizes = [8, 128], strides = [1, 1]} : vector<8x512xf32> to vector<8x128xf32>
    %cst_144 = arith.constant 5.000000e-01 : f32
    %285 = vector.broadcast %cst_144 : f32 to vector<8x128xf32>
    %286 = arith.mulf %285, %284 : vector<8x128xf32>
    %287 = math.tanh %286 : vector<8x128xf32>
    %cst_145 = arith.constant 5.000000e-01 : f32
    %288 = vector.broadcast %cst_145 : f32 to vector<8x128xf32>
    %289 = arith.mulf %288, %287 : vector<8x128xf32>
    %cst_146 = arith.constant 5.000000e-01 : f32
    %290 = vector.broadcast %cst_146 : f32 to vector<8x128xf32>
    %291 = arith.addf %289, %290 : vector<8x128xf32>
    %292 = vector.extract_strided_slice %275 {offsets = [0, 256], sizes = [8, 128], strides = [1, 1]} : vector<8x512xf32> to vector<8x128xf32>
    %293 = math.tanh %292 : vector<8x128xf32>
    %294 = vector.extract_strided_slice %275 {offsets = [0, 384], sizes = [8, 128], strides = [1, 1]} : vector<8x512xf32> to vector<8x128xf32>
    %cst_147 = arith.constant 5.000000e-01 : f32
    %295 = vector.broadcast %cst_147 : f32 to vector<8x128xf32>
    %296 = arith.mulf %295, %294 : vector<8x128xf32>
    %297 = math.tanh %296 : vector<8x128xf32>
    %cst_148 = arith.constant 5.000000e-01 : f32
    %298 = vector.broadcast %cst_148 : f32 to vector<8x128xf32>
    %299 = arith.mulf %298, %297 : vector<8x128xf32>
    %cst_149 = arith.constant 5.000000e-01 : f32
    %300 = vector.broadcast %cst_149 : f32 to vector<8x128xf32>
    %301 = arith.addf %299, %300 : vector<8x128xf32>
    %302 = arith.mulf %291, %218 : vector<8x128xf32>
    %303 = arith.mulf %283, %293 : vector<8x128xf32>
    %304 = arith.addf %302, %303 : vector<8x128xf32>
    %305 = math.tanh %304 : vector<8x128xf32>
    %306 = arith.mulf %301, %305 : vector<8x128xf32>
    %307 = arith.truncf %306 : vector<8x128xf32> to vector<8x128xbf16>
    %c3_150 = arith.constant 3 : index
    %c0_151 = arith.constant 0 : index
    %c0_152 = arith.constant 0 : index
    %308 = vector.load %arg7[%c3_150, %c0_151, %c0_152] : memref<8x8x128xbf16, #tpu.memory_space<vmem>>, vector<1x8x128xbf16>
    %309 = vector.shape_cast %308 : vector<1x8x128xbf16> to vector<8x128xbf16>
    %310 = vector.shape_cast %307 : vector<8x128xbf16> to vector<1x8x128xbf16>
    tpu.vector_store %arg7[%c3_150, %c0_151, %c0_152], %310 {strides = array<i32>} : memref<8x8x128xbf16, #tpu.memory_space<vmem>>, vector<1x8x128xbf16>,
    %c3_153 = arith.constant 3 : index
    %c0_154 = arith.constant 0 : index
    %c0_155 = arith.constant 0 : index
    %311 = vector.load %arg2[%c3_153, %c0_154, %c0_155] : memref<8x8x16xbf16, #tpu.memory_space<vmem>>, vector<1x8x16xbf16>
    %312 = vector.shape_cast %311 : vector<1x8x16xbf16> to vector<8x16xbf16>
    %c0_156 = arith.constant 0 : index
    %c0_157 = arith.constant 0 : index
    %313 = vector.load %arg19[%c0_156, %c0_157] : memref<16x512xbf16, #tpu.memory_space<vmem>>, vector<16x512xbf16>
    %cst_158 = arith.constant dense<0.000000e+00> : vector<8x512xf32>
    %314 = tpu.matmul %312, %313, %cst_158 {dimension_numbers = #tpu.dot_dimension_numbers<[1], [0], [0], [1], [0, 0, 1, 1], [], []>} : vector<8x16xbf16>, vector<16x512xbf16>, vector<8x512xf32> -> vector<8x512xf32>
    %315 = arith.truncf %263 : vector<8x128xf32> to vector<8x128xbf16>
    %c0_159 = arith.constant 0 : index
    %c0_160 = arith.constant 0 : index
    %316 = vector.load %arg20[%c0_159, %c0_160] : memref<128x512xbf16, #tpu.memory_space<vmem>>, vector<128x512xbf16>
    %cst_161 = arith.constant dense<0.000000e+00> : vector<8x512xf32>
    %317 = tpu.matmul %315, %316, %cst_161 {dimension_numbers = #tpu.dot_dimension_numbers<[1], [0], [0], [1], [0, 0, 1, 1], [], []>} : vector<8x128xbf16>, vector<128x512xbf16>, vector<8x512xf32> -> vector<8x512xf32>
    %318 = arith.addf %314, %317 : vector<8x512xf32>
    %319 = vector.extract_strided_slice %318 {offsets = [0, 0], sizes = [8, 128], strides = [1, 1]} : vector<8x512xf32> to vector<8x128xf32>
    %cst_162 = arith.constant 5.000000e-01 : f32
    %320 = vector.broadcast %cst_162 : f32 to vector<8x128xf32>
    %321 = arith.mulf %320, %319 : vector<8x128xf32>
    %322 = math.tanh %321 : vector<8x128xf32>
    %cst_163 = arith.constant 5.000000e-01 : f32
    %323 = vector.broadcast %cst_163 : f32 to vector<8x128xf32>
    %324 = arith.mulf %323, %322 : vector<8x128xf32>
    %cst_164 = arith.constant 5.000000e-01 : f32
    %325 = vector.broadcast %cst_164 : f32 to vector<8x128xf32>
    %326 = arith.addf %324, %325 : vector<8x128xf32>
    %327 = vector.extract_strided_slice %318 {offsets = [0, 128], sizes = [8, 128], strides = [1, 1]} : vector<8x512xf32> to vector<8x128xf32>
    %cst_165 = arith.constant 5.000000e-01 : f32
    %328 = vector.broadcast %cst_165 : f32 to vector<8x128xf32>
    %329 = arith.mulf %328, %327 : vector<8x128xf32>
    %330 = math.tanh %329 : vector<8x128xf32>
    %cst_166 = arith.constant 5.000000e-01 : f32
    %331 = vector.broadcast %cst_166 : f32 to vector<8x128xf32>
    %332 = arith.mulf %331, %330 : vector<8x128xf32>
    %cst_167 = arith.constant 5.000000e-01 : f32
    %333 = vector.broadcast %cst_167 : f32 to vector<8x128xf32>
    %334 = arith.addf %332, %333 : vector<8x128xf32>
    %335 = vector.extract_strided_slice %318 {offsets = [0, 256], sizes = [8, 128], strides = [1, 1]} : vector<8x512xf32> to vector<8x128xf32>
    %336 = math.tanh %335 : vector<8x128xf32>
    %337 = vector.extract_strided_slice %318 {offsets = [0, 384], sizes = [8, 128], strides = [1, 1]} : vector<8x512xf32> to vector<8x128xf32>
    %cst_168 = arith.constant 5.000000e-01 : f32
    %338 = vector.broadcast %cst_168 : f32 to vector<8x128xf32>
    %339 = arith.mulf %338, %337 : vector<8x128xf32>
    %340 = math.tanh %339 : vector<8x128xf32>
    %cst_169 = arith.constant 5.000000e-01 : f32
    %341 = vector.broadcast %cst_169 : f32 to vector<8x128xf32>
    %342 = arith.mulf %341, %340 : vector<8x128xf32>
    %cst_170 = arith.constant 5.000000e-01 : f32
    %343 = vector.broadcast %cst_170 : f32 to vector<8x128xf32>
    %344 = arith.addf %342, %343 : vector<8x128xf32>
    %345 = arith.mulf %334, %261 : vector<8x128xf32>
    %346 = arith.mulf %326, %336 : vector<8x128xf32>
    %347 = arith.addf %345, %346 : vector<8x128xf32>
    %348 = math.tanh %347 : vector<8x128xf32>
    %349 = arith.mulf %344, %348 : vector<8x128xf32>
    %350 = arith.truncf %349 : vector<8x128xf32> to vector<8x128xbf16>
    %c3_171 = arith.constant 3 : index
    %c0_172 = arith.constant 0 : index
    %c0_173 = arith.constant 0 : index
    %351 = vector.load %arg8[%c3_171, %c0_172, %c0_173] : memref<8x8x128xbf16, #tpu.memory_space<vmem>>, vector<1x8x128xbf16>
    %352 = vector.shape_cast %351 : vector<1x8x128xbf16> to vector<8x128xbf16>
    %353 = vector.shape_cast %350 : vector<8x128xbf16> to vector<1x8x128xbf16>
    tpu.vector_store %arg8[%c3_171, %c0_172, %c0_173], %353 {strides = array<i32>} : memref<8x8x128xbf16, #tpu.memory_space<vmem>>, vector<1x8x128xbf16>,
    %c4 = arith.constant 4 : index
    %c0_174 = arith.constant 0 : index
    %c0_175 = arith.constant 0 : index
    %354 = vector.load %arg1[%c4, %c0_174, %c0_175] : memref<8x8x16xbf16, #tpu.memory_space<vmem>>, vector<1x8x16xbf16>
    %355 = vector.shape_cast %354 : vector<1x8x16xbf16> to vector<8x16xbf16>
    %c0_176 = arith.constant 0 : index
    %c0_177 = arith.constant 0 : index
    %356 = vector.load %arg17[%c0_176, %c0_177] : memref<16x512xbf16, #tpu.memory_space<vmem>>, vector<16x512xbf16>
    %cst_178 = arith.constant dense<0.000000e+00> : vector<8x512xf32>
    %357 = tpu.matmul %355, %356, %cst_178 {dimension_numbers = #tpu.dot_dimension_numbers<[1], [0], [0], [1], [0, 0, 1, 1], [], []>} : vector<8x16xbf16>, vector<16x512xbf16>, vector<8x512xf32> -> vector<8x512xf32>
    %358 = arith.truncf %306 : vector<8x128xf32> to vector<8x128xbf16>
    %c0_179 = arith.constant 0 : index
    %c0_180 = arith.constant 0 : index
    %359 = vector.load %arg18[%c0_179, %c0_180] : memref<128x512xbf16, #tpu.memory_space<vmem>>, vector<128x512xbf16>
    %cst_181 = arith.constant dense<0.000000e+00> : vector<8x512xf32>
    %360 = tpu.matmul %358, %359, %cst_181 {dimension_numbers = #tpu.dot_dimension_numbers<[1], [0], [0], [1], [0, 0, 1, 1], [], []>} : vector<8x128xbf16>, vector<128x512xbf16>, vector<8x512xf32> -> vector<8x512xf32>
    %361 = arith.addf %357, %360 : vector<8x512xf32>
    %362 = vector.extract_strided_slice %361 {offsets = [0, 0], sizes = [8, 128], strides = [1, 1]} : vector<8x512xf32> to vector<8x128xf32>
    %cst_182 = arith.constant 5.000000e-01 : f32
    %363 = vector.broadcast %cst_182 : f32 to vector<8x128xf32>
    %364 = arith.mulf %363, %362 : vector<8x128xf32>
    %365 = math.tanh %364 : vector<8x128xf32>
    %cst_183 = arith.constant 5.000000e-01 : f32
    %366 = vector.broadcast %cst_183 : f32 to vector<8x128xf32>
    %367 = arith.mulf %366, %365 : vector<8x128xf32>
    %cst_184 = arith.constant 5.000000e-01 : f32
    %368 = vector.broadcast %cst_184 : f32 to vector<8x128xf32>
    %369 = arith.addf %367, %368 : vector<8x128xf32>
    %370 = vector.extract_strided_slice %361 {offsets = [0, 128], sizes = [8, 128], strides = [1, 1]} : vector<8x512xf32> to vector<8x128xf32>
    %cst_185 = arith.constant 5.000000e-01 : f32
    %371 = vector.broadcast %cst_185 : f32 to vector<8x128xf32>
    %372 = arith.mulf %371, %370 : vector<8x128xf32>
    %373 = math.tanh %372 : vector<8x128xf32>
    %cst_186 = arith.constant 5.000000e-01 : f32
    %374 = vector.broadcast %cst_186 : f32 to vector<8x128xf32>
    %375 = arith.mulf %374, %373 : vector<8x128xf32>
    %cst_187 = arith.constant 5.000000e-01 : f32
    %376 = vector.broadcast %cst_187 : f32 to vector<8x128xf32>
    %377 = arith.addf %375, %376 : vector<8x128xf32>
    %378 = vector.extract_strided_slice %361 {offsets = [0, 256], sizes = [8, 128], strides = [1, 1]} : vector<8x512xf32> to vector<8x128xf32>
    %379 = math.tanh %378 : vector<8x128xf32>
    %380 = vector.extract_strided_slice %361 {offsets = [0, 384], sizes = [8, 128], strides = [1, 1]} : vector<8x512xf32> to vector<8x128xf32>
    %cst_188 = arith.constant 5.000000e-01 : f32
    %381 = vector.broadcast %cst_188 : f32 to vector<8x128xf32>
    %382 = arith.mulf %381, %380 : vector<8x128xf32>
    %383 = math.tanh %382 : vector<8x128xf32>
    %cst_189 = arith.constant 5.000000e-01 : f32
    %384 = vector.broadcast %cst_189 : f32 to vector<8x128xf32>
    %385 = arith.mulf %384, %383 : vector<8x128xf32>
    %cst_190 = arith.constant 5.000000e-01 : f32
    %386 = vector.broadcast %cst_190 : f32 to vector<8x128xf32>
    %387 = arith.addf %385, %386 : vector<8x128xf32>
    %388 = arith.mulf %377, %304 : vector<8x128xf32>
    %389 = arith.mulf %369, %379 : vector<8x128xf32>
    %390 = arith.addf %388, %389 : vector<8x128xf32>
    %391 = math.tanh %390 : vector<8x128xf32>
    %392 = arith.mulf %387, %391 : vector<8x128xf32>
    %393 = arith.truncf %392 : vector<8x128xf32> to vector<8x128xbf16>
    %c4_191 = arith.constant 4 : index
    %c0_192 = arith.constant 0 : index
    %c0_193 = arith.constant 0 : index
    %394 = vector.load %arg7[%c4_191, %c0_192, %c0_193] : memref<8x8x128xbf16, #tpu.memory_space<vmem>>, vector<1x8x128xbf16>
    %395 = vector.shape_cast %394 : vector<1x8x128xbf16> to vector<8x128xbf16>
    %396 = vector.shape_cast %393 : vector<8x128xbf16> to vector<1x8x128xbf16>
    tpu.vector_store %arg7[%c4_191, %c0_192, %c0_193], %396 {strides = array<i32>} : memref<8x8x128xbf16, #tpu.memory_space<vmem>>, vector<1x8x128xbf16>,
    %c4_194 = arith.constant 4 : index
    %c0_195 = arith.constant 0 : index
    %c0_196 = arith.constant 0 : index
    %397 = vector.load %arg2[%c4_194, %c0_195, %c0_196] : memref<8x8x16xbf16, #tpu.memory_space<vmem>>, vector<1x8x16xbf16>
    %398 = vector.shape_cast %397 : vector<1x8x16xbf16> to vector<8x16xbf16>
    %c0_197 = arith.constant 0 : index
    %c0_198 = arith.constant 0 : index
    %399 = vector.load %arg19[%c0_197, %c0_198] : memref<16x512xbf16, #tpu.memory_space<vmem>>, vector<16x512xbf16>
    %cst_199 = arith.constant dense<0.000000e+00> : vector<8x512xf32>
    %400 = tpu.matmul %398, %399, %cst_199 {dimension_numbers = #tpu.dot_dimension_numbers<[1], [0], [0], [1], [0, 0, 1, 1], [], []>} : vector<8x16xbf16>, vector<16x512xbf16>, vector<8x512xf32> -> vector<8x512xf32>
    %401 = arith.truncf %349 : vector<8x128xf32> to vector<8x128xbf16>
    %c0_200 = arith.constant 0 : index
    %c0_201 = arith.constant 0 : index
    %402 = vector.load %arg20[%c0_200, %c0_201] : memref<128x512xbf16, #tpu.memory_space<vmem>>, vector<128x512xbf16>
    %cst_202 = arith.constant dense<0.000000e+00> : vector<8x512xf32>
    %403 = tpu.matmul %401, %402, %cst_202 {dimension_numbers = #tpu.dot_dimension_numbers<[1], [0], [0], [1], [0, 0, 1, 1], [], []>} : vector<8x128xbf16>, vector<128x512xbf16>, vector<8x512xf32> -> vector<8x512xf32>
    %404 = arith.addf %400, %403 : vector<8x512xf32>
    %405 = vector.extract_strided_slice %404 {offsets = [0, 0], sizes = [8, 128], strides = [1, 1]} : vector<8x512xf32> to vector<8x128xf32>
    %cst_203 = arith.constant 5.000000e-01 : f32
    %406 = vector.broadcast %cst_203 : f32 to vector<8x128xf32>
    %407 = arith.mulf %406, %405 : vector<8x128xf32>
    %408 = math.tanh %407 : vector<8x128xf32>
    %cst_204 = arith.constant 5.000000e-01 : f32
    %409 = vector.broadcast %cst_204 : f32 to vector<8x128xf32>
    %410 = arith.mulf %409, %408 : vector<8x128xf32>
    %cst_205 = arith.constant 5.000000e-01 : f32
    %411 = vector.broadcast %cst_205 : f32 to vector<8x128xf32>
    %412 = arith.addf %410, %411 : vector<8x128xf32>
    %413 = vector.extract_strided_slice %404 {offsets = [0, 128], sizes = [8, 128], strides = [1, 1]} : vector<8x512xf32> to vector<8x128xf32>
    %cst_206 = arith.constant 5.000000e-01 : f32
    %414 = vector.broadcast %cst_206 : f32 to vector<8x128xf32>
    %415 = arith.mulf %414, %413 : vector<8x128xf32>
    %416 = math.tanh %415 : vector<8x128xf32>
    %cst_207 = arith.constant 5.000000e-01 : f32
    %417 = vector.broadcast %cst_207 : f32 to vector<8x128xf32>
    %418 = arith.mulf %417, %416 : vector<8x128xf32>
    %cst_208 = arith.constant 5.000000e-01 : f32
    %419 = vector.broadcast %cst_208 : f32 to vector<8x128xf32>
    %420 = arith.addf %418, %419 : vector<8x128xf32>
    %421 = vector.extract_strided_slice %404 {offsets = [0, 256], sizes = [8, 128], strides = [1, 1]} : vector<8x512xf32> to vector<8x128xf32>
    %422 = math.tanh %421 : vector<8x128xf32>
    %423 = vector.extract_strided_slice %404 {offsets = [0, 384], sizes = [8, 128], strides = [1, 1]} : vector<8x512xf32> to vector<8x128xf32>
    %cst_209 = arith.constant 5.000000e-01 : f32
    %424 = vector.broadcast %cst_209 : f32 to vector<8x128xf32>
    %425 = arith.mulf %424, %423 : vector<8x128xf32>
    %426 = math.tanh %425 : vector<8x128xf32>
    %cst_210 = arith.constant 5.000000e-01 : f32
    %427 = vector.broadcast %cst_210 : f32 to vector<8x128xf32>
    %428 = arith.mulf %427, %426 : vector<8x128xf32>
    %cst_211 = arith.constant 5.000000e-01 : f32
    %429 = vector.broadcast %cst_211 : f32 to vector<8x128xf32>
    %430 = arith.addf %428, %429 : vector<8x128xf32>
    %431 = arith.mulf %420, %347 : vector<8x128xf32>
    %432 = arith.mulf %412, %422 : vector<8x128xf32>
    %433 = arith.addf %431, %432 : vector<8x128xf32>
    %434 = math.tanh %433 : vector<8x128xf32>
    %435 = arith.mulf %430, %434 : vector<8x128xf32>
    %436 = arith.truncf %435 : vector<8x128xf32> to vector<8x128xbf16>
    %c4_212 = arith.constant 4 : index
    %c0_213 = arith.constant 0 : index
    %c0_214 = arith.constant 0 : index
    %437 = vector.load %arg8[%c4_212, %c0_213, %c0_214] : memref<8x8x128xbf16, #tpu.memory_space<vmem>>, vector<1x8x128xbf16>
    %438 = vector.shape_cast %437 : vector<1x8x128xbf16> to vector<8x128xbf16>
    %439 = vector.shape_cast %436 : vector<8x128xbf16> to vector<1x8x128xbf16>
    tpu.vector_store %arg8[%c4_212, %c0_213, %c0_214], %439 {strides = array<i32>} : memref<8x8x128xbf16, #tpu.memory_space<vmem>>, vector<1x8x128xbf16>,
    %c5 = arith.constant 5 : index
    %c0_215 = arith.constant 0 : index
    %c0_216 = arith.constant 0 : index
    %440 = vector.load %arg1[%c5, %c0_215, %c0_216] : memref<8x8x16xbf16, #tpu.memory_space<vmem>>, vector<1x8x16xbf16>
    %441 = vector.shape_cast %440 : vector<1x8x16xbf16> to vector<8x16xbf16>
    %c0_217 = arith.constant 0 : index
    %c0_218 = arith.constant 0 : index
    %442 = vector.load %arg17[%c0_217, %c0_218] : memref<16x512xbf16, #tpu.memory_space<vmem>>, vector<16x512xbf16>
    %cst_219 = arith.constant dense<0.000000e+00> : vector<8x512xf32>
    %443 = tpu.matmul %441, %442, %cst_219 {dimension_numbers = #tpu.dot_dimension_numbers<[1], [0], [0], [1], [0, 0, 1, 1], [], []>} : vector<8x16xbf16>, vector<16x512xbf16>, vector<8x512xf32> -> vector<8x512xf32>
    %444 = arith.truncf %392 : vector<8x128xf32> to vector<8x128xbf16>
    %c0_220 = arith.constant 0 : index
    %c0_221 = arith.constant 0 : index
    %445 = vector.load %arg18[%c0_220, %c0_221] : memref<128x512xbf16, #tpu.memory_space<vmem>>, vector<128x512xbf16>
    %cst_222 = arith.constant dense<0.000000e+00> : vector<8x512xf32>
    %446 = tpu.matmul %444, %445, %cst_222 {dimension_numbers = #tpu.dot_dimension_numbers<[1], [0], [0], [1], [0, 0, 1, 1], [], []>} : vector<8x128xbf16>, vector<128x512xbf16>, vector<8x512xf32> -> vector<8x512xf32>
    %447 = arith.addf %443, %446 : vector<8x512xf32>
    %448 = vector.extract_strided_slice %447 {offsets = [0, 0], sizes = [8, 128], strides = [1, 1]} : vector<8x512xf32> to vector<8x128xf32>
    %cst_223 = arith.constant 5.000000e-01 : f32
    %449 = vector.broadcast %cst_223 : f32 to vector<8x128xf32>
    %450 = arith.mulf %449, %448 : vector<8x128xf32>
    %451 = math.tanh %450 : vector<8x128xf32>
    %cst_224 = arith.constant 5.000000e-01 : f32
    %452 = vector.broadcast %cst_224 : f32 to vector<8x128xf32>
    %453 = arith.mulf %452, %451 : vector<8x128xf32>
    %cst_225 = arith.constant 5.000000e-01 : f32
    %454 = vector.broadcast %cst_225 : f32 to vector<8x128xf32>
    %455 = arith.addf %453, %454 : vector<8x128xf32>
    %456 = vector.extract_strided_slice %447 {offsets = [0, 128], sizes = [8, 128], strides = [1, 1]} : vector<8x512xf32> to vector<8x128xf32>
    %cst_226 = arith.constant 5.000000e-01 : f32
    %457 = vector.broadcast %cst_226 : f32 to vector<8x128xf32>
    %458 = arith.mulf %457, %456 : vector<8x128xf32>
    %459 = math.tanh %458 : vector<8x128xf32>
    %cst_227 = arith.constant 5.000000e-01 : f32
    %460 = vector.broadcast %cst_227 : f32 to vector<8x128xf32>
    %461 = arith.mulf %460, %459 : vector<8x128xf32>
    %cst_228 = arith.constant 5.000000e-01 : f32
    %462 = vector.broadcast %cst_228 : f32 to vector<8x128xf32>
    %463 = arith.addf %461, %462 : vector<8x128xf32>
    %464 = vector.extract_strided_slice %447 {offsets = [0, 256], sizes = [8, 128], strides = [1, 1]} : vector<8x512xf32> to vector<8x128xf32>
    %465 = math.tanh %464 : vector<8x128xf32>
    %466 = vector.extract_strided_slice %447 {offsets = [0, 384], sizes = [8, 128], strides = [1, 1]} : vector<8x512xf32> to vector<8x128xf32>
    %cst_229 = arith.constant 5.000000e-01 : f32
    %467 = vector.broadcast %cst_229 : f32 to vector<8x128xf32>
    %468 = arith.mulf %467, %466 : vector<8x128xf32>
    %469 = math.tanh %468 : vector<8x128xf32>
    %cst_230 = arith.constant 5.000000e-01 : f32
    %470 = vector.broadcast %cst_230 : f32 to vector<8x128xf32>
    %471 = arith.mulf %470, %469 : vector<8x128xf32>
    %cst_231 = arith.constant 5.000000e-01 : f32
    %472 = vector.broadcast %cst_231 : f32 to vector<8x128xf32>
    %473 = arith.addf %471, %472 : vector<8x128xf32>
    %474 = arith.mulf %463, %390 : vector<8x128xf32>
    %475 = arith.mulf %455, %465 : vector<8x128xf32>
    %476 = arith.addf %474, %475 : vector<8x128xf32>
    %477 = math.tanh %476 : vector<8x128xf32>
    %478 = arith.mulf %473, %477 : vector<8x128xf32>
    %479 = arith.truncf %478 : vector<8x128xf32> to vector<8x128xbf16>
    %c5_232 = arith.constant 5 : index
    %c0_233 = arith.constant 0 : index
    %c0_234 = arith.constant 0 : index
    %480 = vector.load %arg7[%c5_232, %c0_233, %c0_234] : memref<8x8x128xbf16, #tpu.memory_space<vmem>>, vector<1x8x128xbf16>
    %481 = vector.shape_cast %480 : vector<1x8x128xbf16> to vector<8x128xbf16>
    %482 = vector.shape_cast %479 : vector<8x128xbf16> to vector<1x8x128xbf16>
    tpu.vector_store %arg7[%c5_232, %c0_233, %c0_234], %482 {strides = array<i32>} : memref<8x8x128xbf16, #tpu.memory_space<vmem>>, vector<1x8x128xbf16>,
    %c5_235 = arith.constant 5 : index
    %c0_236 = arith.constant 0 : index
    %c0_237 = arith.constant 0 : index
    %483 = vector.load %arg2[%c5_235, %c0_236, %c0_237] : memref<8x8x16xbf16, #tpu.memory_space<vmem>>, vector<1x8x16xbf16>
    %484 = vector.shape_cast %483 : vector<1x8x16xbf16> to vector<8x16xbf16>
    %c0_238 = arith.constant 0 : index
    %c0_239 = arith.constant 0 : index
    %485 = vector.load %arg19[%c0_238, %c0_239] : memref<16x512xbf16, #tpu.memory_space<vmem>>, vector<16x512xbf16>
    %cst_240 = arith.constant dense<0.000000e+00> : vector<8x512xf32>
    %486 = tpu.matmul %484, %485, %cst_240 {dimension_numbers = #tpu.dot_dimension_numbers<[1], [0], [0], [1], [0, 0, 1, 1], [], []>} : vector<8x16xbf16>, vector<16x512xbf16>, vector<8x512xf32> -> vector<8x512xf32>
    %487 = arith.truncf %435 : vector<8x128xf32> to vector<8x128xbf16>
    %c0_241 = arith.constant 0 : index
    %c0_242 = arith.constant 0 : index
    %488 = vector.load %arg20[%c0_241, %c0_242] : memref<128x512xbf16, #tpu.memory_space<vmem>>, vector<128x512xbf16>
    %cst_243 = arith.constant dense<0.000000e+00> : vector<8x512xf32>
    %489 = tpu.matmul %487, %488, %cst_243 {dimension_numbers = #tpu.dot_dimension_numbers<[1], [0], [0], [1], [0, 0, 1, 1], [], []>} : vector<8x128xbf16>, vector<128x512xbf16>, vector<8x512xf32> -> vector<8x512xf32>
    %490 = arith.addf %486, %489 : vector<8x512xf32>
    %491 = vector.extract_strided_slice %490 {offsets = [0, 0], sizes = [8, 128], strides = [1, 1]} : vector<8x512xf32> to vector<8x128xf32>
    %cst_244 = arith.constant 5.000000e-01 : f32
    %492 = vector.broadcast %cst_244 : f32 to vector<8x128xf32>
    %493 = arith.mulf %492, %491 : vector<8x128xf32>
    %494 = math.tanh %493 : vector<8x128xf32>
    %cst_245 = arith.constant 5.000000e-01 : f32
    %495 = vector.broadcast %cst_245 : f32 to vector<8x128xf32>
    %496 = arith.mulf %495, %494 : vector<8x128xf32>
    %cst_246 = arith.constant 5.000000e-01 : f32
    %497 = vector.broadcast %cst_246 : f32 to vector<8x128xf32>
    %498 = arith.addf %496, %497 : vector<8x128xf32>
    %499 = vector.extract_strided_slice %490 {offsets = [0, 128], sizes = [8, 128], strides = [1, 1]} : vector<8x512xf32> to vector<8x128xf32>
    %cst_247 = arith.constant 5.000000e-01 : f32
    %500 = vector.broadcast %cst_247 : f32 to vector<8x128xf32>
    %501 = arith.mulf %500, %499 : vector<8x128xf32>
    %502 = math.tanh %501 : vector<8x128xf32>
    %cst_248 = arith.constant 5.000000e-01 : f32
    %503 = vector.broadcast %cst_248 : f32 to vector<8x128xf32>
    %504 = arith.mulf %503, %502 : vector<8x128xf32>
    %cst_249 = arith.constant 5.000000e-01 : f32
    %505 = vector.broadcast %cst_249 : f32 to vector<8x128xf32>
    %506 = arith.addf %504, %505 : vector<8x128xf32>
    %507 = vector.extract_strided_slice %490 {offsets = [0, 256], sizes = [8, 128], strides = [1, 1]} : vector<8x512xf32> to vector<8x128xf32>
    %508 = math.tanh %507 : vector<8x128xf32>
    %509 = vector.extract_strided_slice %490 {offsets = [0, 384], sizes = [8, 128], strides = [1, 1]} : vector<8x512xf32> to vector<8x128xf32>
    %cst_250 = arith.constant 5.000000e-01 : f32
    %510 = vector.broadcast %cst_250 : f32 to vector<8x128xf32>
    %511 = arith.mulf %510, %509 : vector<8x128xf32>
    %512 = math.tanh %511 : vector<8x128xf32>
    %cst_251 = arith.constant 5.000000e-01 : f32
    %513 = vector.broadcast %cst_251 : f32 to vector<8x128xf32>
    %514 = arith.mulf %513, %512 : vector<8x128xf32>
    %cst_252 = arith.constant 5.000000e-01 : f32
    %515 = vector.broadcast %cst_252 : f32 to vector<8x128xf32>
    %516 = arith.addf %514, %515 : vector<8x128xf32>
    %517 = arith.mulf %506, %433 : vector<8x128xf32>
    %518 = arith.mulf %498, %508 : vector<8x128xf32>
    %519 = arith.addf %517, %518 : vector<8x128xf32>
    %520 = math.tanh %519 : vector<8x128xf32>
    %521 = arith.mulf %516, %520 : vector<8x128xf32>
    %522 = arith.truncf %521 : vector<8x128xf32> to vector<8x128xbf16>
    %c5_253 = arith.constant 5 : index
    %c0_254 = arith.constant 0 : index
    %c0_255 = arith.constant 0 : index
    %523 = vector.load %arg8[%c5_253, %c0_254, %c0_255] : memref<8x8x128xbf16, #tpu.memory_space<vmem>>, vector<1x8x128xbf16>
    %524 = vector.shape_cast %523 : vector<1x8x128xbf16> to vector<8x128xbf16>
    %525 = vector.shape_cast %522 : vector<8x128xbf16> to vector<1x8x128xbf16>
    tpu.vector_store %arg8[%c5_253, %c0_254, %c0_255], %525 {strides = array<i32>} : memref<8x8x128xbf16, #tpu.memory_space<vmem>>, vector<1x8x128xbf16>,
    %c6 = arith.constant 6 : index
    %c0_256 = arith.constant 0 : index
    %c0_257 = arith.constant 0 : index
    %526 = vector.load %arg1[%c6, %c0_256, %c0_257] : memref<8x8x16xbf16, #tpu.memory_space<vmem>>, vector<1x8x16xbf16>
    %527 = vector.shape_cast %526 : vector<1x8x16xbf16> to vector<8x16xbf16>
    %c0_258 = arith.constant 0 : index
    %c0_259 = arith.constant 0 : index
    %528 = vector.load %arg17[%c0_258, %c0_259] : memref<16x512xbf16, #tpu.memory_space<vmem>>, vector<16x512xbf16>
    %cst_260 = arith.constant dense<0.000000e+00> : vector<8x512xf32>
    %529 = tpu.matmul %527, %528, %cst_260 {dimension_numbers = #tpu.dot_dimension_numbers<[1], [0], [0], [1], [0, 0, 1, 1], [], []>} : vector<8x16xbf16>, vector<16x512xbf16>, vector<8x512xf32> -> vector<8x512xf32>
    %530 = arith.truncf %478 : vector<8x128xf32> to vector<8x128xbf16>
    %c0_261 = arith.constant 0 : index
    %c0_262 = arith.constant 0 : index
    %531 = vector.load %arg18[%c0_261, %c0_262] : memref<128x512xbf16, #tpu.memory_space<vmem>>, vector<128x512xbf16>
    %cst_263 = arith.constant dense<0.000000e+00> : vector<8x512xf32>
    %532 = tpu.matmul %530, %531, %cst_263 {dimension_numbers = #tpu.dot_dimension_numbers<[1], [0], [0], [1], [0, 0, 1, 1], [], []>} : vector<8x128xbf16>, vector<128x512xbf16>, vector<8x512xf32> -> vector<8x512xf32>
    %533 = arith.addf %529, %532 : vector<8x512xf32>
    %534 = vector.extract_strided_slice %533 {offsets = [0, 0], sizes = [8, 128], strides = [1, 1]} : vector<8x512xf32> to vector<8x128xf32>
    %cst_264 = arith.constant 5.000000e-01 : f32
    %535 = vector.broadcast %cst_264 : f32 to vector<8x128xf32>
    %536 = arith.mulf %535, %534 : vector<8x128xf32>
    %537 = math.tanh %536 : vector<8x128xf32>
    %cst_265 = arith.constant 5.000000e-01 : f32
    %538 = vector.broadcast %cst_265 : f32 to vector<8x128xf32>
    %539 = arith.mulf %538, %537 : vector<8x128xf32>
    %cst_266 = arith.constant 5.000000e-01 : f32
    %540 = vector.broadcast %cst_266 : f32 to vector<8x128xf32>
    %541 = arith.addf %539, %540 : vector<8x128xf32>
    %542 = vector.extract_strided_slice %533 {offsets = [0, 128], sizes = [8, 128], strides = [1, 1]} : vector<8x512xf32> to vector<8x128xf32>
    %cst_267 = arith.constant 5.000000e-01 : f32
    %543 = vector.broadcast %cst_267 : f32 to vector<8x128xf32>
    %544 = arith.mulf %543, %542 : vector<8x128xf32>
    %545 = math.tanh %544 : vector<8x128xf32>
    %cst_268 = arith.constant 5.000000e-01 : f32
    %546 = vector.broadcast %cst_268 : f32 to vector<8x128xf32>
    %547 = arith.mulf %546, %545 : vector<8x128xf32>
    %cst_269 = arith.constant 5.000000e-01 : f32
    %548 = vector.broadcast %cst_269 : f32 to vector<8x128xf32>
    %549 = arith.addf %547, %548 : vector<8x128xf32>
    %550 = vector.extract_strided_slice %533 {offsets = [0, 256], sizes = [8, 128], strides = [1, 1]} : vector<8x512xf32> to vector<8x128xf32>
    %551 = math.tanh %550 : vector<8x128xf32>
    %552 = vector.extract_strided_slice %533 {offsets = [0, 384], sizes = [8, 128], strides = [1, 1]} : vector<8x512xf32> to vector<8x128xf32>
    %cst_270 = arith.constant 5.000000e-01 : f32
    %553 = vector.broadcast %cst_270 : f32 to vector<8x128xf32>
    %554 = arith.mulf %553, %552 : vector<8x128xf32>
    %555 = math.tanh %554 : vector<8x128xf32>
    %cst_271 = arith.constant 5.000000e-01 : f32
    %556 = vector.broadcast %cst_271 : f32 to vector<8x128xf32>
    %557 = arith.mulf %556, %555 : vector<8x128xf32>
    %cst_272 = arith.constant 5.000000e-01 : f32
    %558 = vector.broadcast %cst_272 : f32 to vector<8x128xf32>
    %559 = arith.addf %557, %558 : vector<8x128xf32>
    %560 = arith.mulf %549, %476 : vector<8x128xf32>
    %561 = arith.mulf %541, %551 : vector<8x128xf32>
    %562 = arith.addf %560, %561 : vector<8x128xf32>
    %563 = math.tanh %562 : vector<8x128xf32>
    %564 = arith.mulf %559, %563 : vector<8x128xf32>
    %565 = arith.truncf %564 : vector<8x128xf32> to vector<8x128xbf16>
    %c6_273 = arith.constant 6 : index
    %c0_274 = arith.constant 0 : index
    %c0_275 = arith.constant 0 : index
    %566 = vector.load %arg7[%c6_273, %c0_274, %c0_275] : memref<8x8x128xbf16, #tpu.memory_space<vmem>>, vector<1x8x128xbf16>
    %567 = vector.shape_cast %566 : vector<1x8x128xbf16> to vector<8x128xbf16>
    %568 = vector.shape_cast %565 : vector<8x128xbf16> to vector<1x8x128xbf16>
    tpu.vector_store %arg7[%c6_273, %c0_274, %c0_275], %568 {strides = array<i32>} : memref<8x8x128xbf16, #tpu.memory_space<vmem>>, vector<1x8x128xbf16>,
    %c6_276 = arith.constant 6 : index
    %c0_277 = arith.constant 0 : index
    %c0_278 = arith.constant 0 : index
    %569 = vector.load %arg2[%c6_276, %c0_277, %c0_278] : memref<8x8x16xbf16, #tpu.memory_space<vmem>>, vector<1x8x16xbf16>
    %570 = vector.shape_cast %569 : vector<1x8x16xbf16> to vector<8x16xbf16>
    %c0_279 = arith.constant 0 : index
    %c0_280 = arith.constant 0 : index
    %571 = vector.load %arg19[%c0_279, %c0_280] : memref<16x512xbf16, #tpu.memory_space<vmem>>, vector<16x512xbf16>
    %cst_281 = arith.constant dense<0.000000e+00> : vector<8x512xf32>
    %572 = tpu.matmul %570, %571, %cst_281 {dimension_numbers = #tpu.dot_dimension_numbers<[1], [0], [0], [1], [0, 0, 1, 1], [], []>} : vector<8x16xbf16>, vector<16x512xbf16>, vector<8x512xf32> -> vector<8x512xf32>
    %573 = arith.truncf %521 : vector<8x128xf32> to vector<8x128xbf16>
    %c0_282 = arith.constant 0 : index
    %c0_283 = arith.constant 0 : index
    %574 = vector.load %arg20[%c0_282, %c0_283] : memref<128x512xbf16, #tpu.memory_space<vmem>>, vector<128x512xbf16>
    %cst_284 = arith.constant dense<0.000000e+00> : vector<8x512xf32>
    %575 = tpu.matmul %573, %574, %cst_284 {dimension_numbers = #tpu.dot_dimension_numbers<[1], [0], [0], [1], [0, 0, 1, 1], [], []>} : vector<8x128xbf16>, vector<128x512xbf16>, vector<8x512xf32> -> vector<8x512xf32>
    %576 = arith.addf %572, %575 : vector<8x512xf32>
    %577 = vector.extract_strided_slice %576 {offsets = [0, 0], sizes = [8, 128], strides = [1, 1]} : vector<8x512xf32> to vector<8x128xf32>
    %cst_285 = arith.constant 5.000000e-01 : f32
    %578 = vector.broadcast %cst_285 : f32 to vector<8x128xf32>
    %579 = arith.mulf %578, %577 : vector<8x128xf32>
    %580 = math.tanh %579 : vector<8x128xf32>
    %cst_286 = arith.constant 5.000000e-01 : f32
    %581 = vector.broadcast %cst_286 : f32 to vector<8x128xf32>
    %582 = arith.mulf %581, %580 : vector<8x128xf32>
    %cst_287 = arith.constant 5.000000e-01 : f32
    %583 = vector.broadcast %cst_287 : f32 to vector<8x128xf32>
    %584 = arith.addf %582, %583 : vector<8x128xf32>
    %585 = vector.extract_strided_slice %576 {offsets = [0, 128], sizes = [8, 128], strides = [1, 1]} : vector<8x512xf32> to vector<8x128xf32>
    %cst_288 = arith.constant 5.000000e-01 : f32
    %586 = vector.broadcast %cst_288 : f32 to vector<8x128xf32>
    %587 = arith.mulf %586, %585 : vector<8x128xf32>
    %588 = math.tanh %587 : vector<8x128xf32>
    %cst_289 = arith.constant 5.000000e-01 : f32
    %589 = vector.broadcast %cst_289 : f32 to vector<8x128xf32>
    %590 = arith.mulf %589, %588 : vector<8x128xf32>
    %cst_290 = arith.constant 5.000000e-01 : f32
    %591 = vector.broadcast %cst_290 : f32 to vector<8x128xf32>
    %592 = arith.addf %590, %591 : vector<8x128xf32>
    %593 = vector.extract_strided_slice %576 {offsets = [0, 256], sizes = [8, 128], strides = [1, 1]} : vector<8x512xf32> to vector<8x128xf32>
    %594 = math.tanh %593 : vector<8x128xf32>
    %595 = vector.extract_strided_slice %576 {offsets = [0, 384], sizes = [8, 128], strides = [1, 1]} : vector<8x512xf32> to vector<8x128xf32>
    %cst_291 = arith.constant 5.000000e-01 : f32
    %596 = vector.broadcast %cst_291 : f32 to vector<8x128xf32>
    %597 = arith.mulf %596, %595 : vector<8x128xf32>
    %598 = math.tanh %597 : vector<8x128xf32>
    %cst_292 = arith.constant 5.000000e-01 : f32
    %599 = vector.broadcast %cst_292 : f32 to vector<8x128xf32>
    %600 = arith.mulf %599, %598 : vector<8x128xf32>
    %cst_293 = arith.constant 5.000000e-01 : f32
    %601 = vector.broadcast %cst_293 : f32 to vector<8x128xf32>
    %602 = arith.addf %600, %601 : vector<8x128xf32>
    %603 = arith.mulf %592, %519 : vector<8x128xf32>
    %604 = arith.mulf %584, %594 : vector<8x128xf32>
    %605 = arith.addf %603, %604 : vector<8x128xf32>
    %606 = math.tanh %605 : vector<8x128xf32>
    %607 = arith.mulf %602, %606 : vector<8x128xf32>
    %608 = arith.truncf %607 : vector<8x128xf32> to vector<8x128xbf16>
    %c6_294 = arith.constant 6 : index
    %c0_295 = arith.constant 0 : index
    %c0_296 = arith.constant 0 : index
    %609 = vector.load %arg8[%c6_294, %c0_295, %c0_296] : memref<8x8x128xbf16, #tpu.memory_space<vmem>>, vector<1x8x128xbf16>
    %610 = vector.shape_cast %609 : vector<1x8x128xbf16> to vector<8x128xbf16>
    %611 = vector.shape_cast %608 : vector<8x128xbf16> to vector<1x8x128xbf16>
    tpu.vector_store %arg8[%c6_294, %c0_295, %c0_296], %611 {strides = array<i32>} : memref<8x8x128xbf16, #tpu.memory_space<vmem>>, vector<1x8x128xbf16>,
    %c7 = arith.constant 7 : index
    %c0_297 = arith.constant 0 : index
    %c0_298 = arith.constant 0 : index
    %612 = vector.load %arg1[%c7, %c0_297, %c0_298] : memref<8x8x16xbf16, #tpu.memory_space<vmem>>, vector<1x8x16xbf16>
    %613 = vector.shape_cast %612 : vector<1x8x16xbf16> to vector<8x16xbf16>
    %c0_299 = arith.constant 0 : index
    %c0_300 = arith.constant 0 : index
    %614 = vector.load %arg17[%c0_299, %c0_300] : memref<16x512xbf16, #tpu.memory_space<vmem>>, vector<16x512xbf16>
    %cst_301 = arith.constant dense<0.000000e+00> : vector<8x512xf32>
    %615 = tpu.matmul %613, %614, %cst_301 {dimension_numbers = #tpu.dot_dimension_numbers<[1], [0], [0], [1], [0, 0, 1, 1], [], []>} : vector<8x16xbf16>, vector<16x512xbf16>, vector<8x512xf32> -> vector<8x512xf32>
    %616 = arith.truncf %564 : vector<8x128xf32> to vector<8x128xbf16>
    %c0_302 = arith.constant 0 : index
    %c0_303 = arith.constant 0 : index
    %617 = vector.load %arg18[%c0_302, %c0_303] : memref<128x512xbf16, #tpu.memory_space<vmem>>, vector<128x512xbf16>
    %cst_304 = arith.constant dense<0.000000e+00> : vector<8x512xf32>
    %618 = tpu.matmul %616, %617, %cst_304 {dimension_numbers = #tpu.dot_dimension_numbers<[1], [0], [0], [1], [0, 0, 1, 1], [], []>} : vector<8x128xbf16>, vector<128x512xbf16>, vector<8x512xf32> -> vector<8x512xf32>
    %619 = arith.addf %615, %618 : vector<8x512xf32>
    %620 = vector.extract_strided_slice %619 {offsets = [0, 0], sizes = [8, 128], strides = [1, 1]} : vector<8x512xf32> to vector<8x128xf32>
    %cst_305 = arith.constant 5.000000e-01 : f32
    %621 = vector.broadcast %cst_305 : f32 to vector<8x128xf32>
    %622 = arith.mulf %621, %620 : vector<8x128xf32>
    %623 = math.tanh %622 : vector<8x128xf32>
    %cst_306 = arith.constant 5.000000e-01 : f32
    %624 = vector.broadcast %cst_306 : f32 to vector<8x128xf32>
    %625 = arith.mulf %624, %623 : vector<8x128xf32>
    %cst_307 = arith.constant 5.000000e-01 : f32
    %626 = vector.broadcast %cst_307 : f32 to vector<8x128xf32>
    %627 = arith.addf %625, %626 : vector<8x128xf32>
    %628 = vector.extract_strided_slice %619 {offsets = [0, 128], sizes = [8, 128], strides = [1, 1]} : vector<8x512xf32> to vector<8x128xf32>
    %cst_308 = arith.constant 5.000000e-01 : f32
    %629 = vector.broadcast %cst_308 : f32 to vector<8x128xf32>
    %630 = arith.mulf %629, %628 : vector<8x128xf32>
    %631 = math.tanh %630 : vector<8x128xf32>
    %cst_309 = arith.constant 5.000000e-01 : f32
    %632 = vector.broadcast %cst_309 : f32 to vector<8x128xf32>
    %633 = arith.mulf %632, %631 : vector<8x128xf32>
    %cst_310 = arith.constant 5.000000e-01 : f32
    %634 = vector.broadcast %cst_310 : f32 to vector<8x128xf32>
    %635 = arith.addf %633, %634 : vector<8x128xf32>
    %636 = vector.extract_strided_slice %619 {offsets = [0, 256], sizes = [8, 128], strides = [1, 1]} : vector<8x512xf32> to vector<8x128xf32>
    %637 = math.tanh %636 : vector<8x128xf32>
    %638 = vector.extract_strided_slice %619 {offsets = [0, 384], sizes = [8, 128], strides = [1, 1]} : vector<8x512xf32> to vector<8x128xf32>
    %cst_311 = arith.constant 5.000000e-01 : f32
    %639 = vector.broadcast %cst_311 : f32 to vector<8x128xf32>
    %640 = arith.mulf %639, %638 : vector<8x128xf32>
    %641 = math.tanh %640 : vector<8x128xf32>
    %cst_312 = arith.constant 5.000000e-01 : f32
    %642 = vector.broadcast %cst_312 : f32 to vector<8x128xf32>
    %643 = arith.mulf %642, %641 : vector<8x128xf32>
    %cst_313 = arith.constant 5.000000e-01 : f32
    %644 = vector.broadcast %cst_313 : f32 to vector<8x128xf32>
    %645 = arith.addf %643, %644 : vector<8x128xf32>
    %646 = arith.mulf %635, %562 : vector<8x128xf32>
    %647 = arith.mulf %627, %637 : vector<8x128xf32>
    %648 = arith.addf %646, %647 : vector<8x128xf32>
    %649 = math.tanh %648 : vector<8x128xf32>
    %650 = arith.mulf %645, %649 : vector<8x128xf32>
    %651 = arith.truncf %650 : vector<8x128xf32> to vector<8x128xbf16>
    %c7_314 = arith.constant 7 : index
    %c0_315 = arith.constant 0 : index
    %c0_316 = arith.constant 0 : index
    %652 = vector.load %arg7[%c7_314, %c0_315, %c0_316] : memref<8x8x128xbf16, #tpu.memory_space<vmem>>, vector<1x8x128xbf16>
    %653 = vector.shape_cast %652 : vector<1x8x128xbf16> to vector<8x128xbf16>
    %654 = vector.shape_cast %651 : vector<8x128xbf16> to vector<1x8x128xbf16>
    tpu.vector_store %arg7[%c7_314, %c0_315, %c0_316], %654 {strides = array<i32>} : memref<8x8x128xbf16, #tpu.memory_space<vmem>>, vector<1x8x128xbf16>,
    %c7_317 = arith.constant 7 : index
    %c0_318 = arith.constant 0 : index
    %c0_319 = arith.constant 0 : index
    %655 = vector.load %arg2[%c7_317, %c0_318, %c0_319] : memref<8x8x16xbf16, #tpu.memory_space<vmem>>, vector<1x8x16xbf16>
    %656 = vector.shape_cast %655 : vector<1x8x16xbf16> to vector<8x16xbf16>
    %c0_320 = arith.constant 0 : index
    %c0_321 = arith.constant 0 : index
    %657 = vector.load %arg19[%c0_320, %c0_321] : memref<16x512xbf16, #tpu.memory_space<vmem>>, vector<16x512xbf16>
    %cst_322 = arith.constant dense<0.000000e+00> : vector<8x512xf32>
    %658 = tpu.matmul %656, %657, %cst_322 {dimension_numbers = #tpu.dot_dimension_numbers<[1], [0], [0], [1], [0, 0, 1, 1], [], []>} : vector<8x16xbf16>, vector<16x512xbf16>, vector<8x512xf32> -> vector<8x512xf32>
    %659 = arith.truncf %607 : vector<8x128xf32> to vector<8x128xbf16>
    %c0_323 = arith.constant 0 : index
    %c0_324 = arith.constant 0 : index
    %660 = vector.load %arg20[%c0_323, %c0_324] : memref<128x512xbf16, #tpu.memory_space<vmem>>, vector<128x512xbf16>
    %cst_325 = arith.constant dense<0.000000e+00> : vector<8x512xf32>
    %661 = tpu.matmul %659, %660, %cst_325 {dimension_numbers = #tpu.dot_dimension_numbers<[1], [0], [0], [1], [0, 0, 1, 1], [], []>} : vector<8x128xbf16>, vector<128x512xbf16>, vector<8x512xf32> -> vector<8x512xf32>
    %662 = arith.addf %658, %661 : vector<8x512xf32>
    %663 = vector.extract_strided_slice %662 {offsets = [0, 0], sizes = [8, 128], strides = [1, 1]} : vector<8x512xf32> to vector<8x128xf32>
    %cst_326 = arith.constant 5.000000e-01 : f32
    %664 = vector.broadcast %cst_326 : f32 to vector<8x128xf32>
    %665 = arith.mulf %664, %663 : vector<8x128xf32>
    %666 = math.tanh %665 : vector<8x128xf32>
    %cst_327 = arith.constant 5.000000e-01 : f32
    %667 = vector.broadcast %cst_327 : f32 to vector<8x128xf32>
    %668 = arith.mulf %667, %666 : vector<8x128xf32>
    %cst_328 = arith.constant 5.000000e-01 : f32
    %669 = vector.broadcast %cst_328 : f32 to vector<8x128xf32>
    %670 = arith.addf %668, %669 : vector<8x128xf32>
    %671 = vector.extract_strided_slice %662 {offsets = [0, 128], sizes = [8, 128], strides = [1, 1]} : vector<8x512xf32> to vector<8x128xf32>
    %cst_329 = arith.constant 5.000000e-01 : f32
    %672 = vector.broadcast %cst_329 : f32 to vector<8x128xf32>
    %673 = arith.mulf %672, %671 : vector<8x128xf32>
    %674 = math.tanh %673 : vector<8x128xf32>
    %cst_330 = arith.constant 5.000000e-01 : f32
    %675 = vector.broadcast %cst_330 : f32 to vector<8x128xf32>
    %676 = arith.mulf %675, %674 : vector<8x128xf32>
    %cst_331 = arith.constant 5.000000e-01 : f32
    %677 = vector.broadcast %cst_331 : f32 to vector<8x128xf32>
    %678 = arith.addf %676, %677 : vector<8x128xf32>
    %679 = vector.extract_strided_slice %662 {offsets = [0, 256], sizes = [8, 128], strides = [1, 1]} : vector<8x512xf32> to vector<8x128xf32>
    %680 = math.tanh %679 : vector<8x128xf32>
    %681 = vector.extract_strided_slice %662 {offsets = [0, 384], sizes = [8, 128], strides = [1, 1]} : vector<8x512xf32> to vector<8x128xf32>
    %cst_332 = arith.constant 5.000000e-01 : f32
    %682 = vector.broadcast %cst_332 : f32 to vector<8x128xf32>
    %683 = arith.mulf %682, %681 : vector<8x128xf32>
    %684 = math.tanh %683 : vector<8x128xf32>
    %cst_333 = arith.constant 5.000000e-01 : f32
    %685 = vector.broadcast %cst_333 : f32 to vector<8x128xf32>
    %686 = arith.mulf %685, %684 : vector<8x128xf32>
    %cst_334 = arith.constant 5.000000e-01 : f32
    %687 = vector.broadcast %cst_334 : f32 to vector<8x128xf32>
    %688 = arith.addf %686, %687 : vector<8x128xf32>
    %689 = arith.mulf %678, %605 : vector<8x128xf32>
    %690 = arith.mulf %670, %680 : vector<8x128xf32>
    %691 = arith.addf %689, %690 : vector<8x128xf32>
    %692 = math.tanh %691 : vector<8x128xf32>
    %693 = arith.mulf %688, %692 : vector<8x128xf32>
    %694 = arith.truncf %693 : vector<8x128xf32> to vector<8x128xbf16>
    %c7_335 = arith.constant 7 : index
    %c0_336 = arith.constant 0 : index
    %c0_337 = arith.constant 0 : index
    %695 = vector.load %arg8[%c7_335, %c0_336, %c0_337] : memref<8x8x128xbf16, #tpu.memory_space<vmem>>, vector<1x8x128xbf16>
    %696 = vector.shape_cast %695 : vector<1x8x128xbf16> to vector<8x128xbf16>
    %697 = vector.shape_cast %694 : vector<8x128xbf16> to vector<1x8x128xbf16>
    tpu.vector_store %arg8[%c7_335, %c0_336, %c0_337], %697 {strides = array<i32>} : memref<8x8x128xbf16, #tpu.memory_space<vmem>>, vector<1x8x128xbf16>,
    %c0_i32_338 = arith.constant 0 : i32
    %698 = arith.cmpi eq, %arg0, %c0_i32_338 : i32
    %699 = arith.extui %698 : i1 to i32
    %c0_i32_339 = arith.constant 0 : i32
    %700 = arith.cmpi ne, %699, %c0_i32_339 : i32
    scf.if %700 {
      %c0_348 = arith.constant 0 : index
      %c0_349 = arith.constant 0 : index
      %705 = vector.load %arg9[%c0_348, %c0_349] : memref<8x128xf32, #tpu.memory_space<vmem>>, vector<8x128xf32>
      tpu.vector_store %arg9[%c0_348, %c0_349], %650 {strides = array<i32>} : memref<8x128xf32, #tpu.memory_space<vmem>>, vector<8x128xf32>,
      %c0_350 = arith.constant 0 : index
      %c0_351 = arith.constant 0 : index
      %706 = vector.load %arg10[%c0_350, %c0_351] : memref<8x128xf32, #tpu.memory_space<vmem>>, vector<8x128xf32>
      tpu.vector_store %arg10[%c0_350, %c0_351], %648 {strides = array<i32>} : memref<8x128xf32, #tpu.memory_space<vmem>>, vector<8x128xf32>,
    } else {
    }
    %c0_340 = arith.constant 0 : index
    %c0_341 = arith.constant 0 : index
    %701 = vector.load %arg13[%c0_340, %c0_341] : memref<8x128xf32, #tpu.memory_space<vmem>>, vector<8x128xf32>
    tpu.vector_store %arg13[%c0_340, %c0_341], %650 {strides = array<i32>} : memref<8x128xf32, #tpu.memory_space<vmem>>, vector<8x128xf32>,
    %c0_342 = arith.constant 0 : index
    %c0_343 = arith.constant 0 : index
    %702 = vector.load %arg14[%c0_342, %c0_343] : memref<8x128xf32, #tpu.memory_space<vmem>>, vector<8x128xf32>
    tpu.vector_store %arg14[%c0_342, %c0_343], %648 {strides = array<i32>} : memref<8x128xf32, #tpu.memory_space<vmem>>, vector<8x128xf32>,
    %c0_344 = arith.constant 0 : index
    %c0_345 = arith.constant 0 : index
    %703 = vector.load %arg15[%c0_344, %c0_345] : memref<8x128xf32, #tpu.memory_space<vmem>>, vector<8x128xf32>
    tpu.vector_store %arg15[%c0_344, %c0_345], %693 {strides = array<i32>} : memref<8x128xf32, #tpu.memory_space<vmem>>, vector<8x128xf32>,
    %c0_346 = arith.constant 0 : index
    %c0_347 = arith.constant 0 : index
    %704 = vector.load %arg16[%c0_346, %c0_347] : memref<8x128xf32, #tpu.memory_space<vmem>>, vector<8x128xf32>
    tpu.vector_store %arg16[%c0_346, %c0_347], %691 {strides = array<i32>} : memref<8x128xf32, #tpu.memory_space<vmem>>, vector<8x128xf32>,
    return
  }
  func.func @transform_0(%arg0: i32) -> (i32, i32, i32) {
    %c0_i32 = arith.constant 0 : i32
    %c0_i32_0 = arith.constant 0 : i32
    %c0_i32_1 = arith.constant 0 : i32
    return %arg0, %c0_i32, %c0_i32_0 : i32, i32, i32
  }
  func.func @transform_1(%arg0: i32) -> (i32, i32, i32) {
    %c0_i32 = arith.constant 0 : i32
    %c0_i32_0 = arith.constant 0 : i32
    %c0_i32_1 = arith.constant 0 : i32
    return %arg0, %c0_i32, %c0_i32_0 : i32, i32, i32
  }
  func.func @transform_6(%arg0: i32) -> (i32, i32, i32) {
    %c0_i32 = arith.constant 0 : i32
    %c0_i32_0 = arith.constant 0 : i32
    %c0_i32_1 = arith.constant 0 : i32
    return %arg0, %c0_i32, %c0_i32_0 : i32, i32, i32
  }
  func.func @transform_7(%arg0: i32) -> (i32, i32, i32) {
    %c0_i32 = arith.constant 0 : i32
    %c0_i32_0 = arith.constant 0 : i32
    %c0_i32_1 = arith.constant 0 : i32
    return %arg0, %c0_i32, %c0_i32_0 : i32, i32, i32
  }
  func.func @transform_8(%arg0: i32) -> (i32, i32) {
    %c0_i32 = arith.constant 0 : i32
    %c0_i32_0 = arith.constant 0 : i32
    %c0_i32_1 = arith.constant 0 : i32
    return %c0_i32, %c0_i32_0 : i32, i32
  }
  func.func @transform_9(%arg0: i32) -> (i32, i32) {
    %c0_i32 = arith.constant 0 : i32
    %c0_i32_0 = arith.constant 0 : i32
    %c0_i32_1 = arith.constant 0 : i32
    return %c0_i32, %c0_i32_0 : i32, i32
  }
  func.func @transform_10(%arg0: i32) -> (i32, i32) {
    %c0_i32 = arith.constant 0 : i32
    %c0_i32_0 = arith.constant 0 : i32
    %c0_i32_1 = arith.constant 0 : i32
    return %c0_i32, %c0_i32_0 : i32, i32
  }
  func.func @transform_11(%arg0: i32) -> (i32, i32) {
    %c0_i32 = arith.constant 0 : i32
    %c0_i32_0 = arith.constant 0 : i32
    %c0_i32_1 = arith.constant 0 : i32
    return %c0_i32, %c0_i32_0 : i32, i32
  }
}

</mosaic_0001>

<bundles_post_ra>
// kernel: tpu_custom_call.1
= control target key start
LH: loop header
LB: loop body
LE: loop exit
PB: predicated region body
PF: predicated region fallthrough
CT: control target
= control target key end

     0   :  { %17 = vsyncpa [#allocation12], 0  ;;  %s5926_s0 = inlined_call_operand.hbm [shape: bf16[8,8,16], index: 0, kind: input, shape index: {}]   ;;  %s5927_s1 = inlined_call_operand.hbm [shape: bf16[8,8,16], index: 1, kind: input, shape index: {}]   ;;  %s5928_s2 = inlined_call_operand.hbm [shape: bf16[16,512], index: 2, kind: input, shape index: {}]   ;;  %s5929_s3 = inlined_call_operand.hbm [shape: bf16[128,512], index: 3, kind: input, shape index: {}]   ;;  %s5930_s4 = inlined_call_operand.hbm [shape: bf16[16,512], index: 4, kind: input, shape index: {}]   ;;  %s5931_s5 = inlined_call_operand.hbm [shape: bf16[128,512], index: 5, kind: input, shape index: {}]   ;;  %s5932_s6 = inlined_call_operand.hbm [shape: bf16[8,8,128], index: 6, kind: output, shape index: {0}]   ;;  %s5933_s7 = inlined_call_operand.hbm [shape: bf16[8,8,128], index: 7, kind: output, shape index: {1}]   ;;  %s5934_s8 = inlined_call_operand.hbm [shape: f32[8,128], index: 8, kind: output, shape index: {2}]   ;;  %s5935_s9 = inlined_call_operand.hbm [shape: f32[8,128], index: 9, kind: output, shape index: {3}]   ;;  %s5936_s10 = inlined_call_operand.hbm [shape: f32[8,128], index: 10, kind: output, shape index: {4}]   ;;  %s5937_s11 = inlined_call_operand.hbm [shape: f32[8,128], index: 11, kind: output, shape index: {5}]  }
   0x1   :  { %18 = vsyncpa [#allocation15], 0 }
   0x2   :  { %19 = vsyncpa [#allocation13], 0 }
   0x3   :  { %20 = vsyncpa [#allocation18], 0 }
   0x4   :  { %21 = vsyncpa [#allocation21], 0 }
   0x5   :  { %22 = vsyncpa [#allocation24], 0  ;;  %s4508_s17 = smov [#allocation11]   ;;  %s4312_s21 = scalar_lea.hbm %s5926_s0, 512 }
   0x6   :  { %s28_s18 = sshll.u32 %s4508_s17, 4  ;;  %p4313_p0 = scmp.ne.s32.totalorder %s5926_s0, %s4312_s21  ;;  %s29_s18 = int_to_ptr.vmem [resolvable:$true] %s28_s18 }
   0x7   :  { %p4316_p1 = scmp.lt.u32.totalorder %s4312_s21, %s5926_s0 }
   0x9   :  { %p4318_p2 = pnand %p4316_p1, %p4313_p0 }
   0xb   :  { %4321 = shalt.err (!%p4318_p2)
}
   0xc   :  { %s4322_s26 = scalar_lea.vmem %s29_s18, 512  ;;  %p4327_p4 = scmp.lt.s32.totalorder %s29_s18, %s29_s18 }
   0xd   :  { %p4323_p3 = scmp.ne.s32.totalorder %s29_s18, %s4322_s26  ;;  %p4328_p5 = scmp.lt.s32.totalorder %s4322_s26, %s4322_s26 }
   0xf   :  { %p4329_p6 = por %p4328_p5, %p4327_p4 }
  0x11   :  { %p4330_p7 = pnand %p4329_p6, %p4323_p3 }
  0x13   :  { %4333 = shalt.err (!%p4330_p7)
}
  0x14   :  { %s4509_s27 = smov 64   ;;  %s4510_s28 = smov 4  }
  0x15   :  { %34 = dma.hbm_to_vmem [thread:$0]  %s5926_s0, 512, %s29_s18, [#allocation12], %s4509_s27, %s4509_s27, %s4510_s28  }
  0x16   :  { %s4511_s12 = smov [#allocation14]   ;;  %s4334_s16 = scalar_lea.hbm %s5927_s1, 512 }
  0x17   :  { %s40_s13 = sshll.u32 %s4511_s12, 4  ;;  %p4335_p8 = scmp.ne.s32.totalorder %s5927_s1, %s4334_s16  ;;  %s41_s13 = int_to_ptr.vmem [resolvable:$true] %s40_s13 }
  0x18   :  { %p4338_p9 = scmp.lt.u32.totalorder %s4334_s16, %s5927_s1 }
  0x1a   :  { %p4340_p10 = pnand %p4338_p9, %p4335_p8 }
  0x1c   :  { %4343 = shalt.err (!%p4340_p10)
}
  0x1d   :  { %s4344_s22 = scalar_lea.vmem %s41_s13, 512  ;;  %p4349_p12 = scmp.lt.s32.totalorder %s41_s13, %s41_s13 }
  0x1e   :  { %p4345_p11 = scmp.ne.s32.totalorder %s41_s13, %s4344_s22  ;;  %p4350_p13 = scmp.lt.s32.totalorder %s4344_s22, %s4344_s22 }
  0x20   :  { %p4351_p0 = por %p4350_p13, %p4349_p12 }
  0x22   :  { %p4352_p1 = pnand %p4351_p0, %p4345_p11 }
  0x24   :  { %4355 = shalt.err (!%p4352_p1)
}
  0x25   :  { %46 = dma.hbm_to_vmem [thread:$0]  %s5927_s1, 512, %s41_s13, [#allocation15], %s4509_s27, %s4509_s27, %s4510_s28  }
  0x26   :  { %4488 = dma.done.wait [#allocation12], 512  }
  0x27   :  { %4489 = vsyncadd [#allocation12], 4294966784 }
  0x28   :  { %4490 = dma.done.wait [#allocation15], 512  }
  0x29   :  { %4491 = vsyncadd [#allocation15], 4294966784 }
  0x2a   :  { %s66_s23 = sld [smem:[#allocation0]]   ;;  %s4512_s24 = smov [#allocation6]  }
  0x2b   :  { %s74_s25 = sshll.u32 %s4512_s24, 4  ;;  %s4513_s26 = smov 64   ;;  %s75_s25 = int_to_ptr.vmem [resolvable:$true] %s74_s25 }
  0x2c   :  { %78 = sst [smem:[#allocation26]] %s4513_s26  ;;  %s4514_s29 = smov 128  }
  0x2d   :  { %80 = sst [smem:[#allocation26 + $0x1]] %s4514_s29  ;;  %s4515_s30 = smov 2  }
  0x2e   :  { %82 = sst [smem:[#allocation26 + $0x2]] %s4515_s30  ;;  %s4516_s14 = smov 256  }
  0x2f   :  { %84 = sst [smem:[#allocation26 + $0x3]] %s4516_s14  ;;  %s4517_s13 = smov 4  }
  0x30   :  { %s3950_s12 = sshll.u32 %s66_s23, 26  ;;  %86 = sst [smem:[#allocation26 + $0x4]] %s4513_s26 }
  0x31   :  { %s4632_s1 = sadd.s32 134217728, %s3950_s12  ;;  %88 = sst [smem:[#allocation26 + $0x5]] %s4517_s13 }
  0x32   :  { %s4518_s15 = smov [#allocation10]   ;;  %s4519_s16 = smov [#allocation25]  }
  0x33   :  { %90 = dma.general %s5928_s2, 512, %s75_s25, %s4518_s15, %s4519_s16, [#allocation26], %s4632_s1, 0  }
  0x34   :  { %s4520_s20 = smov 512   ;;  %s4521_s21 = smov [#allocation7]  }
  0x35   :  { %107 = sst [smem:[#allocation28]] %s4520_s20  ;;  %s103_s22 = sshll.u32 %s4521_s21, 4  ;;  %s104_s22 = int_to_ptr.vmem [resolvable:$true] %s103_s22 }
  0x36   :  { %109 = sst [smem:[#allocation28 + $0x1]] %s4520_s20  ;;  %s4522_s2 = smov [#allocation8]  }
  0x37   :  { %111 = sst [smem:[#allocation28 + $0x2]] %s4517_s13  ;;  %s138_s0 = sshll.u32 %s4522_s2, 4  ;;  %s139_s0 = int_to_ptr.vmem [resolvable:$true] %s138_s0 }
  0x38   :  { %113 = sst [smem:[#allocation28 + $0x3]] %s4513_s26  ;;  %s4523_s18 = smov [#allocation10 + $0x1]  }
  0x39   :  { %115 = sst [smem:[#allocation28 + $0x4]] %s4514_s29  ;;  %s4524_s23 = smov [#allocation27]  }
  0x3a   :  { %117 = sst [smem:[#allocation28 + $0x5]] %s4515_s30  ;;  %s4525_s12 = smov [#allocation10 + $0x2]  }
  0x3b   :  { %119 = sst [smem:[#allocation28 + $0x6]] %s4516_s14  ;;  %s4526_s15 = smov [#allocation29]  }
  0x3c   :  { %121 = sst [smem:[#allocation28 + $0x7]] %s4513_s26  ;;  %s4529_s21 = smov [#allocation31]  }
  0x3d   :  { %123 = sst [smem:[#allocation28 + $0x8]] %s4517_s13 }
  0x3e   :  { %125 = dma.general %s5929_s3, 4096, %s104_s22, %s4523_s18, %s4524_s23, [#allocation28], %s4632_s1, 0  }
  0x3f   :  { %142 = sst [smem:[#allocation30]] %s4513_s26  ;;  %s4527_s3 = smov [#allocation9]  }
  0x40   :  { %144 = sst [smem:[#allocation30 + $0x1]] %s4514_s29  ;;  %s167_s19 = sshll.u32 %s4527_s3, 4  ;;  %s168_s19 = int_to_ptr.vmem [resolvable:$true] %s167_s19 }
  0x41   :  { %146 = sst [smem:[#allocation30 + $0x2]] %s4515_s30 }
  0x42   :  { %148 = sst [smem:[#allocation30 + $0x3]] %s4516_s14 }
  0x43   :  { %150 = sst [smem:[#allocation30 + $0x4]] %s4513_s26 }
  0x44   :  { %152 = sst [smem:[#allocation30 + $0x5]] %s4517_s13 }
  0x45   :  { %154 = dma.general %s5930_s4, 512, %s139_s0, %s4525_s12, %s4526_s15, [#allocation30], %s4632_s1, 0  }
  0x46   :  { %171 = sst [smem:[#allocation32]] %s4520_s20  ;;  %s4528_s4 = smov [#allocation10 + $0x3]  }
  0x47   :  { %173 = sst [smem:[#allocation32 + $0x1]] %s4520_s20 }
  0x48   :  { %175 = sst [smem:[#allocation32 + $0x2]] %s4517_s13 }
  0x49   :  { %177 = sst [smem:[#allocation32 + $0x3]] %s4513_s26 }
  0x4a   :  { %179 = sst [smem:[#allocation32 + $0x4]] %s4514_s29 }
  0x4b   :  { %181 = sst [smem:[#allocation32 + $0x5]] %s4515_s30 }
  0x4c   :  { %183 = sst [smem:[#allocation32 + $0x6]] %s4516_s14 }
  0x4d   :  { %185 = sst [smem:[#allocation32 + $0x7]] %s4513_s26 }
  0x4e   :  { %187 = sst [smem:[#allocation32 + $0x8]] %s4517_s13 }
  0x4f   :  { %189 = dma.general %s5931_s5, 4096, %s168_s19, %s4528_s4, %s4529_s21, [#allocation32], %s4632_s1, 0  }
  0x50   :  { %4492 = dma.done.wait [#allocation10], 512 }
  0x51   :  { %4493 = vsyncadd [#allocation10], 4294966784 }
  0x52   :  { %4494 = dma.done.wait [#allocation10 + $0x1], 4096 }
  0x53   :  { %4495 = vsyncadd [#allocation10 + $0x1], 4294963200 }
  0x54   :  { %4496 = dma.done.wait [#allocation10 + $0x2], 512 }
  0x55   :  { %4497 = vsyncadd [#allocation10 + $0x2], 4294966784 }
  0x56   :  { %4498 = dma.done.wait [#allocation10 + $0x3], 4096 }
  0x57   :  { %4499 = vsyncadd [#allocation10 + $0x3], 4294963200  ;;  %v4676_v0 = vld [vmem:[#allocation7 + $0x8] sm:$0xff]  ;;  %v4678_v1 = vld [vmem:[#allocation7 + $0x18] sm:$0xff]  ;;  %v5938_v10 = vmov 0   ;;  %v5940_v37 = vmov 0.0|0.0  }
  0x58   :  { %v4680_v2 = vld [vmem:[#allocation7] sm:$0xff]  ;;  %244 = vmatprep.subr.bf16.mxu0 %v4676_v0  ;;  %285 = vmatprep.subr.bf16.mxu1 %v4678_v1  ;;  %v4684_v3 = vld [vmem:[#allocation7 + $0x10] sm:$0xff]  ;;  %v4686_v4 = vld [vmem:[#allocation7 + $0x28] sm:$0xff]  ;;  %vm326_vm0 = vcmask 130048   ;;  %s4532_s5 = smov [#allocation23]  }
  0x59   :  { %v4688_v5 = vld [vmem:[#allocation7 + $0x38] sm:$0xff]  ;;  %245 = vmatpush1.bf16.msra.mxu0 %v4680_v2  ;;  %286 = vmatpush1.bf16.msra.mxu1 %v4684_v3  ;;  %v4694_v6 = vld [vmem:[#allocation7 + $0x20] sm:$0xff]  ;;  %v4696_v7 = vld [vmem:[#allocation7 + $0x30] sm:$0xff]  ;;  %s3895_s26 = sshll.u32 %s4532_s5, 4  ;;  %s3896_s26 = int_to_ptr.vmem [resolvable:$true] %s3895_s26 }
  0x5a   :  { %246 = vmatprep.subr.bf16.mxu0 %v4686_v4  ;;  %287 = vmatprep.subr.bf16.mxu1 %v4688_v5  ;;  %v4698_v8 = vld [vmem:[#allocation7 + $0x48] sm:$0xff]  ;;  %v4700_v9 = vld [vmem:[#allocation7 + $0x58] sm:$0xff]  ;;  %v4708_v11 = vld [vmem:[#allocation7 + $0x40] sm:$0xff]  ;;  %s4356_s29 = scalar_lea.vmem %s3896_s26, 128  ;;  %p4361_p3 = scmp.lt.s32.totalorder %s3896_s26, %s3896_s26 }
  0x5b   :  { %276 = vmatprep.mubr.bf16.mxu0 %v5938_v10  ;;  %317 = vmatprep.mubr.bf16.mxu1 %v5938_v10  ;;  %v4710_v12 = vld [vmem:[#allocation7 + $0x50] sm:$0xff]  ;;  %v4712_v13 = vld [vmem:[#allocation7 + $0x68] sm:$0xff]  ;;  %v4714_v14 = vld [vmem:[#allocation7 + $0x78] sm:$0xff]  ;;  %p4357_p2 = scmp.ne.s32.totalorder %s3896_s26, %s4356_s29  ;;  %p4362_p4 = scmp.lt.s32.totalorder %s4356_s29, %s4356_s29 }
  0x5c   :  { %v4720_v15 = vld [vmem:[#allocation7 + $0x60] sm:$0xff]  ;;  %v4722_v16 = vld [vmem:[#allocation7 + $0x70] sm:$0xff]  ;;  %v4724_v17 = vld [vmem:[#allocation7 + $0x88] sm:$0xff] }
  0x5d   :  { %247 = vmatpush1.bf16.msra.mxu0 %v4694_v6  ;;  %288 = vmatpush1.bf16.msra.mxu1 %v4696_v7  ;;  %6042 = vst [vmem:[#allocation43_spill] sm:$0xff] %v4724_v17  ;;  %v4726_v18 = vld [vmem:[#allocation7 + $0x98] sm:$0xff]  ;;  %v4732_v19 = vld [vmem:[#allocation7 + $0x80] sm:$0xff]  ;;  %v4734_v20 = vld [vmem:[#allocation7 + $0x90] sm:$0xff]  ;;  %p4363_p5 = por %p4362_p4, %p4361_p3 }
  0x5e   :  { %248 = vmatprep.subr.bf16.mxu0 %v4698_v8  ;;  %289 = vmatprep.subr.bf16.mxu1 %v4700_v9  ;;  %6043 = vst [vmem:[#allocation44_spill] sm:$0xff] %v4726_v18  ;;  %6044 = vst [vmem:[#allocation45_spill] sm:$0xff] %v4732_v19  ;;  %v4736_v21 = vld [vmem:[#allocation7 + $0xa8] sm:$0xff]  ;;  %v4738_v22 = vld [vmem:[#allocation7 + $0xb8] sm:$0xff] }
  0x5f   :  { %6045 = vst [vmem:[#allocation46_spill] sm:$0xff] %v4734_v20  ;;  %6046 = vst [vmem:[#allocation47_spill] sm:$0xff] %v4736_v21  ;;  %v4744_v23 = vld [vmem:[#allocation7 + $0xa0] sm:$0xff]  ;;  %v4746_v24 = vld [vmem:[#allocation7 + $0xb0] sm:$0xff]  ;;  %p4364_p6 = pnand %p4363_p5, %p4357_p2 }
  0x60   :  { %6047 = vst [vmem:[#allocation48_spill] sm:$0xff] %v4738_v22  ;;  %6048 = vst [vmem:[#allocation49_spill] sm:$0xff] %v4744_v23  ;;  %v4748_v25 = vld [vmem:[#allocation7 + $0xc8] sm:$0xff]  ;;  %v4750_v26 = vld [vmem:[#allocation7 + $0xd8] sm:$0xff] }
  0x61   :  { %249 = vmatpush1.bf16.msra.mxu0 %v4708_v11  ;;  %290 = vmatpush1.bf16.msra.mxu1 %v4710_v12  ;;  %6049 = vst [vmem:[#allocation50_spill] sm:$0xff] %v4746_v24  ;;  %6050 = vst [vmem:[#allocation51_spill] sm:$0xff] %v4748_v25  ;;  %v4756_v27 = vld [vmem:[#allocation7 + $0xc0] sm:$0xff]  ;;  %v4758_v28 = vld [vmem:[#allocation7 + $0xd0] sm:$0xff] }
  0x62   :  { %250 = vmatprep.subr.bf16.mxu0 %v4712_v13  ;;  %291 = vmatprep.subr.bf16.mxu1 %v4714_v14  ;;  %6051 = vst [vmem:[#allocation52_spill] sm:$0xff] %v4750_v26  ;;  %6052 = vst [vmem:[#allocation53_spill] sm:$0xff] %v4756_v27  ;;  %v4760_v29 = vld [vmem:[#allocation7 + $0xe8] sm:$0xff]  ;;  %v4762_v30 = vld [vmem:[#allocation7 + $0xf8] sm:$0xff] }
  0x63   :  { %6053 = vst [vmem:[#allocation54_spill] sm:$0xff] %v4758_v28  ;;  %6054 = vst [vmem:[#allocation55_spill] sm:$0xff] %v4760_v29  ;;  %v4768_v31 = vld [vmem:[#allocation7 + $0xe0] sm:$0xff]  ;;  %v4770_v32 = vld [vmem:[#allocation7 + $0xf0] sm:$0xff] }
  0x64   :  { %6055 = vst [vmem:[#allocation56_spill] sm:$0xff] %v4762_v30  ;;  %6056 = vst [vmem:[#allocation57_spill] sm:$0xff] %v4768_v31  ;;  %v4772_v33 = vld [vmem:[#allocation6 + $0x8] sm:$0xff]  ;;  %v4774_v34 = vld [vmem:[#allocation6 + $0x18] sm:$0xff] }
  0x65   :  { %251 = vmatpush1.bf16.msra.mxu0 %v4720_v15  ;;  %292 = vmatpush1.bf16.msra.mxu1 %v4722_v16  ;;  %6057 = vst [vmem:[#allocation58_spill] sm:$0xff] %v4770_v32  ;;  %6058 = vst [vmem:[#allocation59_spill] sm:$0xff] %v4772_v33  ;;  %v4779_v35 = vld [vmem:[#allocation6] sm:$0xff]  ;;  %v4782_v36 = vld [vmem:[#allocation6 + $0x10] sm:$0xff] }
  0x66   :  { %252 = vmatprep.subr.bf16.mxu0 %v4724_v17  ;;  %293 = vmatprep.subr.bf16.mxu1 %v4726_v18  ;;  %6059 = vst [vmem:[#allocation60_spill] sm:$0xff] %v4774_v34  ;;  %v4786_v38 = vld [vmem:[#allocation9 + $0x8] sm:$0xff]  ;;  %v4788_v39 = vld [vmem:[#allocation9 + $0x18] sm:$0xff]  ;;  %v206_v40 = vld [vmem:[#allocation11] sm:$0xf] }
  0x67   :  { %v4796_v41 = vld [vmem:[#allocation9] sm:$0xff]  ;;  %v4798_v42 = vld [vmem:[#allocation9 + $0x10] sm:$0xff]  ;;  %v4800_v43 = vld [vmem:[#allocation9 + $0x28] sm:$0xff] }
  0x68   :  { %v4802_v44 = vld [vmem:[#allocation9 + $0x38] sm:$0xff]  ;;  %v4810_v45 = vld [vmem:[#allocation9 + $0x20] sm:$0xff]  ;;  %v4812_v46 = vld [vmem:[#allocation9 + $0x30] sm:$0xff] }
  0x69   :  { %253 = vmatpush1.bf16.msra.mxu0 %v4732_v19  ;;  %294 = vmatpush1.bf16.msra.mxu1 %v4734_v20  ;;  %v4814_v47 = vld [vmem:[#allocation9 + $0x48] sm:$0xff]  ;;  %v4816_v48 = vld [vmem:[#allocation9 + $0x58] sm:$0xff]  ;;  %v4824_v49 = vld [vmem:[#allocation9 + $0x40] sm:$0xff] }
  0x6a   :  { %254 = vmatprep.subr.bf16.mxu0 %v4736_v21  ;;  %295 = vmatprep.subr.bf16.mxu1 %v4738_v22  ;;  %v4826_v50 = vld [vmem:[#allocation9 + $0x50] sm:$0xff]  ;;  %v4828_v51 = vld [vmem:[#allocation9 + $0x68] sm:$0xff]  ;;  %v4830_v52 = vld [vmem:[#allocation9 + $0x78] sm:$0xff] }
  0x6b   :  { %v4836_v53 = vld [vmem:[#allocation9 + $0x60] sm:$0xff]  ;;  %v4838_v54 = vld [vmem:[#allocation9 + $0x70] sm:$0xff]  ;;  %v4840_v55 = vld [vmem:[#allocation9 + $0x88] sm:$0xff] }
  0x6c   :  { %v4842_v56 = vld [vmem:[#allocation9 + $0x98] sm:$0xff]  ;;  %v4848_v57 = vld [vmem:[#allocation9 + $0x80] sm:$0xff]  ;;  %v4850_v58 = vld [vmem:[#allocation9 + $0x90] sm:$0xff] }
  0x6d   :  { %255 = vmatpush1.bf16.msra.mxu0 %v4744_v23  ;;  %296 = vmatpush1.bf16.msra.mxu1 %v4746_v24  ;;  %v4852_v59 = vld [vmem:[#allocation9 + $0xa8] sm:$0xff]  ;;  %v4854_v60 = vld [vmem:[#allocation9 + $0xb8] sm:$0xff]  ;;  %v4860_v61 = vld [vmem:[#allocation9 + $0xa0] sm:$0xff] }
  0x6e   :  { %256 = vmatprep.subr.bf16.mxu0 %v4748_v25  ;;  %297 = vmatprep.subr.bf16.mxu1 %v4750_v26  ;;  %6060 = vst [vmem:[#allocation61_spill] sm:$0xff] %v4852_v59  ;;  %6061 = vst [vmem:[#allocation62_spill] sm:$0xff] %v4854_v60  ;;  %v4862_v62 = vld [vmem:[#allocation9 + $0xb0] sm:$0xff]  ;;  %v4864_v63 = vld [vmem:[#allocation9 + $0xc8] sm:$0xff] }
  0x6f   :  { %6062 = vst [vmem:[#allocation63_spill] sm:$0xff] %v4860_v61  ;;  %6063 = vst [vmem:[#allocation64_spill] sm:$0xff] %v4862_v62 }
  0x70   :  { %6064 = vst [vmem:[#allocation65_spill] sm:$0xff] %v4864_v63 }
  0x71   :  { %257 = vmatpush1.bf16.msra.mxu0 %v4756_v27  ;;  %298 = vmatpush1.bf16.msra.mxu1 %v4758_v28 }
  0x72   :  { %258 = vmatprep.subr.bf16.mxu0 %v4760_v29  ;;  %299 = vmatprep.subr.bf16.mxu1 %v4762_v30 }
  0x75   :  { %259 = vmatpush1.bf16.msra.mxu0 %v4768_v31  ;;  %300 = vmatpush1.bf16.msra.mxu1 %v4770_v32 }
  0x76   :  { %330 = vmatprep.subr.bf16.mxu0 %v4772_v33  ;;  %371 = vmatprep.subr.bf16.mxu1 %v4774_v34 }
  0x78   :  { %277 = vmatmul.mubr.bf16.vlgmr.msra.gmra.mrb[0].mxu0 %v5940_v37  ;;  %318 = vmatmul.mubr.bf16.vlgmr.msra.gmra.mrb[0].mxu1 %v5940_v37  ;;  %v4874_v37 = vld [vmem:[#allocation9 + $0xd0] sm:$0xff] }
  0x79   :  { %331 = vmatpush1.bf16.msra.mxu0 %v4779_v35  ;;  %372 = vmatpush1.bf16.msra.mxu1 %v4782_v36  ;;  %6067 = vst [vmem:[#allocation68_spill] sm:$0xff] %v4874_v37 }
  0x7a   :  { %362 = vmatprep.mubr.bf16.mxu0 %v5938_v10  ;;  %403 = vmatprep.mubr.bf16.mxu1 %v5938_v10 }
  0x7b   :  { %470 = vmatprep.subr.bf16.mxu0 %v4786_v38  ;;  %511 = vmatprep.subr.bf16.mxu1 %v4788_v39 }
  0x84   :  { %3958 = vmatmul.mubr.msk.bf16.vlgmr.msra.gmra.mrb[0].mxu0 %vm326_vm0, %v206_v40  ;;  %3959 = vmatmul.mubr.msk.bf16.vlgmr.msra.gmra.mrb[0].mxu1 %vm326_vm0, %v206_v40  ;;  %v4866_v40 = vld [vmem:[#allocation9 + $0xd8] sm:$0xff] }
  0x85   :  { %471 = vmatpush1.bf16.msra.mxu0 %v4796_v41  ;;  %512 = vmatpush1.bf16.msra.mxu1 %v4798_v42  ;;  %6065 = vst [vmem:[#allocation66_spill] sm:$0xff] %v4866_v40 }
  0x86   :  { %472 = vmatprep.subr.bf16.mxu0 %v4800_v43  ;;  %513 = vmatprep.subr.bf16.mxu1 %v4802_v44 }
  0x87   :  { %502 = vmatprep.mubr.bf16.mxu0 %v5938_v10  ;;  %543 = vmatprep.mubr.bf16.mxu1 %v5938_v10  ;;  %v4872_v10 = vld [vmem:[#allocation9 + $0xc0] sm:$0xff] }
  0x88   :  { %6066 = vst [vmem:[#allocation67_spill] sm:$0xff] %v4872_v10 }
  0x89   :  { %473 = vmatpush1.bf16.msra.mxu0 %v4810_v45  ;;  %514 = vmatpush1.bf16.msra.mxu1 %v4812_v46 }
  0x8a   :  { %474 = vmatprep.subr.bf16.mxu0 %v4814_v47  ;;  %515 = vmatprep.subr.bf16.mxu1 %v4816_v48 }
  0x8d   :  { %475 = vmatpush1.bf16.msra.mxu0 %v4824_v49  ;;  %516 = vmatpush1.bf16.msra.mxu1 %v4826_v50 }
  0x8e   :  { %476 = vmatprep.subr.bf16.mxu0 %v4828_v51  ;;  %517 = vmatprep.subr.bf16.mxu1 %v4830_v52 }
  0x91   :  { %477 = vmatpush1.bf16.msra.mxu0 %v4836_v53  ;;  %518 = vmatpush1.bf16.msra.mxu1 %v4838_v54 }
  0x92   :  { %478 = vmatprep.subr.bf16.mxu0 %v4840_v55  ;;  %519 = vmatprep.subr.bf16.mxu1 %v4842_v56 }
  0x95   :  { %479 = vmatpush1.bf16.msra.mxu0 %v4848_v57  ;;  %520 = vmatpush1.bf16.msra.mxu1 %v4850_v58 }
  0x96   :  { %480 = vmatprep.subr.bf16.mxu0 %v4852_v59  ;;  %521 = vmatprep.subr.bf16.mxu1 %v4854_v60  ;;  %v4876_v60 = vld [vmem:[#allocation9 + $0xe8] sm:$0xff]  ;;  %v4878_v59 = vld [vmem:[#allocation9 + $0xf8] sm:$0xff] }
  0x97   :  { %6068 = vst [vmem:[#allocation69_spill] sm:$0xff] %v4876_v60  ;;  %6069 = vst [vmem:[#allocation70_spill] sm:$0xff] %v4878_v59 }
  0x99   :  { %481 = vmatpush1.bf16.msra.mxu0 %v4860_v61  ;;  %522 = vmatpush1.bf16.msra.mxu1 %v4862_v62  ;;  %v4884_v62 = vld [vmem:[#allocation9 + $0xe0] sm:$0xff]  ;;  %v4890_v61 = vld [vmem:[#allocation8 + $0x18] sm:$0xff] }
  0x9a   :  { %482 = vmatprep.subr.bf16.mxu0 %v4864_v63  ;;  %523 = vmatprep.subr.bf16.mxu1 %v4866_v40  ;;  %v4886_v63 = vld [vmem:[#allocation9 + $0xf0] sm:$0xff]  ;;  %v4888_v40 = vld [vmem:[#allocation8 + $0x8] sm:$0xff] }
  0x9b   :  { %6070 = vst [vmem:[#allocation71_spill] sm:$0xff] %v4888_v40 }
  0x9d   :  { %483 = vmatpush1.bf16.msra.mxu0 %v4872_v10  ;;  %524 = vmatpush1.bf16.msra.mxu1 %v4874_v37  ;;  %v4895_v10 = vld [vmem:[#allocation8] sm:$0xff]  ;;  %v6072_v37 = vmov 0  }
  0x9e   :  { %484 = vmatprep.subr.bf16.mxu0 %v4876_v60  ;;  %525 = vmatprep.subr.bf16.mxu1 %v4878_v59  ;;  %v4898_v60 = vld [vmem:[#allocation8 + $0x10] sm:$0xff]  ;;  %v6071_v59 = vmov 0.0|0.0  }
  0xa1   :  { %485 = vmatpush1.bf16.msra.mxu0 %v4884_v62  ;;  %526 = vmatpush1.bf16.msra.mxu1 %v4886_v63 }
  0xa2   :  { %555 = vmatprep.subr.bf16.mxu0 %v4888_v40  ;;  %596 = vmatprep.subr.bf16.mxu1 %v4890_v61  ;;  %v432_v40 = vld [vmem:[#allocation14] sm:$0xf] }
  0xa4   :  { %503 = vmatmul.mubr.bf16.vlgmr.msra.gmra.mrb[4].mxu0 %v6071_v59  ;;  %544 = vmatmul.mubr.bf16.vlgmr.msra.gmra.mrb[4].mxu1 %v6071_v59 }
  0xa5   :  { %556 = vmatpush1.bf16.msra.mxu0 %v4895_v10  ;;  %597 = vmatpush1.bf16.msra.mxu1 %v4898_v60 }
  0xa6   :  { %587 = vmatprep.mubr.bf16.mxu0 %v6072_v37  ;;  %628 = vmatprep.mubr.bf16.mxu1 %v6072_v37 }
  0xa7   :  { %700 = vmatprep.subr.bf16.mxu0 %v4676_v0  ;;  %741 = vmatprep.subr.bf16.mxu1 %v4678_v1 }
  0xb0   :  { %3960 = vmatmul.mubr.msk.bf16.vlgmr.msra.gmra.mrb[4].mxu0 %vm326_vm0, %v432_v40  ;;  %3961 = vmatmul.mubr.msk.bf16.vlgmr.msra.gmra.mrb[4].mxu1 %vm326_vm0, %v432_v40 }
  0xb1   :  { %701 = vmatpush1.bf16.msra.mxu0 %v4680_v2  ;;  %742 = vmatpush1.bf16.msra.mxu1 %v4684_v3 }
  0xb2   :  { %702 = vmatprep.subr.bf16.mxu0 %v4686_v4  ;;  %743 = vmatprep.subr.bf16.mxu1 %v4688_v5 }
  0xb3   :  { %732 = vmatprep.mubr.bf16.mxu0 %v6072_v37  ;;  %773 = vmatprep.mubr.bf16.mxu1 %v6072_v37 }
  0xb5   :  { %703 = vmatpush1.bf16.msra.mxu0 %v4694_v6  ;;  %744 = vmatpush1.bf16.msra.mxu1 %v4696_v7 }
  0xb6   :  { %704 = vmatprep.subr.bf16.mxu0 %v4698_v8  ;;  %745 = vmatprep.subr.bf16.mxu1 %v4700_v9 }
  0xb9   :  { %705 = vmatpush1.bf16.msra.mxu0 %v4708_v11  ;;  %746 = vmatpush1.bf16.msra.mxu1 %v4710_v12 }
  0xba   :  { %706 = vmatprep.subr.bf16.mxu0 %v4712_v13  ;;  %747 = vmatprep.subr.bf16.mxu1 %v4714_v14 }
  0xbd   :  { %707 = vmatpush1.bf16.msra.mxu0 %v4720_v15  ;;  %748 = vmatpush1.bf16.msra.mxu1 %v4722_v16 }
  0xbe   :  { %708 = vmatprep.subr.bf16.mxu0 %v4724_v17  ;;  %749 = vmatprep.subr.bf16.mxu1 %v4726_v18 }
  0xc1   :  { %709 = vmatpush1.bf16.msra.mxu0 %v4732_v19  ;;  %750 = vmatpush1.bf16.msra.mxu1 %v4734_v20 }
  0xc2   :  { %710 = vmatprep.subr.bf16.mxu0 %v4736_v21  ;;  %751 = vmatprep.subr.bf16.mxu1 %v4738_v22 }
  0xc5   :  { %711 = vmatpush1.bf16.msra.mxu0 %v4744_v23  ;;  %752 = vmatpush1.bf16.msra.mxu1 %v4746_v24 }
  0xc6   :  { %712 = vmatprep.subr.bf16.mxu0 %v4748_v25  ;;  %753 = vmatprep.subr.bf16.mxu1 %v4750_v26 }
  0xc9   :  { %713 = vmatpush1.bf16.msra.mxu0 %v4756_v27  ;;  %754 = vmatpush1.bf16.msra.mxu1 %v4758_v28 }
  0xca   :  { %714 = vmatprep.subr.bf16.mxu0 %v4760_v29  ;;  %755 = vmatprep.subr.bf16.mxu1 %v4762_v30 }
  0xcd   :  { %715 = vmatpush1.bf16.msra.mxu0 %v4768_v31  ;;  %756 = vmatpush1.bf16.msra.mxu1 %v4770_v32 }
  0xce   :  { %785 = vmatprep.subr.bf16.mxu0 %v4772_v33  ;;  %826 = vmatprep.subr.bf16.mxu1 %v4774_v34 }
 0x157   :  { %v364_v59 = vpop.f32.mrb[0].mxu0  ;;  %v405_v40 = vpop.f32.mrb[0].mxu1 }
 0x158   :  { %v412_v25 = vmul.f32 0.5, %v364_v59  ;;  %v366_v26 = vpop.f32.mrb[1].mxu0  ;;  %v407_v24 = vpop.f32.mrb[1].mxu1 }
 0x159   :  { %v416_v27 = vmul.f32 0.5, %v366_v26  ;;  %v368_v23 = vpop.f32.mrb[2].mxu0  ;;  %v409_v28 = vpop.f32.mrb[2].mxu1  ;;  %v421_v31 = vmul.f32 0.5, %v407_v24 }
 0x15a   :  { %4152 = vtanh.f32 %v412_v25  ;;  %v369_v29 = vpop.f32.mrb[3].mxu0  ;;  %v410_v22 = vpop.f32.mrb[3].mxu1 }
 0x15b   :  { %4154 = vtanh.f32 %v416_v27 }
 0x15c   :  { %4156 = vtanh.f32 %v405_v40 }
 0x15d   :  { %4158 = vtanh.f32 %v421_v31 }
 0x164   :  { %v4153_v30 = vpop.eup %4152 }
 0x165   :  { %v4155_v32 = vpop.eup %4154  ;;  %v414_v21 = vmul.f32 0.5, %v4153_v30 }
 0x166   :  { %v418_v33 = vmul.f32 0.5, %v4155_v32  ;;  %v4157_v20 = vpop.eup %4156 }
 0x167   :  { %v415_v34 = vadd.f32 0.5, %v414_v21  ;;  %v4159_v23 = vpop.eup %4158 }
 0x168   :  { %v419_v19 = vadd.f32 0.5, %v418_v33  ;;  %v423_v25 = vmul.f32 0.5, %v4159_v23 }
 0x169   :  { %v426_v59 = vmul.f32 %v4157_v20, %v415_v34  ;;  %v663_v34 = vld [vmem:[#allocation11 + $0x4] sm:$0xf] }
 0x16a   :  { %v425_v18 = vmul.f32 0.0, %v419_v19  ;;  %v424_v22 = vadd.f32 0.5, %v423_v25 }
 0x16c   :  { %v4944_v17 = vadd.f32 %v426_v59, %v425_v18 }
 0x16e   :  { %4160 = vtanh.f32 %v4944_v17 }
 0x178   :  { %v4161_v26 = vpop.eup %4160 }
 0x179   :  { %v429_v27 = vmul.f32 %v4161_v26, %v424_v22 }
 0x17b   :  { %v430_v24 = vpack.c.bf16 %v429_v27, %v429_v27 }
 0x17d   :  { %431 = vst [vmem:[#allocation16] sm:$0xf] %v430_v24  ;;  %733 = vmatmul.mubr.bf16.vlgmr.msra.gmra.mrb[8].mxu0 %v430_v24  ;;  %774 = vmatmul.mubr.bf16.vlgmr.msra.gmra.mrb[8].mxu1 %v430_v24 }
 0x17e   :  { %786 = vmatpush1.bf16.msra.mxu0 %v4779_v35  ;;  %827 = vmatpush1.bf16.msra.mxu1 %v4782_v36 }
 0x17f   :  { %817 = vmatprep.mubr.bf16.mxu0 %v6072_v37  ;;  %858 = vmatprep.mubr.bf16.mxu1 %v6072_v37 }
 0x180   :  { %926 = vmatprep.subr.bf16.mxu0 %v4786_v38  ;;  %967 = vmatprep.subr.bf16.mxu1 %v4788_v39 }
 0x183   :  { %v589_v18 = vpop.f32.mrb[4].mxu0  ;;  %v630_v19 = vpop.f32.mrb[4].mxu1 }
 0x184   :  { %v637_v20 = vmul.f32 0.5, %v589_v18  ;;  %v591_v21 = vpop.f32.mrb[5].mxu0  ;;  %v632_v28 = vpop.f32.mrb[5].mxu1 }
 0x185   :  { %v641_v29 = vmul.f32 0.5, %v591_v21  ;;  %v593_v30 = vpop.f32.mrb[6].mxu0  ;;  %v634_v31 = vpop.f32.mrb[6].mxu1  ;;  %v646_v40 = vmul.f32 0.5, %v632_v28  ;;  %v6073_v21 = vld [vmem:[#allocation61_spill] sm:$0xff]  ;;  %v6074_v28 = vld [vmem:[#allocation62_spill] sm:$0xff] }
 0x186   :  { %4162 = vtanh.f32 %v637_v20  ;;  %v594_v32 = vpop.f32.mrb[7].mxu0  ;;  %v635_v33 = vpop.f32.mrb[7].mxu1  ;;  %v6075_v30 = vld [vmem:[#allocation63_spill] sm:$0xff]  ;;  %v6076_v31 = vld [vmem:[#allocation64_spill] sm:$0xff] }
 0x187   :  { %4164 = vtanh.f32 %v641_v29  ;;  %v6077_v33 = vld [vmem:[#allocation65_spill] sm:$0xff] }
 0x188   :  { %4166 = vtanh.f32 %v630_v19 }
 0x189   :  { %3962 = vmatmul.mubr.msk.bf16.vlgmr.msra.gmra.mrb[8].mxu0 %vm326_vm0, %v663_v34  ;;  %3963 = vmatmul.mubr.msk.bf16.vlgmr.msra.gmra.mrb[8].mxu1 %vm326_vm0, %v663_v34  ;;  %4168 = vtanh.f32 %v646_v40  ;;  %v6078_v34 = vld [vmem:[#allocation66_spill] sm:$0xff]  ;;  %v6079_v40 = vld [vmem:[#allocation67_spill] sm:$0xff] }
 0x18a   :  { %927 = vmatpush1.bf16.msra.mxu0 %v4796_v41  ;;  %968 = vmatpush1.bf16.msra.mxu1 %v4798_v42 }
 0x18b   :  { %928 = vmatprep.subr.bf16.mxu0 %v4800_v43  ;;  %969 = vmatprep.subr.bf16.mxu1 %v4802_v44 }
 0x18c   :  { %958 = vmatprep.mubr.bf16.mxu0 %v6072_v37  ;;  %999 = vmatprep.mubr.bf16.mxu1 %v6072_v37 }
 0x18e   :  { %929 = vmatpush1.bf16.msra.mxu0 %v4810_v45  ;;  %970 = vmatpush1.bf16.msra.mxu1 %v4812_v46 }
 0x18f   :  { %930 = vmatprep.subr.bf16.mxu0 %v4814_v47  ;;  %971 = vmatprep.subr.bf16.mxu1 %v4816_v48 }
 0x190   :  { %v4163_v59 = vpop.eup %4162 }
 0x191   :  { %v4165_v23 = vpop.eup %4164  ;;  %v639_v25 = vmul.f32 0.5, %v4163_v59  ;;  %v6080_v59 = vld [vmem:[#allocation68_spill] sm:$0xff] }
 0x192   :  { %v643_v22 = vmul.f32 0.5, %v4165_v23  ;;  %931 = vmatpush1.bf16.msra.mxu0 %v4824_v49  ;;  %972 = vmatpush1.bf16.msra.mxu1 %v4826_v50  ;;  %v4167_v27 = vpop.eup %4166 }
 0x193   :  { %v640_v26 = vadd.f32 0.5, %v639_v25  ;;  %932 = vmatprep.subr.bf16.mxu0 %v4828_v51  ;;  %973 = vmatprep.subr.bf16.mxu1 %v4830_v52  ;;  %v4169_v29 = vpop.eup %4168  ;;  %v6081_v25 = vld [vmem:[#allocation69_spill] sm:$0xff] }
 0x194   :  { %v644_v24 = vadd.f32 0.5, %v643_v22  ;;  %v648_v32 = vmul.f32 0.5, %v4169_v29  ;;  %v6082_v22 = vld [vmem:[#allocation70_spill] sm:$0xff]  ;;  %v6100_v29 = vld [vmem:[#allocation59_spill] sm:$0xff] }
 0x195   :  { %v651_v18 = vmul.f32 %v4167_v27, %v640_v26 }
 0x196   :  { %v650_v19 = vmul.f32 0.0, %v644_v24  ;;  %933 = vmatpush1.bf16.msra.mxu0 %v4836_v53  ;;  %974 = vmatpush1.bf16.msra.mxu1 %v4838_v54  ;;  %v649_v23 = vadd.f32 0.5, %v648_v32  ;;  %v6101_v32 = vld [vmem:[#allocation60_spill] sm:$0xff] }
 0x197   :  { %934 = vmatprep.subr.bf16.mxu0 %v4840_v55  ;;  %975 = vmatprep.subr.bf16.mxu1 %v4842_v56 }
 0x198   :  { %v4973_v20 = vadd.f32 %v651_v18, %v650_v19  ;;  %v6083_v18 = vld [vmem:[#allocation71_spill] sm:$0xff] }
 0x199   :  { %v889_v19 = vld [vmem:[#allocation14 + $0x4] sm:$0xf] }
 0x19a   :  { %4170 = vtanh.f32 %v4973_v20  ;;  %661 = vst [vmem:[#allocation23] sm:$0xff] %v4973_v20  ;;  %935 = vmatpush1.bf16.msra.mxu0 %v4848_v57  ;;  %976 = vmatpush1.bf16.msra.mxu1 %v4850_v58 }
 0x19b   :  { %936 = vmatprep.subr.bf16.mxu0 %v6073_v21  ;;  %977 = vmatprep.subr.bf16.mxu1 %v6074_v28 }
 0x19e   :  { %937 = vmatpush1.bf16.msra.mxu0 %v6075_v30  ;;  %978 = vmatpush1.bf16.msra.mxu1 %v6076_v31 }
 0x19f   :  { %938 = vmatprep.subr.bf16.mxu0 %v6077_v33  ;;  %979 = vmatprep.subr.bf16.mxu1 %v6078_v34 }
 0x1a2   :  { %939 = vmatpush1.bf16.msra.mxu0 %v6079_v40  ;;  %980 = vmatpush1.bf16.msra.mxu1 %v6080_v59 }
 0x1a3   :  { %940 = vmatprep.subr.bf16.mxu0 %v6081_v25  ;;  %981 = vmatprep.subr.bf16.mxu1 %v6082_v22 }
 0x1a4   :  { %v4171_v26 = vpop.eup %4170 }
 0x1a5   :  { %v654_v27 = vmul.f32 %v4171_v26, %v649_v23 }
 0x1a6   :  { %941 = vmatpush1.bf16.msra.mxu0 %v4884_v62  ;;  %982 = vmatpush1.bf16.msra.mxu1 %v4886_v63 }
 0x1a7   :  { %660 = vst [vmem:[#allocation22] sm:$0xff] %v654_v27  ;;  %v655_v24 = vpack.c.bf16 %v654_v27, %v654_v27  ;;  %1011 = vmatprep.subr.bf16.mxu0 %v6083_v18  ;;  %1052 = vmatprep.subr.bf16.mxu1 %v4890_v61 }
 0x1a9   :  { %656 = vst [vmem:[#allocation17] sm:$0xf] %v655_v24  ;;  %959 = vmatmul.mubr.bf16.vlgmr.msra.gmra.mrb[12].mxu0 %v655_v24  ;;  %1000 = vmatmul.mubr.bf16.vlgmr.msra.gmra.mrb[12].mxu1 %v655_v24 }
 0x1aa   :  { %1012 = vmatpush1.bf16.msra.mxu0 %v4895_v10  ;;  %1053 = vmatpush1.bf16.msra.mxu1 %v4898_v60 }
 0x1ab   :  { %1043 = vmatprep.mubr.bf16.mxu0 %v6072_v37  ;;  %1084 = vmatprep.mubr.bf16.mxu1 %v6072_v37 }
 0x1ac   :  { %1152 = vmatprep.subr.bf16.mxu0 %v4676_v0  ;;  %1193 = vmatprep.subr.bf16.mxu1 %v4678_v1  ;;  %v6084_v0 = vld [vmem:[#allocation43_spill] sm:$0xff]  ;;  %v6085_v1 = vld [vmem:[#allocation44_spill] sm:$0xff] }
 0x1b5   :  { %3964 = vmatmul.mubr.msk.bf16.vlgmr.msra.gmra.mrb[12].mxu0 %vm326_vm0, %v889_v19  ;;  %3965 = vmatmul.mubr.msk.bf16.vlgmr.msra.gmra.mrb[12].mxu1 %vm326_vm0, %v889_v19 }
 0x1b6   :  { %1153 = vmatpush1.bf16.msra.mxu0 %v4680_v2  ;;  %1194 = vmatpush1.bf16.msra.mxu1 %v4684_v3  ;;  %v6086_v2 = vld [vmem:[#allocation45_spill] sm:$0xff]  ;;  %v6087_v3 = vld [vmem:[#allocation46_spill] sm:$0xff] }
 0x1b7   :  { %1154 = vmatprep.subr.bf16.mxu0 %v4686_v4  ;;  %1195 = vmatprep.subr.bf16.mxu1 %v4688_v5  ;;  %v6088_v4 = vld [vmem:[#allocation47_spill] sm:$0xff]  ;;  %v6089_v5 = vld [vmem:[#allocation48_spill] sm:$0xff] }
 0x1b8   :  { %1184 = vmatprep.mubr.bf16.mxu0 %v6072_v37  ;;  %1225 = vmatprep.mubr.bf16.mxu1 %v6072_v37 }
 0x1ba   :  { %1155 = vmatpush1.bf16.msra.mxu0 %v4694_v6  ;;  %1196 = vmatpush1.bf16.msra.mxu1 %v4696_v7  ;;  %v6090_v6 = vld [vmem:[#allocation49_spill] sm:$0xff]  ;;  %v6091_v7 = vld [vmem:[#allocation50_spill] sm:$0xff] }
 0x1bb   :  { %1156 = vmatprep.subr.bf16.mxu0 %v4698_v8  ;;  %1197 = vmatprep.subr.bf16.mxu1 %v4700_v9  ;;  %v6092_v8 = vld [vmem:[#allocation51_spill] sm:$0xff]  ;;  %v6093_v9 = vld [vmem:[#allocation52_spill] sm:$0xff] }
 0x1be   :  { %1157 = vmatpush1.bf16.msra.mxu0 %v4708_v11  ;;  %1198 = vmatpush1.bf16.msra.mxu1 %v4710_v12  ;;  %v6094_v11 = vld [vmem:[#allocation53_spill] sm:$0xff]  ;;  %v6095_v12 = vld [vmem:[#allocation54_spill] sm:$0xff] }
 0x1bf   :  { %1158 = vmatprep.subr.bf16.mxu0 %v4712_v13  ;;  %1199 = vmatprep.subr.bf16.mxu1 %v4714_v14  ;;  %v6096_v13 = vld [vmem:[#allocation55_spill] sm:$0xff]  ;;  %v6097_v14 = vld [vmem:[#allocation56_spill] sm:$0xff] }
 0x1c2   :  { %1159 = vmatpush1.bf16.msra.mxu0 %v4720_v15  ;;  %1200 = vmatpush1.bf16.msra.mxu1 %v4722_v16  ;;  %v6098_v15 = vld [vmem:[#allocation57_spill] sm:$0xff]  ;;  %v6099_v16 = vld [vmem:[#allocation58_spill] sm:$0xff] }
 0x1c3   :  { %1160 = vmatprep.subr.bf16.mxu0 %v6084_v0  ;;  %1201 = vmatprep.subr.bf16.mxu1 %v6085_v1 }
 0x1c6   :  { %1161 = vmatpush1.bf16.msra.mxu0 %v6086_v2  ;;  %1202 = vmatpush1.bf16.msra.mxu1 %v6087_v3 }
 0x1c7   :  { %1162 = vmatprep.subr.bf16.mxu0 %v6088_v4  ;;  %1203 = vmatprep.subr.bf16.mxu1 %v6089_v5 }
 0x1ca   :  { %1163 = vmatpush1.bf16.msra.mxu0 %v6090_v6  ;;  %1204 = vmatpush1.bf16.msra.mxu1 %v6091_v7 }
 0x1cb   :  { %1164 = vmatprep.subr.bf16.mxu0 %v6092_v8  ;;  %1205 = vmatprep.subr.bf16.mxu1 %v6093_v9 }
 0x1ce   :  { %1165 = vmatpush1.bf16.msra.mxu0 %v6094_v11  ;;  %1206 = vmatpush1.bf16.msra.mxu1 %v6095_v12 }
 0x1cf   :  { %1166 = vmatprep.subr.bf16.mxu0 %v6096_v13  ;;  %1207 = vmatprep.subr.bf16.mxu1 %v6097_v14 }
 0x1d2   :  { %1167 = vmatpush1.bf16.msra.mxu0 %v6098_v15  ;;  %1208 = vmatpush1.bf16.msra.mxu1 %v6099_v16 }
 0x1d3   :  { %1237 = vmatprep.subr.bf16.mxu0 %v6100_v29  ;;  %1278 = vmatprep.subr.bf16.mxu1 %v6101_v32 }
 0x25c   :  { %v819_v23 = vpop.f32.mrb[8].mxu0  ;;  %v860_v26 = vpop.f32.mrb[8].mxu1 }
 0x25d   :  { %v867_v27 = vmul.f32 0.5, %v819_v23  ;;  %v821_v24 = vpop.f32.mrb[9].mxu0  ;;  %v862_v19 = vpop.f32.mrb[9].mxu1 }
 0x25e   :  { %v871_v0 = vmul.f32 0.5, %v821_v24  ;;  %v823_v1 = vpop.f32.mrb[10].mxu0  ;;  %v864_v2 = vpop.f32.mrb[10].mxu1  ;;  %v876_v5 = vmul.f32 0.5, %v862_v19 }
 0x25f   :  { %4172 = vtanh.f32 %v867_v27  ;;  %v824_v3 = vpop.f32.mrb[11].mxu0  ;;  %v865_v4 = vpop.f32.mrb[11].mxu1 }
 0x260   :  { %4174 = vtanh.f32 %v871_v0 }
 0x261   :  { %4176 = vtanh.f32 %v860_v26 }
 0x262   :  { %4178 = vtanh.f32 %v876_v5 }
 0x269   :  { %v4173_v6 = vpop.eup %4172 }
 0x26a   :  { %v4175_v7 = vpop.eup %4174  ;;  %v869_v8 = vmul.f32 0.5, %v4173_v6 }
 0x26b   :  { %v873_v9 = vmul.f32 0.5, %v4175_v7  ;;  %v4177_v12 = vpop.eup %4176 }
 0x26c   :  { %v870_v11 = vadd.f32 0.5, %v869_v8  ;;  %v4179_v29 = vpop.eup %4178  ;;  %v5153_v8 = vld [vmem:[#allocation7 + $0xa8] sm:$0xff] }
 0x26d   :  { %v874_v13 = vadd.f32 0.5, %v873_v9  ;;  %v878_v32 = vmul.f32 0.5, %v4179_v29  ;;  %6103 = vst [vmem:[#allocation62_spill] sm:$0xff] %v5153_v8  ;;  %v5155_v9 = vld [vmem:[#allocation7 + $0xb8] sm:$0xff]  ;;  %v5173_v29 = vld [vmem:[#allocation7 + $0xd0] sm:$0xff] }
 0x26e   :  { %v881_v14 = vmul.f32 %v4177_v12, %v870_v11  ;;  %6104 = vst [vmem:[#allocation63_spill] sm:$0xff] %v5155_v9  ;;  %v5159_v11 = vld [vmem:[#allocation7 + $0xa0] sm:$0xff]  ;;  %v5161_v12 = vld [vmem:[#allocation7 + $0xb0] sm:$0xff]  ;;  %6110 = vst [vmem:[#allocation69_spill] sm:$0xff] %v5173_v29 }
 0x26f   :  { %v880_v15 = vmul.f32 %v874_v13, %v4944_v17  ;;  %v879_v23 = vadd.f32 0.5, %v878_v32  ;;  %6105 = vst [vmem:[#allocation64_spill] sm:$0xff] %v5159_v11  ;;  %6106 = vst [vmem:[#allocation65_spill] sm:$0xff] %v5161_v12  ;;  %v5165_v13 = vld [vmem:[#allocation7 + $0xc8] sm:$0xff] }
 0x270   :  { %6107 = vst [vmem:[#allocation66_spill] sm:$0xff] %v5165_v13  ;;  %v5177_v32 = vld [vmem:[#allocation7 + $0xe8] sm:$0xff] }
 0x271   :  { %v5036_v16 = vadd.f32 %v881_v14, %v880_v15  ;;  %v5167_v14 = vld [vmem:[#allocation7 + $0xd8] sm:$0xff]  ;;  %v5171_v15 = vld [vmem:[#allocation7 + $0xc0] sm:$0xff]  ;;  %6111 = vst [vmem:[#allocation70_spill] sm:$0xff] %v5177_v32 }
 0x272   :  { %6108 = vst [vmem:[#allocation67_spill] sm:$0xff] %v5167_v14  ;;  %6109 = vst [vmem:[#allocation68_spill] sm:$0xff] %v5171_v15 }
 0x273   :  { %4180 = vtanh.f32 %v5036_v16 }
 0x27d   :  { %v4181_v26 = vpop.eup %4180 }
 0x27e   :  { %v884_v27 = vmul.f32 %v4181_v26, %v879_v23  ;;  %v5179_v23 = vld [vmem:[#allocation7 + $0xf8] sm:$0xff]  ;;  %v5183_v26 = vld [vmem:[#allocation7 + $0xe0] sm:$0xff] }
 0x27f   :  { %6112 = vst [vmem:[#allocation71_spill] sm:$0xff] %v5179_v23  ;;  %6113 = vst [vmem:[#allocation43_spill] sm:$0xff] %v5183_v26 }
 0x280   :  { %v885_v24 = vpack.c.bf16 %v884_v27, %v884_v27  ;;  %v5185_v27 = vld [vmem:[#allocation7 + $0xf0] sm:$0xff] }
 0x281   :  { %6114 = vst [vmem:[#allocation44_spill] sm:$0xff] %v5185_v27 }
 0x282   :  { %887 = vst [vmem:[#allocation16 + $0x4] sm:$0xf] %v885_v24  ;;  %1185 = vmatmul.mubr.bf16.vlgmr.msra.gmra.mrb[16].mxu0 %v885_v24  ;;  %1226 = vmatmul.mubr.bf16.vlgmr.msra.gmra.mrb[16].mxu1 %v885_v24  ;;  %v5189_v24 = vld [vmem:[#allocation6 + $0x8] sm:$0xff] }
 0x283   :  { %1238 = vmatpush1.bf16.msra.mxu0 %v4779_v35  ;;  %1279 = vmatpush1.bf16.msra.mxu1 %v4782_v36  ;;  %v1115_v36 = vld [vmem:[#allocation11 + $0x8] sm:$0xf]  ;;  %6115 = vst [vmem:[#allocation45_spill] sm:$0xff] %v5189_v24 }
 0x284   :  { %1269 = vmatprep.mubr.bf16.mxu0 %v6072_v37  ;;  %1310 = vmatprep.mubr.bf16.mxu1 %v6072_v37 }
 0x285   :  { %1378 = vmatprep.subr.bf16.mxu0 %v4786_v38  ;;  %1419 = vmatprep.subr.bf16.mxu1 %v4788_v39 }
 0x288   :  { %v1045_v17 = vpop.f32.mrb[12].mxu0  ;;  %v1086_v19 = vpop.f32.mrb[12].mxu1 }
 0x289   :  { %v1093_v0 = vmul.f32 0.5, %v1045_v17  ;;  %v1047_v1 = vpop.f32.mrb[13].mxu0  ;;  %v1088_v2 = vpop.f32.mrb[13].mxu1  ;;  %v5192_v17 = vld [vmem:[#allocation6 + $0x18] sm:$0xff] }
 0x28a   :  { %v1097_v3 = vmul.f32 0.5, %v1047_v1  ;;  %v1049_v4 = vpop.f32.mrb[14].mxu0  ;;  %v1090_v5 = vpop.f32.mrb[14].mxu1  ;;  %v1102_v38 = vmul.f32 0.5, %v1088_v2  ;;  %6116 = vst [vmem:[#allocation46_spill] sm:$0xff] %v5192_v17 }
 0x28b   :  { %4182 = vtanh.f32 %v1093_v0  ;;  %v1050_v35 = vpop.f32.mrb[15].mxu0  ;;  %v1091_v6 = vpop.f32.mrb[15].mxu1 }
 0x28c   :  { %4184 = vtanh.f32 %v1097_v3 }
 0x28d   :  { %4186 = vtanh.f32 %v1086_v19 }
 0x28e   :  { %3966 = vmatmul.mubr.msk.bf16.vlgmr.msra.gmra.mrb[16].mxu0 %vm326_vm0, %v1115_v36  ;;  %3967 = vmatmul.mubr.msk.bf16.vlgmr.msra.gmra.mrb[16].mxu1 %vm326_vm0, %v1115_v36  ;;  %4188 = vtanh.f32 %v1102_v38 }
 0x28f   :  { %1379 = vmatpush1.bf16.msra.mxu0 %v4796_v41  ;;  %1420 = vmatpush1.bf16.msra.mxu1 %v4798_v42 }
 0x290   :  { %1380 = vmatprep.subr.bf16.mxu0 %v4800_v43  ;;  %1421 = vmatprep.subr.bf16.mxu1 %v4802_v44 }
 0x291   :  { %1410 = vmatprep.mubr.bf16.mxu0 %v6072_v37  ;;  %1451 = vmatprep.mubr.bf16.mxu1 %v6072_v37 }
 0x293   :  { %1381 = vmatpush1.bf16.msra.mxu0 %v4810_v45  ;;  %1422 = vmatpush1.bf16.msra.mxu1 %v4812_v46 }
 0x294   :  { %1382 = vmatprep.subr.bf16.mxu0 %v4814_v47  ;;  %1423 = vmatprep.subr.bf16.mxu1 %v4816_v48 }
 0x295   :  { %v4183_v39 = vpop.eup %4182 }
 0x296   :  { %v4185_v41 = vpop.eup %4184  ;;  %v1095_v42 = vmul.f32 0.5, %v4183_v39 }
 0x297   :  { %v1099_v7 = vmul.f32 0.5, %v4185_v41  ;;  %1383 = vmatpush1.bf16.msra.mxu0 %v4824_v49  ;;  %1424 = vmatpush1.bf16.msra.mxu1 %v4826_v50  ;;  %v4187_v44 = vpop.eup %4186 }
 0x298   :  { %v1096_v43 = vadd.f32 0.5, %v1095_v42  ;;  %1384 = vmatprep.subr.bf16.mxu0 %v4828_v51  ;;  %1425 = vmatprep.subr.bf16.mxu1 %v4830_v52  ;;  %v4189_v49 = vpop.eup %4188 }
 0x299   :  { %v1100_v45 = vadd.f32 0.5, %v1099_v7  ;;  %v1104_v50 = vmul.f32 0.5, %v4189_v49 }
 0x29a   :  { %v1107_v46 = vmul.f32 %v4187_v44, %v1096_v43 }
 0x29b   :  { %v1106_v47 = vmul.f32 %v1100_v45, %v4973_v20  ;;  %1385 = vmatpush1.bf16.msra.mxu0 %v4836_v53  ;;  %1426 = vmatpush1.bf16.msra.mxu1 %v4838_v54  ;;  %v1105_v51 = vadd.f32 0.5, %v1104_v50  ;;  %v5117_v20 = vld [vmem:[#allocation7 + $0x48] sm:$0xff] }
 0x29c   :  { %1386 = vmatprep.subr.bf16.mxu0 %v4840_v55  ;;  %1427 = vmatprep.subr.bf16.mxu1 %v4842_v56  ;;  %v1341_v55 = vld [vmem:[#allocation14 + $0x8] sm:$0xf] }
 0x29d   :  { %v5066_v48 = vadd.f32 %v1107_v46, %v1106_v47  ;;  %v5093_v56 = vld [vmem:[#allocation7 + $0x8] sm:$0xff] }
 0x29f   :  { %4190 = vtanh.f32 %v5066_v48  ;;  %1387 = vmatpush1.bf16.msra.mxu0 %v4848_v57  ;;  %1428 = vmatpush1.bf16.msra.mxu1 %v4850_v58  ;;  %v5095_v57 = vld [vmem:[#allocation7 + $0x18] sm:$0xff]  ;;  %v5101_v58 = vld [vmem:[#allocation7 + $0x10] sm:$0xff] }
 0x2a0   :  { %1388 = vmatprep.subr.bf16.mxu0 %v6073_v21  ;;  %1429 = vmatprep.subr.bf16.mxu1 %v6074_v28  ;;  %v5119_v21 = vld [vmem:[#allocation7 + $0x58] sm:$0xff]  ;;  %v5123_v28 = vld [vmem:[#allocation7 + $0x40] sm:$0xff] }
 0x2a3   :  { %1389 = vmatpush1.bf16.msra.mxu0 %v6075_v30  ;;  %1430 = vmatpush1.bf16.msra.mxu1 %v6076_v31  ;;  %v5125_v30 = vld [vmem:[#allocation7 + $0x50] sm:$0xff]  ;;  %v5129_v31 = vld [vmem:[#allocation7 + $0x68] sm:$0xff] }
 0x2a4   :  { %1390 = vmatprep.subr.bf16.mxu0 %v6077_v33  ;;  %1431 = vmatprep.subr.bf16.mxu1 %v6078_v34  ;;  %v5131_v33 = vld [vmem:[#allocation7 + $0x78] sm:$0xff]  ;;  %v5135_v34 = vld [vmem:[#allocation7 + $0x60] sm:$0xff] }
 0x2a7   :  { %1391 = vmatpush1.bf16.msra.mxu0 %v6079_v40  ;;  %1432 = vmatpush1.bf16.msra.mxu1 %v6080_v59  ;;  %v5137_v40 = vld [vmem:[#allocation7 + $0x70] sm:$0xff]  ;;  %v5141_v59 = vld [vmem:[#allocation7 + $0x88] sm:$0xff] }
 0x2a8   :  { %1392 = vmatprep.subr.bf16.mxu0 %v6081_v25  ;;  %1433 = vmatprep.subr.bf16.mxu1 %v6082_v22  ;;  %v5143_v25 = vld [vmem:[#allocation7 + $0x98] sm:$0xff]  ;;  %v5147_v22 = vld [vmem:[#allocation7 + $0x80] sm:$0xff] }
 0x2a9   :  { %v4191_v52 = vpop.eup %4190 }
 0x2aa   :  { %v1110_v53 = vmul.f32 %v4191_v52, %v1105_v51 }
 0x2ab   :  { %1393 = vmatpush1.bf16.msra.mxu0 %v4884_v62  ;;  %1434 = vmatpush1.bf16.msra.mxu1 %v4886_v63  ;;  %v5111_v62 = vld [vmem:[#allocation7 + $0x20] sm:$0xff]  ;;  %v5113_v63 = vld [vmem:[#allocation7 + $0x30] sm:$0xff] }
 0x2ac   :  { %v1111_v54 = vpack.c.bf16 %v1110_v53, %v1110_v53  ;;  %1463 = vmatprep.subr.bf16.mxu0 %v6083_v18  ;;  %1504 = vmatprep.subr.bf16.mxu1 %v4890_v61  ;;  %v5107_v61 = vld [vmem:[#allocation7 + $0x38] sm:$0xff]  ;;  %v5149_v18 = vld [vmem:[#allocation7 + $0x90] sm:$0xff] }
 0x2ad   :  { %6102 = vst [vmem:[#allocation61_spill] sm:$0xff] %v5149_v18 }
 0x2ae   :  { %1113 = vst [vmem:[#allocation17 + $0x4] sm:$0xf] %v1111_v54  ;;  %1411 = vmatmul.mubr.bf16.vlgmr.msra.gmra.mrb[20].mxu0 %v1111_v54  ;;  %1452 = vmatmul.mubr.bf16.vlgmr.msra.gmra.mrb[20].mxu1 %v1111_v54 }
 0x2af   :  { %1464 = vmatpush1.bf16.msra.mxu0 %v4895_v10  ;;  %1505 = vmatpush1.bf16.msra.mxu1 %v4898_v60  ;;  %v5099_v10 = vld [vmem:[#allocation7] sm:$0xff]  ;;  %v5105_v60 = vld [vmem:[#allocation7 + $0x28] sm:$0xff] }
 0x2b0   :  { %1495 = vmatprep.mubr.bf16.mxu0 %v6072_v37  ;;  %1536 = vmatprep.mubr.bf16.mxu1 %v6072_v37 }
 0x2b1   :  { %1604 = vmatprep.subr.bf16.mxu0 %v5093_v56  ;;  %1645 = vmatprep.subr.bf16.mxu1 %v5095_v57 }
 0x2ba   :  { %3968 = vmatmul.mubr.msk.bf16.vlgmr.msra.gmra.mrb[20].mxu0 %vm326_vm0, %v1341_v55  ;;  %3969 = vmatmul.mubr.msk.bf16.vlgmr.msra.gmra.mrb[20].mxu1 %vm326_vm0, %v1341_v55 }
 0x2bb   :  { %1636 = vmatprep.mubr.bf16.mxu0 %v6072_v37  ;;  %1677 = vmatprep.mubr.bf16.mxu1 %v6072_v37 }
 0x2bc   :  { %1605 = vmatpush1.bf16.msra.mxu0 %v5099_v10  ;;  %1646 = vmatpush1.bf16.msra.mxu1 %v5101_v58 }
 0x2bd   :  { %1606 = vmatprep.subr.bf16.mxu0 %v5105_v60  ;;  %1647 = vmatprep.subr.bf16.mxu1 %v5107_v61 }
 0x2c0   :  { %1607 = vmatpush1.bf16.msra.mxu0 %v5111_v62  ;;  %1648 = vmatpush1.bf16.msra.mxu1 %v5113_v63 }
 0x2c1   :  { %1608 = vmatprep.subr.bf16.mxu0 %v5117_v20  ;;  %1649 = vmatprep.subr.bf16.mxu1 %v5119_v21 }
 0x2c4   :  { %1609 = vmatpush1.bf16.msra.mxu0 %v5123_v28  ;;  %1650 = vmatpush1.bf16.msra.mxu1 %v5125_v30 }
 0x2c5   :  { %1610 = vmatprep.subr.bf16.mxu0 %v5129_v31  ;;  %1651 = vmatprep.subr.bf16.mxu1 %v5131_v33 }
 0x2c8   :  { %1611 = vmatpush1.bf16.msra.mxu0 %v5135_v34  ;;  %1652 = vmatpush1.bf16.msra.mxu1 %v5137_v40 }
 0x2c9   :  { %1612 = vmatprep.subr.bf16.mxu0 %v5141_v59  ;;  %1653 = vmatprep.subr.bf16.mxu1 %v5143_v25 }
 0x2cc   :  { %1613 = vmatpush1.bf16.msra.mxu0 %v5147_v22  ;;  %1654 = vmatpush1.bf16.msra.mxu1 %v5149_v18 }
 0x2cd   :  { %1614 = vmatprep.subr.bf16.mxu0 %v5153_v8  ;;  %1655 = vmatprep.subr.bf16.mxu1 %v5155_v9 }
 0x2d0   :  { %1615 = vmatpush1.bf16.msra.mxu0 %v5159_v11  ;;  %1656 = vmatpush1.bf16.msra.mxu1 %v5161_v12 }
 0x2d1   :  { %1616 = vmatprep.subr.bf16.mxu0 %v5165_v13  ;;  %1657 = vmatprep.subr.bf16.mxu1 %v5167_v14 }
 0x2d4   :  { %1617 = vmatpush1.bf16.msra.mxu0 %v5171_v15  ;;  %1658 = vmatpush1.bf16.msra.mxu1 %v5173_v29 }
 0x2d5   :  { %1618 = vmatprep.subr.bf16.mxu0 %v5177_v32  ;;  %1659 = vmatprep.subr.bf16.mxu1 %v5179_v23 }
 0x2d8   :  { %1619 = vmatpush1.bf16.msra.mxu0 %v5183_v26  ;;  %1660 = vmatpush1.bf16.msra.mxu1 %v5185_v27 }
 0x2d9   :  { %1689 = vmatprep.subr.bf16.mxu0 %v5189_v24  ;;  %1730 = vmatprep.subr.bf16.mxu1 %v5192_v17 }
 0x361   :  { %v1271_v19 = vpop.f32.mrb[16].mxu0  ;;  %v1312_v0 = vpop.f32.mrb[16].mxu1 }
 0x362   :  { %v1319_v1 = vmul.f32 0.5, %v1271_v19  ;;  %v1273_v2 = vpop.f32.mrb[17].mxu0  ;;  %v1314_v3 = vpop.f32.mrb[17].mxu1  ;;  %v5199_v19 = vld [vmem:[#allocation6] sm:$0xff] }
 0x363   :  { %v1323_v4 = vmul.f32 0.5, %v1273_v2  ;;  %v1275_v5 = vpop.f32.mrb[18].mxu0  ;;  %v1316_v35 = vpop.f32.mrb[18].mxu1  ;;  %v1328_v38 = vmul.f32 0.5, %v1314_v3 }
 0x364   :  { %4192 = vtanh.f32 %v1319_v1  ;;  %v1276_v6 = vpop.f32.mrb[19].mxu0  ;;  %v1317_v36 = vpop.f32.mrb[19].mxu1  ;;  %v5203_v1 = vld [vmem:[#allocation9 + $0x8] sm:$0xff] }
 0x365   :  { %4194 = vtanh.f32 %v1323_v4 }
 0x366   :  { %4196 = vtanh.f32 %v1312_v0  ;;  %v5201_v0 = vld [vmem:[#allocation6 + $0x10] sm:$0xff] }
 0x367   :  { %4198 = vtanh.f32 %v1328_v38 }
 0x36e   :  { %v4193_v39 = vpop.eup %4192 }
 0x36f   :  { %v4195_v41 = vpop.eup %4194  ;;  %v1321_v42 = vmul.f32 0.5, %v4193_v39 }
 0x370   :  { %v1325_v7 = vmul.f32 0.5, %v4195_v41  ;;  %v4197_v44 = vpop.eup %4196 }
 0x371   :  { %v1322_v43 = vadd.f32 0.5, %v1321_v42  ;;  %v4199_v50 = vpop.eup %4198  ;;  %v1567_v42 = vld [vmem:[#allocation11 + $0xc] sm:$0xf] }
 0x372   :  { %v1326_v45 = vadd.f32 0.5, %v1325_v7  ;;  %v1330_v51 = vmul.f32 0.5, %v4199_v50  ;;  %v5213_v7 = vld [vmem:[#allocation9] sm:$0xff]  ;;  %v5231_v50 = vld [vmem:[#allocation9 + $0x48] sm:$0xff] }
 0x373   :  { %v1333_v46 = vmul.f32 %v4197_v44, %v1322_v43  ;;  %v5215_v43 = vld [vmem:[#allocation9 + $0x10] sm:$0xff]  ;;  %v5217_v44 = vld [vmem:[#allocation9 + $0x28] sm:$0xff] }
 0x374   :  { %v1332_v47 = vmul.f32 %v1326_v45, %v5036_v16  ;;  %v1331_v52 = vadd.f32 0.5, %v1330_v51  ;;  %v5205_v16 = vld [vmem:[#allocation9 + $0x18] sm:$0xff] }
 0x375   :  { %v5219_v45 = vld [vmem:[#allocation9 + $0x38] sm:$0xff] }
 0x376   :  { %v5196_v49 = vadd.f32 %v1333_v46, %v1332_v47  ;;  %v5227_v46 = vld [vmem:[#allocation9 + $0x20] sm:$0xff]  ;;  %v5229_v47 = vld [vmem:[#allocation9 + $0x30] sm:$0xff]  ;;  %v5233_v51 = vld [vmem:[#allocation9 + $0x58] sm:$0xff] }
 0x378   :  { %4200 = vtanh.f32 %v5196_v49 }
 0x382   :  { %v4201_v53 = vpop.eup %4200 }
 0x383   :  { %v1336_v54 = vmul.f32 %v4201_v53, %v1331_v52  ;;  %v5241_v53 = vld [vmem:[#allocation9 + $0x40] sm:$0xff] }
 0x385   :  { %v1337_v55 = vpack.c.bf16 %v1336_v54, %v1336_v54  ;;  %v5243_v54 = vld [vmem:[#allocation9 + $0x50] sm:$0xff] }
 0x386   :  { %6117 = vst [vmem:[#allocation47_spill] sm:$0xff] %v5243_v54 }
 0x387   :  { %1339 = vst [vmem:[#allocation16 + $0x8] sm:$0xf] %v1337_v55  ;;  %1637 = vmatmul.mubr.bf16.vlgmr.msra.gmra.mrb[24].mxu0 %v1337_v55  ;;  %1678 = vmatmul.mubr.bf16.vlgmr.msra.gmra.mrb[24].mxu1 %v1337_v55 }
 0x388   :  { %1690 = vmatpush1.bf16.msra.mxu0 %v5199_v19  ;;  %1731 = vmatpush1.bf16.msra.mxu1 %v5201_v0 }
 0x389   :  { %1721 = vmatprep.mubr.bf16.mxu0 %v6072_v37  ;;  %1762 = vmatprep.mubr.bf16.mxu1 %v6072_v37 }
 0x38a   :  { %1830 = vmatprep.subr.bf16.mxu0 %v5203_v1  ;;  %1871 = vmatprep.subr.bf16.mxu1 %v5205_v16 }
 0x38d   :  { %v1497_v2 = vpop.f32.mrb[20].mxu0  ;;  %v1538_v3 = vpop.f32.mrb[20].mxu1 }
 0x38e   :  { %v1545_v4 = vmul.f32 0.5, %v1497_v2  ;;  %v1499_v5 = vpop.f32.mrb[21].mxu0  ;;  %v1540_v35 = vpop.f32.mrb[21].mxu1  ;;  %v5245_v2 = vld [vmem:[#allocation9 + $0x68] sm:$0xff] }
 0x38f   :  { %v1549_v6 = vmul.f32 0.5, %v1499_v5  ;;  %v1501_v36 = vpop.f32.mrb[22].mxu0  ;;  %v1542_v38 = vpop.f32.mrb[22].mxu1  ;;  %v1554_v52 = vmul.f32 0.5, %v1540_v35  ;;  %6118 = vst [vmem:[#allocation48_spill] sm:$0xff] %v5245_v2 }
 0x390   :  { %4202 = vtanh.f32 %v1545_v4  ;;  %v1502_v39 = vpop.f32.mrb[23].mxu0  ;;  %v1543_v41 = vpop.f32.mrb[23].mxu1  ;;  %v5253_v36 = vld [vmem:[#allocation9 + $0x60] sm:$0xff]  ;;  %v5255_v38 = vld [vmem:[#allocation9 + $0x70] sm:$0xff] }
 0x391   :  { %4204 = vtanh.f32 %v1549_v6 }
 0x392   :  { %4206 = vtanh.f32 %v1538_v3  ;;  %v5247_v3 = vld [vmem:[#allocation9 + $0x78] sm:$0xff] }
 0x393   :  { %3970 = vmatmul.mubr.msk.bf16.vlgmr.msra.gmra.mrb[24].mxu0 %vm326_vm0, %v1567_v42  ;;  %3971 = vmatmul.mubr.msk.bf16.vlgmr.msra.gmra.mrb[24].mxu1 %vm326_vm0, %v1567_v42  ;;  %6119 = vst [vmem:[#allocation49_spill] sm:$0xff] %v5247_v3  ;;  %4208 = vtanh.f32 %v1554_v52  ;;  %v5257_v42 = vld [vmem:[#allocation9 + $0x88] sm:$0xff] }
 0x394   :  { %1831 = vmatpush1.bf16.msra.mxu0 %v5213_v7  ;;  %1872 = vmatpush1.bf16.msra.mxu1 %v5215_v43  ;;  %6120 = vst [vmem:[#allocation50_spill] sm:$0xff] %v5257_v42 }
 0x395   :  { %1832 = vmatprep.subr.bf16.mxu0 %v5217_v44  ;;  %1873 = vmatprep.subr.bf16.mxu1 %v5219_v45 }
 0x396   :  { %1862 = vmatprep.mubr.bf16.mxu0 %v6072_v37  ;;  %1903 = vmatprep.mubr.bf16.mxu1 %v6072_v37 }
 0x398   :  { %1833 = vmatpush1.bf16.msra.mxu0 %v5227_v46  ;;  %1874 = vmatpush1.bf16.msra.mxu1 %v5229_v47 }
 0x399   :  { %1834 = vmatprep.subr.bf16.mxu0 %v5231_v50  ;;  %1875 = vmatprep.subr.bf16.mxu1 %v5233_v51 }
 0x39a   :  { %v4203_v55 = vpop.eup %4202 }
 0x39b   :  { %v4205_v4 = vpop.eup %4204  ;;  %v1547_v5 = vmul.f32 0.5, %v4203_v55  ;;  %v5259_v55 = vld [vmem:[#allocation9 + $0x98] sm:$0xff] }
 0x39c   :  { %v1551_v35 = vmul.f32 0.5, %v4205_v4  ;;  %1835 = vmatpush1.bf16.msra.mxu0 %v5241_v53  ;;  %1876 = vmatpush1.bf16.msra.mxu1 %v5243_v54  ;;  %v4207_v39 = vpop.eup %4206  ;;  %6121 = vst [vmem:[#allocation51_spill] sm:$0xff] %v5259_v55  ;;  %v5274_v54 = vld [vmem:[#allocation9 + $0xb8] sm:$0xff] }
 0x39d   :  { %v1548_v6 = vadd.f32 0.5, %v1547_v5  ;;  %1836 = vmatprep.subr.bf16.mxu0 %v5245_v2  ;;  %1877 = vmatprep.subr.bf16.mxu1 %v5247_v3  ;;  %v5266_v5 = vld [vmem:[#allocation9 + $0x80] sm:$0xff]  ;;  %v5268_v3 = vld [vmem:[#allocation9 + $0x90] sm:$0xff]  ;;  %v5272_v2 = vld [vmem:[#allocation9 + $0xa8] sm:$0xff]  ;;  %6125 = vst [vmem:[#allocation55_spill] sm:$0xff] %v5274_v54 }
 0x39e   :  { %v1552_v41 = vadd.f32 0.5, %v1551_v35  ;;  %6122 = vst [vmem:[#allocation52_spill] sm:$0xff] %v5266_v5  ;;  %6123 = vst [vmem:[#allocation53_spill] sm:$0xff] %v5268_v3 }
 0x39f   :  { %v1559_v52 = vmul.f32 %v4207_v39, %v1548_v6  ;;  %6124 = vst [vmem:[#allocation54_spill] sm:$0xff] %v5272_v2  ;;  %v5283_v6 = vld [vmem:[#allocation9 + $0xb0] sm:$0xff]  ;;  %v4209_v39 = vpop.eup %4208 }
 0x3a0   :  { %v1558_v4 = vmul.f32 %v1552_v41, %v5066_v48  ;;  %1837 = vmatpush1.bf16.msra.mxu0 %v5253_v36  ;;  %1878 = vmatpush1.bf16.msra.mxu1 %v5255_v38  ;;  %v5281_v48 = vld [vmem:[#allocation9 + $0xa0] sm:$0xff]  ;;  %6127 = vst [vmem:[#allocation57_spill] sm:$0xff] %v5283_v6  ;;  %v5285_v41 = vld [vmem:[#allocation9 + $0xc8] sm:$0xff] }
 0x3a1   :  { %1838 = vmatprep.subr.bf16.mxu0 %v5257_v42  ;;  %1879 = vmatprep.subr.bf16.mxu1 %v5259_v55  ;;  %6126 = vst [vmem:[#allocation56_spill] sm:$0xff] %v5281_v48  ;;  %6128 = vst [vmem:[#allocation58_spill] sm:$0xff] %v5285_v41  ;;  %v5311_v55 = vld [vmem:[#allocation8 + $0x18] sm:$0xff] }
 0x3a2   :  { %v5270_v35 = vadd.f32 %v1559_v52, %v1558_v4  ;;  %v5287_v52 = vld [vmem:[#allocation9 + $0xd8] sm:$0xff]  ;;  %v1556_v4 = vmul.f32 0.5, %v4209_v39  ;;  %v5305_v39 = vld [vmem:[#allocation9 + $0xe0] sm:$0xff] }
 0x3a3   :  { %6129 = vst [vmem:[#allocation59_spill] sm:$0xff] %v5287_v52 }
 0x3a4   :  { %4210 = vtanh.f32 %v5270_v35  ;;  %1839 = vmatpush1.bf16.msra.mxu0 %v5266_v5  ;;  %1880 = vmatpush1.bf16.msra.mxu1 %v5268_v3  ;;  %v5297_v3 = vld [vmem:[#allocation9 + $0xe8] sm:$0xff]  ;;  %v5299_v5 = vld [vmem:[#allocation9 + $0xf8] sm:$0xff] }
 0x3a5   :  { %1840 = vmatprep.subr.bf16.mxu0 %v5272_v2  ;;  %1881 = vmatprep.subr.bf16.mxu1 %v5274_v54  ;;  %v5293_v2 = vld [vmem:[#allocation9 + $0xc0] sm:$0xff]  ;;  %v5295_v54 = vld [vmem:[#allocation9 + $0xd0] sm:$0xff]  ;;  %6131 = vst [vmem:[#allocation72_spill] sm:$0xff] %v5299_v5 }
 0x3a6   :  { %6130 = vst [vmem:[#allocation60_spill] sm:$0xff] %v5295_v54 }
 0x3a8   :  { %1841 = vmatpush1.bf16.msra.mxu0 %v5281_v48  ;;  %1882 = vmatpush1.bf16.msra.mxu1 %v5283_v6  ;;  %v1557_v48 = vadd.f32 0.5, %v1556_v4  ;;  %v5309_v6 = vld [vmem:[#allocation8 + $0x8] sm:$0xff]  ;;  %v5316_v4 = vld [vmem:[#allocation8] sm:$0xff] }
 0x3a9   :  { %1842 = vmatprep.subr.bf16.mxu0 %v5285_v41  ;;  %1883 = vmatprep.subr.bf16.mxu1 %v5287_v52  ;;  %v5307_v52 = vld [vmem:[#allocation9 + $0xf0] sm:$0xff] }
 0x3ac   :  { %1843 = vmatpush1.bf16.msra.mxu0 %v5293_v2  ;;  %1884 = vmatpush1.bf16.msra.mxu1 %v5295_v54 }
 0x3ad   :  { %1844 = vmatprep.subr.bf16.mxu0 %v5297_v3  ;;  %1885 = vmatprep.subr.bf16.mxu1 %v5299_v5  ;;  %v5319_v5 = vld [vmem:[#allocation8 + $0x10] sm:$0xff] }
 0x3ae   :  { %v4211_v41 = vpop.eup %4210 }
 0x3af   :  { %v1562_v42 = vmul.f32 %v4211_v41, %v1557_v48 }
 0x3b0   :  { %1845 = vmatpush1.bf16.msra.mxu0 %v5305_v39  ;;  %1886 = vmatpush1.bf16.msra.mxu1 %v5307_v52 }
 0x3b1   :  { %v1563_v54 = vpack.c.bf16 %v1562_v42, %v1562_v42  ;;  %1915 = vmatprep.subr.bf16.mxu0 %v5309_v6  ;;  %1956 = vmatprep.subr.bf16.mxu1 %v5311_v55  ;;  %v1793_v42 = vld [vmem:[#allocation14 + $0xc] sm:$0xf] }
 0x3b3   :  { %1565 = vst [vmem:[#allocation17 + $0x8] sm:$0xf] %v1563_v54  ;;  %1863 = vmatmul.mubr.bf16.vlgmr.msra.gmra.mrb[28].mxu0 %v1563_v54  ;;  %1904 = vmatmul.mubr.bf16.vlgmr.msra.gmra.mrb[28].mxu1 %v1563_v54 }
 0x3b4   :  { %1916 = vmatpush1.bf16.msra.mxu0 %v5316_v4  ;;  %1957 = vmatpush1.bf16.msra.mxu1 %v5319_v5 }
 0x3b5   :  { %1947 = vmatprep.mubr.bf16.mxu0 %v6072_v37  ;;  %1988 = vmatprep.mubr.bf16.mxu1 %v6072_v37 }
 0x3b6   :  { %2056 = vmatprep.subr.bf16.mxu0 %v5093_v56  ;;  %2097 = vmatprep.subr.bf16.mxu1 %v5095_v57 }
 0x3bf   :  { %3972 = vmatmul.mubr.msk.bf16.vlgmr.msra.gmra.mrb[28].mxu0 %vm326_vm0, %v1793_v42  ;;  %3973 = vmatmul.mubr.msk.bf16.vlgmr.msra.gmra.mrb[28].mxu1 %vm326_vm0, %v1793_v42 }
 0x3c0   :  { %2057 = vmatpush1.bf16.msra.mxu0 %v5099_v10  ;;  %2098 = vmatpush1.bf16.msra.mxu1 %v5101_v58 }
 0x3c1   :  { %2058 = vmatprep.subr.bf16.mxu0 %v5105_v60  ;;  %2099 = vmatprep.subr.bf16.mxu1 %v5107_v61 }
 0x3c2   :  { %2088 = vmatprep.mubr.bf16.mxu0 %v6072_v37  ;;  %2129 = vmatprep.mubr.bf16.mxu1 %v6072_v37 }
 0x3c4   :  { %2059 = vmatpush1.bf16.msra.mxu0 %v5111_v62  ;;  %2100 = vmatpush1.bf16.msra.mxu1 %v5113_v63 }
 0x3c5   :  { %2060 = vmatprep.subr.bf16.mxu0 %v5117_v20  ;;  %2101 = vmatprep.subr.bf16.mxu1 %v5119_v21 }
 0x3c8   :  { %2061 = vmatpush1.bf16.msra.mxu0 %v5123_v28  ;;  %2102 = vmatpush1.bf16.msra.mxu1 %v5125_v30 }
 0x3c9   :  { %2062 = vmatprep.subr.bf16.mxu0 %v5129_v31  ;;  %2103 = vmatprep.subr.bf16.mxu1 %v5131_v33 }
 0x3cc   :  { %2063 = vmatpush1.bf16.msra.mxu0 %v5135_v34  ;;  %2104 = vmatpush1.bf16.msra.mxu1 %v5137_v40 }
 0x3cd   :  { %2064 = vmatprep.subr.bf16.mxu0 %v5141_v59  ;;  %2105 = vmatprep.subr.bf16.mxu1 %v5143_v25 }
 0x3d0   :  { %2065 = vmatpush1.bf16.msra.mxu0 %v5147_v22  ;;  %2106 = vmatpush1.bf16.msra.mxu1 %v5149_v18 }
 0x3d1   :  { %2066 = vmatprep.subr.bf16.mxu0 %v5153_v8  ;;  %2107 = vmatprep.subr.bf16.mxu1 %v5155_v9 }
 0x3d4   :  { %2067 = vmatpush1.bf16.msra.mxu0 %v5159_v11  ;;  %2108 = vmatpush1.bf16.msra.mxu1 %v5161_v12 }
 0x3d5   :  { %2068 = vmatprep.subr.bf16.mxu0 %v5165_v13  ;;  %2109 = vmatprep.subr.bf16.mxu1 %v5167_v14 }
 0x3d8   :  { %2069 = vmatpush1.bf16.msra.mxu0 %v5171_v15  ;;  %2110 = vmatpush1.bf16.msra.mxu1 %v5173_v29 }
 0x3d9   :  { %2070 = vmatprep.subr.bf16.mxu0 %v5177_v32  ;;  %2111 = vmatprep.subr.bf16.mxu1 %v5179_v23 }
 0x3dc   :  { %2071 = vmatpush1.bf16.msra.mxu0 %v5183_v26  ;;  %2112 = vmatpush1.bf16.msra.mxu1 %v5185_v27 }
 0x3dd   :  { %2141 = vmatprep.subr.bf16.mxu0 %v5189_v24  ;;  %2182 = vmatprep.subr.bf16.mxu1 %v5192_v17 }
 0x466   :  { %v1723_v54 = vpop.f32.mrb[24].mxu0  ;;  %v1764_v48 = vpop.f32.mrb[24].mxu1 }
 0x467   :  { %v1771_v41 = vmul.f32 0.5, %v1723_v54  ;;  %v1725_v42 = vpop.f32.mrb[25].mxu0  ;;  %v1766_v14 = vpop.f32.mrb[25].mxu1 }
 0x468   :  { %v1775_v15 = vmul.f32 0.5, %v1725_v42  ;;  %v1727_v13 = vpop.f32.mrb[26].mxu0  ;;  %v1768_v29 = vpop.f32.mrb[26].mxu1  ;;  %v1780_v26 = vmul.f32 0.5, %v1766_v14 }
 0x469   :  { %4212 = vtanh.f32 %v1771_v41  ;;  %v1728_v32 = vpop.f32.mrb[27].mxu0  ;;  %v1769_v12 = vpop.f32.mrb[27].mxu1 }
 0x46a   :  { %4214 = vtanh.f32 %v1775_v15 }
 0x46b   :  { %4216 = vtanh.f32 %v1764_v48  ;;  %v2019_v48 = vld [vmem:[#allocation11 + $0x10] sm:$0xf] }
 0x46c   :  { %4218 = vtanh.f32 %v1780_v26 }
 0x473   :  { %v4213_v23 = vpop.eup %4212 }
 0x474   :  { %v4215_v27 = vpop.eup %4214  ;;  %v1773_v11 = vmul.f32 0.5, %v4213_v23 }
 0x475   :  { %v1777_v24 = vmul.f32 0.5, %v4215_v27  ;;  %v4217_v9 = vpop.eup %4216 }
 0x476   :  { %v1774_v17 = vadd.f32 0.5, %v1773_v11  ;;  %v4219_v13 = vpop.eup %4218 }
 0x477   :  { %v1778_v8 = vadd.f32 0.5, %v1777_v24  ;;  %v1782_v12 = vmul.f32 0.5, %v4219_v13 }
 0x478   :  { %v1785_v54 = vmul.f32 %v4217_v9, %v1774_v17 }
 0x479   :  { %v1784_v18 = vmul.f32 %v1778_v8, %v5196_v49  ;;  %v1783_v15 = vadd.f32 0.5, %v1782_v12 }
 0x47b   :  { %v5364_v42 = vadd.f32 %v1785_v54, %v1784_v18 }
 0x47d   :  { %4220 = vtanh.f32 %v5364_v42 }
 0x487   :  { %v4221_v29 = vpop.eup %4220 }
 0x488   :  { %v1788_v14 = vmul.f32 %v4221_v29, %v1783_v15  ;;  %v6132_v29 = vld [vmem:[#allocation47_spill] sm:$0xff] }
 0x48a   :  { %v1789_v32 = vpack.c.bf16 %v1788_v14, %v1788_v14 }
 0x48c   :  { %1791 = vst [vmem:[#allocation16 + $0xc] sm:$0xf] %v1789_v32  ;;  %2089 = vmatmul.mubr.bf16.vlgmr.msra.gmra.mrb[32].mxu0 %v1789_v32  ;;  %2130 = vmatmul.mubr.bf16.vlgmr.msra.gmra.mrb[32].mxu1 %v1789_v32  ;;  %v6133_v32 = vld [vmem:[#allocation48_spill] sm:$0xff] }
 0x48d   :  { %2142 = vmatpush1.bf16.msra.mxu0 %v5199_v19  ;;  %2183 = vmatpush1.bf16.msra.mxu1 %v5201_v0 }
 0x48e   :  { %2173 = vmatprep.mubr.bf16.mxu0 %v6072_v37  ;;  %2214 = vmatprep.mubr.bf16.mxu1 %v6072_v37 }
 0x48f   :  { %2282 = vmatprep.subr.bf16.mxu0 %v5203_v1  ;;  %2323 = vmatprep.subr.bf16.mxu1 %v5205_v16 }
 0x492   :  { %v1949_v18 = vpop.f32.mrb[28].mxu0  ;;  %v1990_v8 = vpop.f32.mrb[28].mxu1 }
 0x493   :  { %v1997_v9 = vmul.f32 0.5, %v1949_v18  ;;  %v1951_v11 = vpop.f32.mrb[29].mxu0  ;;  %v1992_v23 = vpop.f32.mrb[29].mxu1  ;;  %v6134_v18 = vld [vmem:[#allocation49_spill] sm:$0xff] }
 0x494   :  { %v2001_v26 = vmul.f32 0.5, %v1951_v11  ;;  %v1953_v27 = vpop.f32.mrb[30].mxu0  ;;  %v1994_v24 = vpop.f32.mrb[30].mxu1  ;;  %v2006_v41 = vmul.f32 0.5, %v1992_v23 }
 0x495   :  { %4222 = vtanh.f32 %v1997_v9  ;;  %v1954_v17 = vpop.f32.mrb[31].mxu0  ;;  %v1995_v49 = vpop.f32.mrb[31].mxu1  ;;  %v6136_v27 = vld [vmem:[#allocation51_spill] sm:$0xff] }
 0x496   :  { %4224 = vtanh.f32 %v2001_v26  ;;  %v6135_v26 = vld [vmem:[#allocation50_spill] sm:$0xff]  ;;  %v6137_v17 = vld [vmem:[#allocation52_spill] sm:$0xff]  ;;  %v6138_v49 = vld [vmem:[#allocation53_spill] sm:$0xff] }
 0x497   :  { %4226 = vtanh.f32 %v1990_v8 }
 0x498   :  { %3974 = vmatmul.mubr.msk.bf16.vlgmr.msra.gmra.mrb[32].mxu0 %vm326_vm0, %v2019_v48  ;;  %3975 = vmatmul.mubr.msk.bf16.vlgmr.msra.gmra.mrb[32].mxu1 %vm326_vm0, %v2019_v48  ;;  %4228 = vtanh.f32 %v2006_v41  ;;  %v6139_v48 = vld [vmem:[#allocation54_spill] sm:$0xff]  ;;  %v6140_v41 = vld [vmem:[#allocation55_spill] sm:$0xff] }
 0x499   :  { %2283 = vmatpush1.bf16.msra.mxu0 %v5213_v7  ;;  %2324 = vmatpush1.bf16.msra.mxu1 %v5215_v43 }
 0x49a   :  { %2284 = vmatprep.subr.bf16.mxu0 %v5217_v44  ;;  %2325 = vmatprep.subr.bf16.mxu1 %v5219_v45 }
 0x49b   :  { %2314 = vmatprep.mubr.bf16.mxu0 %v6072_v37  ;;  %2355 = vmatprep.mubr.bf16.mxu1 %v6072_v37 }
 0x49d   :  { %2285 = vmatpush1.bf16.msra.mxu0 %v5227_v46  ;;  %2326 = vmatpush1.bf16.msra.mxu1 %v5229_v47 }
 0x49e   :  { %2286 = vmatprep.subr.bf16.mxu0 %v5231_v50  ;;  %2327 = vmatprep.subr.bf16.mxu1 %v5233_v51 }
 0x49f   :  { %v4223_v54 = vpop.eup %4222 }
 0x4a0   :  { %v4225_v13 = vpop.eup %4224  ;;  %v1999_v12 = vmul.f32 0.5, %v4223_v54  ;;  %v6141_v54 = vld [vmem:[#allocation56_spill] sm:$0xff] }
 0x4a1   :  { %v2003_v15 = vmul.f32 0.5, %v4225_v13  ;;  %2287 = vmatpush1.bf16.msra.mxu0 %v5241_v53  ;;  %2328 = vmatpush1.bf16.msra.mxu1 %v6132_v29  ;;  %v4227_v8 = vpop.eup %4226  ;;  %v6142_v13 = vld [vmem:[#allocation57_spill] sm:$0xff] }
 0x4a2   :  { %v2000_v14 = vadd.f32 0.5, %v1999_v12  ;;  %2288 = vmatprep.subr.bf16.mxu0 %v6133_v32  ;;  %2329 = vmatprep.subr.bf16.mxu1 %v6134_v18 }
 0x4a3   :  { %v2004_v9 = vadd.f32 0.5, %v2003_v15  ;;  %v6143_v15 = vld [vmem:[#allocation58_spill] sm:$0xff] }
 0x4a4   :  { %v2011_v11 = vmul.f32 %v4227_v8, %v2000_v14  ;;  %v6144_v14 = vld [vmem:[#allocation59_spill] sm:$0xff]  ;;  %v6145_v8 = vld [vmem:[#allocation60_spill] sm:$0xff] }
 0x4a5   :  { %v2010_v23 = vmul.f32 %v2004_v9, %v5270_v35  ;;  %2289 = vmatpush1.bf16.msra.mxu0 %v5253_v36  ;;  %2330 = vmatpush1.bf16.msra.mxu1 %v5255_v38  ;;  %v4229_v35 = vpop.eup %4228 }
 0x4a6   :  { %2290 = vmatprep.subr.bf16.mxu0 %v6135_v26  ;;  %2331 = vmatprep.subr.bf16.mxu1 %v6136_v27  ;;  %v2008_v12 = vmul.f32 0.5, %v4229_v35 }
 0x4a7   :  { %v5394_v24 = vadd.f32 %v2011_v11, %v2010_v23  ;;  %v6146_v11 = vld [vmem:[#allocation72_spill] sm:$0xff] }
 0x4a8   :  { %v2009_v9 = vadd.f32 0.5, %v2008_v12 }
 0x4a9   :  { %4230 = vtanh.f32 %v5394_v24  ;;  %2291 = vmatpush1.bf16.msra.mxu0 %v6137_v17  ;;  %2332 = vmatpush1.bf16.msra.mxu1 %v6138_v49 }
 0x4aa   :  { %2292 = vmatprep.subr.bf16.mxu0 %v6139_v48  ;;  %2333 = vmatprep.subr.bf16.mxu1 %v6140_v41 }
 0x4ad   :  { %2293 = vmatpush1.bf16.msra.mxu0 %v6141_v54  ;;  %2334 = vmatpush1.bf16.msra.mxu1 %v6142_v13 }
 0x4ae   :  { %2294 = vmatprep.subr.bf16.mxu0 %v6143_v15  ;;  %2335 = vmatprep.subr.bf16.mxu1 %v6144_v14 }
 0x4b1   :  { %2295 = vmatpush1.bf16.msra.mxu0 %v5293_v2  ;;  %2336 = vmatpush1.bf16.msra.mxu1 %v6145_v8 }
 0x4b2   :  { %2296 = vmatprep.subr.bf16.mxu0 %v5297_v3  ;;  %2337 = vmatprep.subr.bf16.mxu1 %v6146_v11 }
 0x4b3   :  { %v4231_v23 = vpop.eup %4230 }
 0x4b4   :  { %v2014_v41 = vmul.f32 %v4231_v23, %v2009_v9 }
 0x4b5   :  { %2297 = vmatpush1.bf16.msra.mxu0 %v5305_v39  ;;  %2338 = vmatpush1.bf16.msra.mxu1 %v5307_v52 }
 0x4b6   :  { %v2015_v35 = vpack.c.bf16 %v2014_v41, %v2014_v41  ;;  %2367 = vmatprep.subr.bf16.mxu0 %v5309_v6  ;;  %2408 = vmatprep.subr.bf16.mxu1 %v5311_v55  ;;  %v2245_v41 = vld [vmem:[#allocation14 + $0x10] sm:$0xf] }
 0x4b8   :  { %2017 = vst [vmem:[#allocation17 + $0xc] sm:$0xf] %v2015_v35  ;;  %2315 = vmatmul.mubr.bf16.vlgmr.msra.gmra.mrb[36].mxu0 %v2015_v35  ;;  %2356 = vmatmul.mubr.bf16.vlgmr.msra.gmra.mrb[36].mxu1 %v2015_v35 }
 0x4b9   :  { %2368 = vmatpush1.bf16.msra.mxu0 %v5316_v4  ;;  %2409 = vmatpush1.bf16.msra.mxu1 %v5319_v5 }
 0x4ba   :  { %2399 = vmatprep.mubr.bf16.mxu0 %v6072_v37  ;;  %2440 = vmatprep.mubr.bf16.mxu1 %v6072_v37 }
 0x4bb   :  { %2508 = vmatprep.subr.bf16.mxu0 %v5093_v56  ;;  %2549 = vmatprep.subr.bf16.mxu1 %v5095_v57  ;;  %v6147_v56 = vld [vmem:[#allocation61_spill] sm:$0xff]  ;;  %v6148_v57 = vld [vmem:[#allocation62_spill] sm:$0xff] }
 0x4c4   :  { %3976 = vmatmul.mubr.msk.bf16.vlgmr.msra.gmra.mrb[36].mxu0 %vm326_vm0, %v2245_v41  ;;  %3977 = vmatmul.mubr.msk.bf16.vlgmr.msra.gmra.mrb[36].mxu1 %vm326_vm0, %v2245_v41 }
 0x4c5   :  { %2509 = vmatpush1.bf16.msra.mxu0 %v5099_v10  ;;  %2550 = vmatpush1.bf16.msra.mxu1 %v5101_v58  ;;  %v6149_v10 = vld [vmem:[#allocation63_spill] sm:$0xff]  ;;  %v6150_v58 = vld [vmem:[#allocation64_spill] sm:$0xff] }
 0x4c6   :  { %2510 = vmatprep.subr.bf16.mxu0 %v5105_v60  ;;  %2551 = vmatprep.subr.bf16.mxu1 %v5107_v61  ;;  %v6151_v60 = vld [vmem:[#allocation65_spill] sm:$0xff]  ;;  %v6152_v61 = vld [vmem:[#allocation66_spill] sm:$0xff] }
 0x4c7   :  { %2540 = vmatprep.mubr.bf16.mxu0 %v6072_v37  ;;  %2581 = vmatprep.mubr.bf16.mxu1 %v6072_v37 }
 0x4c9   :  { %2511 = vmatpush1.bf16.msra.mxu0 %v5111_v62  ;;  %2552 = vmatpush1.bf16.msra.mxu1 %v5113_v63  ;;  %v6153_v62 = vld [vmem:[#allocation67_spill] sm:$0xff]  ;;  %v6154_v63 = vld [vmem:[#allocation68_spill] sm:$0xff] }
 0x4ca   :  { %2512 = vmatprep.subr.bf16.mxu0 %v5117_v20  ;;  %2553 = vmatprep.subr.bf16.mxu1 %v5119_v21  ;;  %v6155_v20 = vld [vmem:[#allocation69_spill] sm:$0xff]  ;;  %v6156_v21 = vld [vmem:[#allocation70_spill] sm:$0xff] }
 0x4cd   :  { %2513 = vmatpush1.bf16.msra.mxu0 %v5123_v28  ;;  %2554 = vmatpush1.bf16.msra.mxu1 %v5125_v30  ;;  %v6157_v28 = vld [vmem:[#allocation71_spill] sm:$0xff] }
 0x4ce   :  { %2514 = vmatprep.subr.bf16.mxu0 %v5129_v31  ;;  %2555 = vmatprep.subr.bf16.mxu1 %v5131_v33  ;;  %v6158_v30 = vld [vmem:[#allocation43_spill] sm:$0xff]  ;;  %v6159_v31 = vld [vmem:[#allocation44_spill] sm:$0xff]  ;;  %v6160_v33 = vld [vmem:[#allocation45_spill] sm:$0xff] }
 0x4d1   :  { %2515 = vmatpush1.bf16.msra.mxu0 %v5135_v34  ;;  %2556 = vmatpush1.bf16.msra.mxu1 %v5137_v40  ;;  %v6161_v34 = vld [vmem:[#allocation46_spill] sm:$0xff] }
 0x4d2   :  { %2516 = vmatprep.subr.bf16.mxu0 %v5141_v59  ;;  %2557 = vmatprep.subr.bf16.mxu1 %v5143_v25 }
 0x4d5   :  { %2517 = vmatpush1.bf16.msra.mxu0 %v5147_v22  ;;  %2558 = vmatpush1.bf16.msra.mxu1 %v6147_v56 }
 0x4d6   :  { %2518 = vmatprep.subr.bf16.mxu0 %v6148_v57  ;;  %2559 = vmatprep.subr.bf16.mxu1 %v6149_v10 }
 0x4d9   :  { %2519 = vmatpush1.bf16.msra.mxu0 %v6150_v58  ;;  %2560 = vmatpush1.bf16.msra.mxu1 %v6151_v60 }
 0x4da   :  { %2520 = vmatprep.subr.bf16.mxu0 %v6152_v61  ;;  %2561 = vmatprep.subr.bf16.mxu1 %v6153_v62 }
 0x4dd   :  { %2521 = vmatpush1.bf16.msra.mxu0 %v6154_v63  ;;  %2562 = vmatpush1.bf16.msra.mxu1 %v6155_v20 }
 0x4de   :  { %2522 = vmatprep.subr.bf16.mxu0 %v6156_v21  ;;  %2563 = vmatprep.subr.bf16.mxu1 %v6157_v28 }
 0x4e1   :  { %2523 = vmatpush1.bf16.msra.mxu0 %v6158_v30  ;;  %2564 = vmatpush1.bf16.msra.mxu1 %v6159_v31 }
 0x4e2   :  { %2593 = vmatprep.subr.bf16.mxu0 %v6160_v33  ;;  %2634 = vmatprep.subr.bf16.mxu1 %v6161_v34 }
 0x56b   :  { %v2175_v40 = vpop.f32.mrb[32].mxu0  ;;  %v2216_v59 = vpop.f32.mrb[32].mxu1 }
 0x56c   :  { %v2223_v25 = vmul.f32 0.5, %v2175_v40  ;;  %v2177_v22 = vpop.f32.mrb[33].mxu0  ;;  %v2218_v12 = vpop.f32.mrb[33].mxu1 }
 0x56d   :  { %v2227_v9 = vmul.f32 0.5, %v2177_v22  ;;  %v2179_v23 = vpop.f32.mrb[34].mxu0  ;;  %v2220_v35 = vpop.f32.mrb[34].mxu1  ;;  %v2232_v57 = vmul.f32 0.5, %v2218_v12 }
 0x56e   :  { %4232 = vtanh.f32 %v2223_v25  ;;  %v2180_v41 = vpop.f32.mrb[35].mxu0  ;;  %v2221_v56 = vpop.f32.mrb[35].mxu1 }
 0x56f   :  { %4234 = vtanh.f32 %v2227_v9 }
 0x570   :  { %4236 = vtanh.f32 %v2216_v59 }
 0x571   :  { %4238 = vtanh.f32 %v2232_v57 }
 0x578   :  { %v4233_v10 = vpop.eup %4232 }
 0x579   :  { %v4235_v58 = vpop.eup %4234  ;;  %v2225_v60 = vmul.f32 0.5, %v4233_v10 }
 0x57a   :  { %v2229_v61 = vmul.f32 0.5, %v4235_v58  ;;  %v4237_v63 = vpop.eup %4236  ;;  %v5567_v58 = vld [vmem:[#allocation7 + $0x80] sm:$0xff] }
 0x57b   :  { %v2226_v62 = vadd.f32 0.5, %v2225_v60  ;;  %v4239_v31 = vpop.eup %4238  ;;  %v5569_v60 = vld [vmem:[#allocation7 + $0x90] sm:$0xff] }
 0x57c   :  { %v2230_v20 = vadd.f32 0.5, %v2229_v61  ;;  %v2234_v33 = vmul.f32 0.5, %v4239_v31  ;;  %v5573_v61 = vld [vmem:[#allocation7 + $0xa8] sm:$0xff]  ;;  %v5591_v31 = vld [vmem:[#allocation7 + $0xc0] sm:$0xff] }
 0x57d   :  { %v2237_v21 = vmul.f32 %v4237_v63, %v2226_v62  ;;  %v5575_v62 = vld [vmem:[#allocation7 + $0xb8] sm:$0xff]  ;;  %v5579_v63 = vld [vmem:[#allocation7 + $0xa0] sm:$0xff] }
 0x57e   :  { %v2236_v28 = vmul.f32 %v2230_v20, %v5364_v42  ;;  %v2235_v34 = vadd.f32 0.5, %v2234_v33  ;;  %v5581_v20 = vld [vmem:[#allocation7 + $0xb0] sm:$0xff] }
 0x57f   :  { %v5593_v33 = vld [vmem:[#allocation7 + $0xd0] sm:$0xff] }
 0x580   :  { %v5456_v30 = vadd.f32 %v2237_v21, %v2236_v28  ;;  %v5585_v21 = vld [vmem:[#allocation7 + $0xc8] sm:$0xff]  ;;  %v5587_v28 = vld [vmem:[#allocation7 + $0xd8] sm:$0xff] }
 0x582   :  { %4240 = vtanh.f32 %v5456_v30 }
 0x58c   :  { %v4241_v40 = vpop.eup %4240 }
 0x58d   :  { %v2240_v59 = vmul.f32 %v4241_v40, %v2235_v34  ;;  %v5597_v34 = vld [vmem:[#allocation7 + $0xe8] sm:$0xff]  ;;  %v5599_v40 = vld [vmem:[#allocation7 + $0xf8] sm:$0xff] }
 0x58f   :  { %v2241_v25 = vpack.c.bf16 %v2240_v59, %v2240_v59  ;;  %v5603_v59 = vld [vmem:[#allocation7 + $0xe0] sm:$0xff] }
 0x591   :  { %2243 = vst [vmem:[#allocation16 + $0x10] sm:$0xf] %v2241_v25  ;;  %2541 = vmatmul.mubr.bf16.vlgmr.msra.gmra.mrb[40].mxu0 %v2241_v25  ;;  %2582 = vmatmul.mubr.bf16.vlgmr.msra.gmra.mrb[40].mxu1 %v2241_v25  ;;  %v5605_v25 = vld [vmem:[#allocation7 + $0xf0] sm:$0xff] }
 0x592   :  { %2594 = vmatpush1.bf16.msra.mxu0 %v5199_v19  ;;  %2635 = vmatpush1.bf16.msra.mxu1 %v5201_v0  ;;  %v2471_v0 = vld [vmem:[#allocation11 + $0x14] sm:$0xf] }
 0x593   :  { %2625 = vmatprep.mubr.bf16.mxu0 %v6072_v37  ;;  %2666 = vmatprep.mubr.bf16.mxu1 %v6072_v37 }
 0x594   :  { %2734 = vmatprep.subr.bf16.mxu0 %v5203_v1  ;;  %2775 = vmatprep.subr.bf16.mxu1 %v5205_v16 }
 0x597   :  { %v2401_v42 = vpop.f32.mrb[36].mxu0  ;;  %v2442_v22 = vpop.f32.mrb[36].mxu1 }
 0x598   :  { %v2449_v12 = vmul.f32 0.5, %v2401_v42  ;;  %v2403_v9 = vpop.f32.mrb[37].mxu0  ;;  %v2444_v23 = vpop.f32.mrb[37].mxu1  ;;  %v5609_v42 = vld [vmem:[#allocation6 + $0x8] sm:$0xff] }
 0x599   :  { %v2453_v35 = vmul.f32 0.5, %v2403_v9  ;;  %v2405_v41 = vpop.f32.mrb[38].mxu0  ;;  %v2446_v56 = vpop.f32.mrb[38].mxu1  ;;  %v2458_v1 = vmul.f32 0.5, %v2444_v23 }
 0x59a   :  { %4242 = vtanh.f32 %v2449_v12  ;;  %v2406_v19 = vpop.f32.mrb[39].mxu0  ;;  %v2447_v57 = vpop.f32.mrb[39].mxu1 }
 0x59b   :  { %4244 = vtanh.f32 %v2453_v35 }
 0x59c   :  { %4246 = vtanh.f32 %v2442_v22  ;;  %v5612_v22 = vld [vmem:[#allocation6 + $0x18] sm:$0xff] }
 0x59d   :  { %3978 = vmatmul.mubr.msk.bf16.vlgmr.msra.gmra.mrb[40].mxu0 %vm326_vm0, %v2471_v0  ;;  %3979 = vmatmul.mubr.msk.bf16.vlgmr.msra.gmra.mrb[40].mxu1 %vm326_vm0, %v2471_v0  ;;  %4248 = vtanh.f32 %v2458_v1 }
 0x59e   :  { %2735 = vmatpush1.bf16.msra.mxu0 %v5213_v7  ;;  %2776 = vmatpush1.bf16.msra.mxu1 %v5215_v43 }
 0x59f   :  { %2736 = vmatprep.subr.bf16.mxu0 %v5217_v44  ;;  %2777 = vmatprep.subr.bf16.mxu1 %v5219_v45 }
 0x5a0   :  { %2766 = vmatprep.mubr.bf16.mxu0 %v6072_v37  ;;  %2807 = vmatprep.mubr.bf16.mxu1 %v6072_v37 }
 0x5a2   :  { %2737 = vmatpush1.bf16.msra.mxu0 %v5227_v46  ;;  %2778 = vmatpush1.bf16.msra.mxu1 %v5229_v47 }
 0x5a3   :  { %2738 = vmatprep.subr.bf16.mxu0 %v5231_v50  ;;  %2779 = vmatprep.subr.bf16.mxu1 %v5233_v51 }
 0x5a4   :  { %v4243_v16 = vpop.eup %4242 }
 0x5a5   :  { %v4245_v7 = vpop.eup %4244  ;;  %v2451_v43 = vmul.f32 0.5, %v4243_v16 }
 0x5a6   :  { %v2455_v10 = vmul.f32 0.5, %v4245_v7  ;;  %2739 = vmatpush1.bf16.msra.mxu0 %v5241_v53  ;;  %2780 = vmatpush1.bf16.msra.mxu1 %v6132_v29  ;;  %v4247_v45 = vpop.eup %4246  ;;  %v6162_v53 = vld [vmem:[#allocation55_spill] sm:$0xff] }
 0x5a7   :  { %v2452_v44 = vadd.f32 0.5, %v2451_v43  ;;  %2740 = vmatprep.subr.bf16.mxu0 %v6133_v32  ;;  %2781 = vmatprep.subr.bf16.mxu1 %v6134_v18  ;;  %v4249_v29 = vpop.eup %4248 }
 0x5a8   :  { %v2456_v46 = vadd.f32 0.5, %v2455_v10 }
 0x5a9   :  { %v2463_v47 = vmul.f32 %v4247_v45, %v2452_v44 }
 0x5aa   :  { %v2462_v50 = vmul.f32 %v2456_v46, %v5394_v24  ;;  %2741 = vmatpush1.bf16.msra.mxu0 %v5253_v36  ;;  %2782 = vmatpush1.bf16.msra.mxu1 %v5255_v38  ;;  %v2460_v36 = vmul.f32 0.5, %v4249_v29  ;;  %v5537_v24 = vld [vmem:[#allocation7 + $0x48] sm:$0xff] }
 0x5ab   :  { %2742 = vmatprep.subr.bf16.mxu0 %v6135_v26  ;;  %2783 = vmatprep.subr.bf16.mxu1 %v6136_v27  ;;  %v5533_v27 = vld [vmem:[#allocation7 + $0x30] sm:$0xff] }
 0x5ac   :  { %v5486_v51 = vadd.f32 %v2463_v47, %v2462_v50  ;;  %v2461_v38 = vadd.f32 0.5, %v2460_v36 }
 0x5ae   :  { %4250 = vtanh.f32 %v5486_v51  ;;  %2743 = vmatpush1.bf16.msra.mxu0 %v6137_v17  ;;  %2784 = vmatpush1.bf16.msra.mxu1 %v6138_v49  ;;  %v5539_v17 = vld [vmem:[#allocation7 + $0x58] sm:$0xff]  ;;  %v5543_v49 = vld [vmem:[#allocation7 + $0x40] sm:$0xff] }
 0x5af   :  { %2744 = vmatprep.subr.bf16.mxu0 %v6139_v48  ;;  %2785 = vmatprep.subr.bf16.mxu1 %v6162_v53  ;;  %v5545_v48 = vld [vmem:[#allocation7 + $0x50] sm:$0xff] }
 0x5b2   :  { %2745 = vmatpush1.bf16.msra.mxu0 %v6141_v54  ;;  %2786 = vmatpush1.bf16.msra.mxu1 %v6142_v13  ;;  %v5549_v54 = vld [vmem:[#allocation7 + $0x68] sm:$0xff]  ;;  %v5551_v13 = vld [vmem:[#allocation7 + $0x78] sm:$0xff] }
 0x5b3   :  { %2746 = vmatprep.subr.bf16.mxu0 %v6143_v15  ;;  %2787 = vmatprep.subr.bf16.mxu1 %v6144_v14  ;;  %v5555_v15 = vld [vmem:[#allocation7 + $0x60] sm:$0xff]  ;;  %v5557_v14 = vld [vmem:[#allocation7 + $0x70] sm:$0xff] }
 0x5b6   :  { %2747 = vmatpush1.bf16.msra.mxu0 %v5293_v2  ;;  %2788 = vmatpush1.bf16.msra.mxu1 %v6145_v8  ;;  %v2697_v2 = vld [vmem:[#allocation14 + $0x14] sm:$0xf]  ;;  %v5561_v8 = vld [vmem:[#allocation7 + $0x88] sm:$0xff] }
 0x5b7   :  { %2748 = vmatprep.subr.bf16.mxu0 %v5297_v3  ;;  %2789 = vmatprep.subr.bf16.mxu1 %v6146_v11  ;;  %v5513_v3 = vld [vmem:[#allocation7 + $0x8] sm:$0xff]  ;;  %v5563_v11 = vld [vmem:[#allocation7 + $0x98] sm:$0xff] }
 0x5b8   :  { %v4251_v32 = vpop.eup %4250 }
 0x5b9   :  { %v2466_v18 = vmul.f32 %v4251_v32, %v2461_v38 }
 0x5ba   :  { %2749 = vmatpush1.bf16.msra.mxu0 %v5305_v39  ;;  %2790 = vmatpush1.bf16.msra.mxu1 %v5307_v52  ;;  %v5525_v52 = vld [vmem:[#allocation7 + $0x28] sm:$0xff]  ;;  %v5527_v39 = vld [vmem:[#allocation7 + $0x38] sm:$0xff] }
 0x5bb   :  { %v2467_v26 = vpack.c.bf16 %v2466_v18, %v2466_v18  ;;  %2819 = vmatprep.subr.bf16.mxu0 %v5309_v6  ;;  %2860 = vmatprep.subr.bf16.mxu1 %v5311_v55  ;;  %v5515_v55 = vld [vmem:[#allocation7 + $0x18] sm:$0xff]  ;;  %v5521_v6 = vld [vmem:[#allocation7 + $0x10] sm:$0xff] }
 0x5bd   :  { %2469 = vst [vmem:[#allocation17 + $0x10] sm:$0xf] %v2467_v26  ;;  %2767 = vmatmul.mubr.bf16.vlgmr.msra.gmra.mrb[44].mxu0 %v2467_v26  ;;  %2808 = vmatmul.mubr.bf16.vlgmr.msra.gmra.mrb[44].mxu1 %v2467_v26 }
 0x5be   :  { %2820 = vmatpush1.bf16.msra.mxu0 %v5316_v4  ;;  %2861 = vmatpush1.bf16.msra.mxu1 %v5319_v5  ;;  %v5519_v5 = vld [vmem:[#allocation7] sm:$0xff] }
 0x5bf   :  { %2851 = vmatprep.mubr.bf16.mxu0 %v6072_v37  ;;  %2892 = vmatprep.mubr.bf16.mxu1 %v6072_v37  ;;  %v5531_v4 = vld [vmem:[#allocation7 + $0x20] sm:$0xff] }
 0x5c0   :  { %2960 = vmatprep.subr.bf16.mxu0 %v5513_v3  ;;  %3001 = vmatprep.subr.bf16.mxu1 %v5515_v55 }
 0x5c9   :  { %3980 = vmatmul.mubr.msk.bf16.vlgmr.msra.gmra.mrb[44].mxu0 %vm326_vm0, %v2697_v2  ;;  %3981 = vmatmul.mubr.msk.bf16.vlgmr.msra.gmra.mrb[44].mxu1 %vm326_vm0, %v2697_v2 }
 0x5ca   :  { %2992 = vmatprep.mubr.bf16.mxu0 %v6072_v37  ;;  %3033 = vmatprep.mubr.bf16.mxu1 %v6072_v37 }
 0x5cb   :  { %2961 = vmatpush1.bf16.msra.mxu0 %v5519_v5  ;;  %3002 = vmatpush1.bf16.msra.mxu1 %v5521_v6 }
 0x5cc   :  { %2962 = vmatprep.subr.bf16.mxu0 %v5525_v52  ;;  %3003 = vmatprep.subr.bf16.mxu1 %v5527_v39 }
 0x5cf   :  { %2963 = vmatpush1.bf16.msra.mxu0 %v5531_v4  ;;  %3004 = vmatpush1.bf16.msra.mxu1 %v5533_v27 }
 0x5d0   :  { %2964 = vmatprep.subr.bf16.mxu0 %v5537_v24  ;;  %3005 = vmatprep.subr.bf16.mxu1 %v5539_v17 }
 0x5d3   :  { %2965 = vmatpush1.bf16.msra.mxu0 %v5543_v49  ;;  %3006 = vmatpush1.bf16.msra.mxu1 %v5545_v48 }
 0x5d4   :  { %2966 = vmatprep.subr.bf16.mxu0 %v5549_v54  ;;  %3007 = vmatprep.subr.bf16.mxu1 %v5551_v13 }
 0x5d7   :  { %2967 = vmatpush1.bf16.msra.mxu0 %v5555_v15  ;;  %3008 = vmatpush1.bf16.msra.mxu1 %v5557_v14 }
 0x5d8   :  { %2968 = vmatprep.subr.bf16.mxu0 %v5561_v8  ;;  %3009 = vmatprep.subr.bf16.mxu1 %v5563_v11 }
 0x5db   :  { %2969 = vmatpush1.bf16.msra.mxu0 %v5567_v58  ;;  %3010 = vmatpush1.bf16.msra.mxu1 %v5569_v60 }
 0x5dc   :  { %2970 = vmatprep.subr.bf16.mxu0 %v5573_v61  ;;  %3011 = vmatprep.subr.bf16.mxu1 %v5575_v62 }
 0x5df   :  { %2971 = vmatpush1.bf16.msra.mxu0 %v5579_v63  ;;  %3012 = vmatpush1.bf16.msra.mxu1 %v5581_v20 }
 0x5e0   :  { %2972 = vmatprep.subr.bf16.mxu0 %v5585_v21  ;;  %3013 = vmatprep.subr.bf16.mxu1 %v5587_v28 }
 0x5e3   :  { %2973 = vmatpush1.bf16.msra.mxu0 %v5591_v31  ;;  %3014 = vmatpush1.bf16.msra.mxu1 %v5593_v33 }
 0x5e4   :  { %2974 = vmatprep.subr.bf16.mxu0 %v5597_v34  ;;  %3015 = vmatprep.subr.bf16.mxu1 %v5599_v40 }
 0x5e7   :  { %2975 = vmatpush1.bf16.msra.mxu0 %v5603_v59  ;;  %3016 = vmatpush1.bf16.msra.mxu1 %v5605_v25 }
 0x5e8   :  { %3045 = vmatprep.subr.bf16.mxu0 %v5609_v42  ;;  %3086 = vmatprep.subr.bf16.mxu1 %v5612_v22 }
 0x670   :  { %v2627_v12 = vpop.f32.mrb[40].mxu0  ;;  %v2668_v9 = vpop.f32.mrb[40].mxu1 }
 0x671   :  { %v2675_v23 = vmul.f32 0.5, %v2627_v12  ;;  %v2629_v35 = vpop.f32.mrb[41].mxu0  ;;  %v2670_v41 = vpop.f32.mrb[41].mxu1  ;;  %v5619_v12 = vld [vmem:[#allocation6] sm:$0xff] }
 0x672   :  { %v2679_v56 = vmul.f32 0.5, %v2629_v35  ;;  %v2631_v19 = vpop.f32.mrb[42].mxu0  ;;  %v2672_v57 = vpop.f32.mrb[42].mxu1  ;;  %v2684_v16 = vmul.f32 0.5, %v2670_v41 }
 0x673   :  { %4252 = vtanh.f32 %v2675_v23  ;;  %v2632_v0 = vpop.f32.mrb[43].mxu0  ;;  %v2673_v1 = vpop.f32.mrb[43].mxu1  ;;  %v5623_v23 = vld [vmem:[#allocation9 + $0x8] sm:$0xff] }
 0x674   :  { %4254 = vtanh.f32 %v2679_v56 }
 0x675   :  { %4256 = vtanh.f32 %v2668_v9  ;;  %v5621_v9 = vld [vmem:[#allocation6 + $0x10] sm:$0xff] }
 0x676   :  { %4258 = vtanh.f32 %v2684_v16 }
 0x67d   :  { %v4253_v7 = vpop.eup %4252 }
 0x67e   :  { %v4255_v43 = vpop.eup %4254  ;;  %v2677_v10 = vmul.f32 0.5, %v4253_v7 }
 0x67f   :  { %v2681_v44 = vmul.f32 0.5, %v4255_v43  ;;  %v4257_v46 = vpop.eup %4256 }
 0x680   :  { %v2678_v45 = vadd.f32 0.5, %v2677_v10  ;;  %v4259_v36 = vpop.eup %4258  ;;  %v2923_v10 = vld [vmem:[#allocation11 + $0x18] sm:$0xf] }
 0x681   :  { %v2682_v47 = vadd.f32 0.5, %v2681_v44  ;;  %v2686_v38 = vmul.f32 0.5, %v4259_v36  ;;  %v5633_v44 = vld [vmem:[#allocation9] sm:$0xff]  ;;  %v5651_v36 = vld [vmem:[#allocation9 + $0x48] sm:$0xff] }
 0x682   :  { %v2689_v50 = vmul.f32 %v4257_v46, %v2678_v45  ;;  %v5635_v45 = vld [vmem:[#allocation9 + $0x10] sm:$0xff]  ;;  %v5637_v46 = vld [vmem:[#allocation9 + $0x28] sm:$0xff] }
 0x683   :  { %v2688_v53 = vmul.f32 %v2682_v47, %v5456_v30  ;;  %v2687_v32 = vadd.f32 0.5, %v2686_v38  ;;  %v5625_v30 = vld [vmem:[#allocation9 + $0x18] sm:$0xff] }
 0x684   :  { %v5639_v47 = vld [vmem:[#allocation9 + $0x38] sm:$0xff] }
 0x685   :  { %v5616_v29 = vadd.f32 %v2689_v50, %v2688_v53  ;;  %v5647_v50 = vld [vmem:[#allocation9 + $0x20] sm:$0xff]  ;;  %v5649_v53 = vld [vmem:[#allocation9 + $0x30] sm:$0xff]  ;;  %v5653_v38 = vld [vmem:[#allocation9 + $0x58] sm:$0xff] }
 0x687   :  { %4260 = vtanh.f32 %v5616_v29 }
 0x691   :  { %v4261_v18 = vpop.eup %4260 }
 0x692   :  { %v2692_v26 = vmul.f32 %v4261_v18, %v2687_v32  ;;  %v5661_v18 = vld [vmem:[#allocation9 + $0x40] sm:$0xff] }
 0x694   :  { %v2693_v2 = vpack.c.bf16 %v2692_v26, %v2692_v26  ;;  %v5663_v26 = vld [vmem:[#allocation9 + $0x50] sm:$0xff] }
 0x695   :  { %6163 = vst [vmem:[#allocation47_spill] sm:$0xff] %v5663_v26 }
 0x696   :  { %2695 = vst [vmem:[#allocation16 + $0x14] sm:$0xf] %v2693_v2  ;;  %2993 = vmatmul.mubr.bf16.vlgmr.msra.gmra.mrb[48].mxu0 %v2693_v2  ;;  %3034 = vmatmul.mubr.bf16.vlgmr.msra.gmra.mrb[48].mxu1 %v2693_v2 }
 0x697   :  { %3046 = vmatpush1.bf16.msra.mxu0 %v5619_v12  ;;  %3087 = vmatpush1.bf16.msra.mxu1 %v5621_v9 }
 0x698   :  { %3077 = vmatprep.mubr.bf16.mxu0 %v6072_v37  ;;  %3118 = vmatprep.mubr.bf16.mxu1 %v6072_v37 }
 0x699   :  { %3186 = vmatprep.subr.bf16.mxu0 %v5623_v23  ;;  %3227 = vmatprep.subr.bf16.mxu1 %v5625_v30 }
 0x69c   :  { %v2853_v35 = vpop.f32.mrb[44].mxu0  ;;  %v2894_v41 = vpop.f32.mrb[44].mxu1 }
 0x69d   :  { %v2901_v56 = vmul.f32 0.5, %v2853_v35  ;;  %v2855_v19 = vpop.f32.mrb[45].mxu0  ;;  %v2896_v57 = vpop.f32.mrb[45].mxu1  ;;  %v5665_v35 = vld [vmem:[#allocation9 + $0x68] sm:$0xff] }
 0x69e   :  { %v2905_v0 = vmul.f32 0.5, %v2855_v19  ;;  %v2857_v1 = vpop.f32.mrb[46].mxu0  ;;  %v2898_v16 = vpop.f32.mrb[46].mxu1  ;;  %v2910_v32 = vmul.f32 0.5, %v2896_v57  ;;  %6164 = vst [vmem:[#allocation48_spill] sm:$0xff] %v5665_v35 }
 0x69f   :  { %4262 = vtanh.f32 %v2901_v56  ;;  %v2858_v7 = vpop.f32.mrb[47].mxu0  ;;  %v2899_v43 = vpop.f32.mrb[47].mxu1  ;;  %v5673_v1 = vld [vmem:[#allocation9 + $0x60] sm:$0xff]  ;;  %v5675_v16 = vld [vmem:[#allocation9 + $0x70] sm:$0xff] }
 0x6a0   :  { %4264 = vtanh.f32 %v2905_v0 }
 0x6a1   :  { %4266 = vtanh.f32 %v2894_v41  ;;  %v5667_v41 = vld [vmem:[#allocation9 + $0x78] sm:$0xff] }
 0x6a2   :  { %3982 = vmatmul.mubr.msk.bf16.vlgmr.msra.gmra.mrb[48].mxu0 %vm326_vm0, %v2923_v10  ;;  %3983 = vmatmul.mubr.msk.bf16.vlgmr.msra.gmra.mrb[48].mxu1 %vm326_vm0, %v2923_v10  ;;  %6165 = vst [vmem:[#allocation49_spill] sm:$0xff] %v5667_v41  ;;  %4268 = vtanh.f32 %v2910_v32  ;;  %v5677_v10 = vld [vmem:[#allocation9 + $0x88] sm:$0xff] }
 0x6a3   :  { %3187 = vmatpush1.bf16.msra.mxu0 %v5633_v44  ;;  %3228 = vmatpush1.bf16.msra.mxu1 %v5635_v45  ;;  %6166 = vst [vmem:[#allocation50_spill] sm:$0xff] %v5677_v10 }
 0x6a4   :  { %3188 = vmatprep.subr.bf16.mxu0 %v5637_v46  ;;  %3229 = vmatprep.subr.bf16.mxu1 %v5639_v47 }
 0x6a5   :  { %3218 = vmatprep.mubr.bf16.mxu0 %v6072_v37  ;;  %3259 = vmatprep.mubr.bf16.mxu1 %v6072_v37 }
 0x6a7   :  { %3189 = vmatpush1.bf16.msra.mxu0 %v5647_v50  ;;  %3230 = vmatpush1.bf16.msra.mxu1 %v5649_v53 }
 0x6a8   :  { %3190 = vmatprep.subr.bf16.mxu0 %v5651_v36  ;;  %3231 = vmatprep.subr.bf16.mxu1 %v5653_v38 }
 0x6a9   :  { %v4263_v2 = vpop.eup %4262 }
 0x6aa   :  { %v4265_v56 = vpop.eup %4264  ;;  %v2903_v19 = vmul.f32 0.5, %v4263_v2  ;;  %v5679_v2 = vld [vmem:[#allocation9 + $0x98] sm:$0xff] }
 0x6ab   :  { %v2907_v57 = vmul.f32 0.5, %v4265_v56  ;;  %3191 = vmatpush1.bf16.msra.mxu0 %v5661_v18  ;;  %3232 = vmatpush1.bf16.msra.mxu1 %v5663_v26  ;;  %v4267_v7 = vpop.eup %4266  ;;  %6167 = vst [vmem:[#allocation51_spill] sm:$0xff] %v5679_v2  ;;  %v5694_v26 = vld [vmem:[#allocation9 + $0xb8] sm:$0xff] }
 0x6ac   :  { %v2904_v0 = vadd.f32 0.5, %v2903_v19  ;;  %3192 = vmatprep.subr.bf16.mxu0 %v5665_v35  ;;  %3233 = vmatprep.subr.bf16.mxu1 %v5667_v41  ;;  %v5686_v19 = vld [vmem:[#allocation9 + $0x80] sm:$0xff]  ;;  %v5688_v41 = vld [vmem:[#allocation9 + $0x90] sm:$0xff]  ;;  %v5692_v35 = vld [vmem:[#allocation9 + $0xa8] sm:$0xff]  ;;  %6171 = vst [vmem:[#allocation56_spill] sm:$0xff] %v5694_v26 }
 0x6ad   :  { %v2908_v43 = vadd.f32 0.5, %v2907_v57  ;;  %6168 = vst [vmem:[#allocation52_spill] sm:$0xff] %v5686_v19  ;;  %6169 = vst [vmem:[#allocation53_spill] sm:$0xff] %v5688_v41 }
 0x6ae   :  { %v2915_v32 = vmul.f32 %v4267_v7, %v2904_v0  ;;  %6170 = vst [vmem:[#allocation54_spill] sm:$0xff] %v5692_v35  ;;  %v5703_v0 = vld [vmem:[#allocation9 + $0xb0] sm:$0xff]  ;;  %v4269_v7 = vpop.eup %4268 }
 0x6af   :  { %v2914_v56 = vmul.f32 %v2908_v43, %v5486_v51  ;;  %3193 = vmatpush1.bf16.msra.mxu0 %v5673_v1  ;;  %3234 = vmatpush1.bf16.msra.mxu1 %v5675_v16  ;;  %v5701_v51 = vld [vmem:[#allocation9 + $0xa0] sm:$0xff]  ;;  %6173 = vst [vmem:[#allocation58_spill] sm:$0xff] %v5703_v0  ;;  %v5705_v43 = vld [vmem:[#allocation9 + $0xc8] sm:$0xff] }
 0x6b0   :  { %3194 = vmatprep.subr.bf16.mxu0 %v5677_v10  ;;  %3235 = vmatprep.subr.bf16.mxu1 %v5679_v2  ;;  %6172 = vst [vmem:[#allocation57_spill] sm:$0xff] %v5701_v51  ;;  %6174 = vst [vmem:[#allocation59_spill] sm:$0xff] %v5705_v43  ;;  %v5731_v2 = vld [vmem:[#allocation8 + $0x18] sm:$0xff] }
 0x6b1   :  { %v5690_v57 = vadd.f32 %v2915_v32, %v2914_v56  ;;  %v5707_v32 = vld [vmem:[#allocation9 + $0xd8] sm:$0xff]  ;;  %v2912_v56 = vmul.f32 0.5, %v4269_v7  ;;  %v5725_v7 = vld [vmem:[#allocation9 + $0xe0] sm:$0xff] }
 0x6b2   :  { %6175 = vst [vmem:[#allocation60_spill] sm:$0xff] %v5707_v32 }
 0x6b3   :  { %4270 = vtanh.f32 %v5690_v57  ;;  %3195 = vmatpush1.bf16.msra.mxu0 %v5686_v19  ;;  %3236 = vmatpush1.bf16.msra.mxu1 %v5688_v41  ;;  %v5717_v41 = vld [vmem:[#allocation9 + $0xe8] sm:$0xff]  ;;  %v5719_v19 = vld [vmem:[#allocation9 + $0xf8] sm:$0xff] }
 0x6b4   :  { %3196 = vmatprep.subr.bf16.mxu0 %v5692_v35  ;;  %3237 = vmatprep.subr.bf16.mxu1 %v5694_v26  ;;  %v5713_v35 = vld [vmem:[#allocation9 + $0xc0] sm:$0xff]  ;;  %v5715_v26 = vld [vmem:[#allocation9 + $0xd0] sm:$0xff]  ;;  %6177 = vst [vmem:[#allocation61_spill] sm:$0xff] %v5719_v19 }
 0x6b5   :  { %6176 = vst [vmem:[#allocation72_spill] sm:$0xff] %v5715_v26 }
 0x6b7   :  { %3197 = vmatpush1.bf16.msra.mxu0 %v5701_v51  ;;  %3238 = vmatpush1.bf16.msra.mxu1 %v5703_v0  ;;  %v2913_v51 = vadd.f32 0.5, %v2912_v56  ;;  %v5729_v0 = vld [vmem:[#allocation8 + $0x8] sm:$0xff]  ;;  %v5736_v56 = vld [vmem:[#allocation8] sm:$0xff] }
 0x6b8   :  { %3198 = vmatprep.subr.bf16.mxu0 %v5705_v43  ;;  %3239 = vmatprep.subr.bf16.mxu1 %v5707_v32  ;;  %v5727_v32 = vld [vmem:[#allocation9 + $0xf0] sm:$0xff] }
 0x6bb   :  { %3199 = vmatpush1.bf16.msra.mxu0 %v5713_v35  ;;  %3240 = vmatpush1.bf16.msra.mxu1 %v5715_v26 }
 0x6bc   :  { %3200 = vmatprep.subr.bf16.mxu0 %v5717_v41  ;;  %3241 = vmatprep.subr.bf16.mxu1 %v5719_v19  ;;  %v5739_v19 = vld [vmem:[#allocation8 + $0x10] sm:$0xff] }
 0x6bd   :  { %v4271_v43 = vpop.eup %4270 }
 0x6be   :  { %v2918_v10 = vmul.f32 %v4271_v43, %v2913_v51  ;;  %v6179_v43 = vld [vmem:[#allocation48_spill] sm:$0xff] }
 0x6bf   :  { %3201 = vmatpush1.bf16.msra.mxu0 %v5725_v7  ;;  %3242 = vmatpush1.bf16.msra.mxu1 %v5727_v32 }
 0x6c0   :  { %v2919_v26 = vpack.c.bf16 %v2918_v10, %v2918_v10  ;;  %3271 = vmatprep.subr.bf16.mxu0 %v5729_v0  ;;  %3312 = vmatprep.subr.bf16.mxu1 %v5731_v2  ;;  %v3149_v10 = vld [vmem:[#allocation14 + $0x18] sm:$0xf] }
 0x6c2   :  { %2921 = vst [vmem:[#allocation17 + $0x14] sm:$0xf] %v2919_v26  ;;  %3219 = vmatmul.mubr.bf16.vlgmr.msra.gmra.mrb[52].mxu0 %v2919_v26  ;;  %3260 = vmatmul.mubr.bf16.vlgmr.msra.gmra.mrb[52].mxu1 %v2919_v26 }
 0x6c3   :  { %3272 = vmatpush1.bf16.msra.mxu0 %v5736_v56  ;;  %3313 = vmatpush1.bf16.msra.mxu1 %v5739_v19 }
 0x6c4   :  { %3303 = vmatprep.mubr.bf16.mxu0 %v6072_v37  ;;  %3344 = vmatprep.mubr.bf16.mxu1 %v6072_v37 }
 0x6c5   :  { %3412 = vmatprep.subr.bf16.mxu0 %v5513_v3  ;;  %3453 = vmatprep.subr.bf16.mxu1 %v5515_v55 }
 0x6ce   :  { %3984 = vmatmul.mubr.msk.bf16.vlgmr.msra.gmra.mrb[52].mxu0 %vm326_vm0, %v3149_v10  ;;  %3985 = vmatmul.mubr.msk.bf16.vlgmr.msra.gmra.mrb[52].mxu1 %vm326_vm0, %v3149_v10  ;;  %v6180_v10 = vld [vmem:[#allocation49_spill] sm:$0xff] }
 0x6cf   :  { %3413 = vmatpush1.bf16.msra.mxu0 %v5519_v5  ;;  %3454 = vmatpush1.bf16.msra.mxu1 %v5521_v6 }
 0x6d0   :  { %3414 = vmatprep.subr.bf16.mxu0 %v5525_v52  ;;  %3455 = vmatprep.subr.bf16.mxu1 %v5527_v39 }
 0x6d1   :  { %3444 = vmatprep.mubr.bf16.mxu0 %v6072_v37  ;;  %3485 = vmatprep.mubr.bf16.mxu1 %v6072_v37 }
 0x6d3   :  { %3415 = vmatpush1.bf16.msra.mxu0 %v5531_v4  ;;  %3456 = vmatpush1.bf16.msra.mxu1 %v5533_v27 }
 0x6d4   :  { %3416 = vmatprep.subr.bf16.mxu0 %v5537_v24  ;;  %3457 = vmatprep.subr.bf16.mxu1 %v5539_v17 }
 0x6d7   :  { %3417 = vmatpush1.bf16.msra.mxu0 %v5543_v49  ;;  %3458 = vmatpush1.bf16.msra.mxu1 %v5545_v48 }
 0x6d8   :  { %3418 = vmatprep.subr.bf16.mxu0 %v5549_v54  ;;  %3459 = vmatprep.subr.bf16.mxu1 %v5551_v13 }
 0x6db   :  { %3419 = vmatpush1.bf16.msra.mxu0 %v5555_v15  ;;  %3460 = vmatpush1.bf16.msra.mxu1 %v5557_v14 }
 0x6dc   :  { %3420 = vmatprep.subr.bf16.mxu0 %v5561_v8  ;;  %3461 = vmatprep.subr.bf16.mxu1 %v5563_v11 }
 0x6df   :  { %3421 = vmatpush1.bf16.msra.mxu0 %v5567_v58  ;;  %3462 = vmatpush1.bf16.msra.mxu1 %v5569_v60 }
 0x6e0   :  { %3422 = vmatprep.subr.bf16.mxu0 %v5573_v61  ;;  %3463 = vmatprep.subr.bf16.mxu1 %v5575_v62 }
 0x6e3   :  { %3423 = vmatpush1.bf16.msra.mxu0 %v5579_v63  ;;  %3464 = vmatpush1.bf16.msra.mxu1 %v5581_v20 }
 0x6e4   :  { %3424 = vmatprep.subr.bf16.mxu0 %v5585_v21  ;;  %3465 = vmatprep.subr.bf16.mxu1 %v5587_v28 }
 0x6e7   :  { %3425 = vmatpush1.bf16.msra.mxu0 %v5591_v31  ;;  %3466 = vmatpush1.bf16.msra.mxu1 %v5593_v33 }
 0x6e8   :  { %3426 = vmatprep.subr.bf16.mxu0 %v5597_v34  ;;  %3467 = vmatprep.subr.bf16.mxu1 %v5599_v40 }
 0x6eb   :  { %3427 = vmatpush1.bf16.msra.mxu0 %v5603_v59  ;;  %3468 = vmatpush1.bf16.msra.mxu1 %v5605_v25 }
 0x6ec   :  { %3497 = vmatprep.subr.bf16.mxu0 %v5609_v42  ;;  %3538 = vmatprep.subr.bf16.mxu1 %v5612_v22 }
 0x775   :  { %v3079_v3 = vpop.f32.mrb[48].mxu0  ;;  %v3120_v55 = vpop.f32.mrb[48].mxu1 }
 0x776   :  { %v3127_v5 = vmul.f32 0.5, %v3079_v3  ;;  %v3081_v6 = vpop.f32.mrb[49].mxu0  ;;  %v3122_v52 = vpop.f32.mrb[49].mxu1 }
 0x777   :  { %v3131_v39 = vmul.f32 0.5, %v3081_v6  ;;  %v3083_v4 = vpop.f32.mrb[50].mxu0  ;;  %v3124_v27 = vpop.f32.mrb[50].mxu1  ;;  %v3136_v49 = vmul.f32 0.5, %v3122_v52  ;;  %v6184_v6 = vld [vmem:[#allocation53_spill] sm:$0xff]  ;;  %v6185_v52 = vld [vmem:[#allocation54_spill] sm:$0xff] }
 0x778   :  { %4272 = vtanh.f32 %v3127_v5  ;;  %v3084_v24 = vpop.f32.mrb[51].mxu0  ;;  %v3125_v17 = vpop.f32.mrb[51].mxu1  ;;  %v6183_v5 = vld [vmem:[#allocation52_spill] sm:$0xff]  ;;  %v6189_v27 = vld [vmem:[#allocation59_spill] sm:$0xff] }
 0x779   :  { %4274 = vtanh.f32 %v3131_v39  ;;  %v6186_v39 = vld [vmem:[#allocation56_spill] sm:$0xff] }
 0x77a   :  { %4276 = vtanh.f32 %v3120_v55  ;;  %v6182_v55 = vld [vmem:[#allocation51_spill] sm:$0xff]  ;;  %v6190_v24 = vld [vmem:[#allocation60_spill] sm:$0xff] }
 0x77b   :  { %4278 = vtanh.f32 %v3136_v49  ;;  %v6191_v17 = vld [vmem:[#allocation72_spill] sm:$0xff] }
 0x782   :  { %v4273_v48 = vpop.eup %4272 }
 0x783   :  { %v4275_v54 = vpop.eup %4274  ;;  %v3129_v13 = vmul.f32 0.5, %v4273_v48  ;;  %v6192_v48 = vld [vmem:[#allocation61_spill] sm:$0xff] }
 0x784   :  { %v3133_v15 = vmul.f32 0.5, %v4275_v54  ;;  %v4277_v8 = vpop.eup %4276 }
 0x785   :  { %v3130_v14 = vadd.f32 0.5, %v3129_v13  ;;  %v4279_v62 = vpop.eup %4278 }
 0x786   :  { %v3134_v11 = vadd.f32 0.5, %v3133_v15  ;;  %v3138_v63 = vmul.f32 0.5, %v4279_v62 }
 0x787   :  { %v3141_v58 = vmul.f32 %v4277_v8, %v3130_v14 }
 0x788   :  { %v3140_v60 = vmul.f32 %v3134_v11, %v5616_v29  ;;  %v3139_v20 = vadd.f32 0.5, %v3138_v63 }
 0x78a   :  { %v5784_v61 = vadd.f32 %v3141_v58, %v3140_v60 }
 0x78c   :  { %4280 = vtanh.f32 %v5784_v61 }
 0x796   :  { %v4281_v21 = vpop.eup %4280 }
 0x797   :  { %v3144_v28 = vmul.f32 %v4281_v21, %v3139_v20 }
 0x799   :  { %v3145_v31 = vpack.c.bf16 %v3144_v28, %v3144_v28 }
 0x79b   :  { %3147 = vst [vmem:[#allocation16 + $0x18] sm:$0xf] %v3145_v31  ;;  %3445 = vmatmul.mubr.bf16.vlgmr.msra.gmra.mrb[56].mxu0 %v3145_v31  ;;  %3486 = vmatmul.mubr.bf16.vlgmr.msra.gmra.mrb[56].mxu1 %v3145_v31 }
 0x79c   :  { %3498 = vmatpush1.bf16.msra.mxu0 %v5619_v12  ;;  %3539 = vmatpush1.bf16.msra.mxu1 %v5621_v9  ;;  %v3375_v9 = vld [vmem:[#allocation11 + $0x1c] sm:$0xf] }
 0x79d   :  { %3529 = vmatprep.mubr.bf16.mxu0 %v6072_v37  ;;  %3570 = vmatprep.mubr.bf16.mxu1 %v6072_v37 }
 0x79e   :  { %3638 = vmatprep.subr.bf16.mxu0 %v5623_v23  ;;  %3679 = vmatprep.subr.bf16.mxu1 %v5625_v30 }
 0x7a1   :  { %v3305_v33 = vpop.f32.mrb[52].mxu0  ;;  %v3346_v34 = vpop.f32.mrb[52].mxu1 }
 0x7a2   :  { %v3353_v40 = vmul.f32 0.5, %v3305_v33  ;;  %v3307_v59 = vpop.f32.mrb[53].mxu0  ;;  %v3348_v25 = vpop.f32.mrb[53].mxu1 }
 0x7a3   :  { %v3357_v42 = vmul.f32 0.5, %v3307_v59  ;;  %v3309_v22 = vpop.f32.mrb[54].mxu0  ;;  %v3350_v29 = vpop.f32.mrb[54].mxu1  ;;  %v3362_v23 = vmul.f32 0.5, %v3348_v25 }
 0x7a4   :  { %4282 = vtanh.f32 %v3353_v40  ;;  %v3310_v12 = vpop.f32.mrb[55].mxu0  ;;  %v3351_v26 = vpop.f32.mrb[55].mxu1 }
 0x7a5   :  { %4284 = vtanh.f32 %v3357_v42 }
 0x7a6   :  { %4286 = vtanh.f32 %v3346_v34 }
 0x7a7   :  { %3986 = vmatmul.mubr.msk.bf16.vlgmr.msra.gmra.mrb[56].mxu0 %vm326_vm0, %v3375_v9  ;;  %3987 = vmatmul.mubr.msk.bf16.vlgmr.msra.gmra.mrb[56].mxu1 %vm326_vm0, %v3375_v9  ;;  %4288 = vtanh.f32 %v3362_v23 }
 0x7a8   :  { %3639 = vmatpush1.bf16.msra.mxu0 %v5633_v44  ;;  %3680 = vmatpush1.bf16.msra.mxu1 %v5635_v45 }
 0x7a9   :  { %3640 = vmatprep.subr.bf16.mxu0 %v5637_v46  ;;  %3681 = vmatprep.subr.bf16.mxu1 %v5639_v47  ;;  %v6178_v46 = vld [vmem:[#allocation47_spill] sm:$0xff] }
 0x7aa   :  { %3670 = vmatprep.mubr.bf16.mxu0 %v6072_v37  ;;  %3711 = vmatprep.mubr.bf16.mxu1 %v6072_v37 }
 0x7ac   :  { %3641 = vmatpush1.bf16.msra.mxu0 %v5647_v50  ;;  %3682 = vmatpush1.bf16.msra.mxu1 %v5649_v53 }
 0x7ad   :  { %3642 = vmatprep.subr.bf16.mxu0 %v5651_v36  ;;  %3683 = vmatprep.subr.bf16.mxu1 %v5653_v38  ;;  %v6181_v38 = vld [vmem:[#allocation50_spill] sm:$0xff] }
 0x7ae   :  { %v4283_v30 = vpop.eup %4282 }
 0x7af   :  { %v4285_v44 = vpop.eup %4284  ;;  %v3355_v45 = vmul.f32 0.5, %v4283_v30 }
 0x7b0   :  { %v3359_v51 = vmul.f32 0.5, %v4285_v44  ;;  %3643 = vmatpush1.bf16.msra.mxu0 %v5661_v18  ;;  %3684 = vmatpush1.bf16.msra.mxu1 %v6178_v46  ;;  %v4287_v50 = vpop.eup %4286 }
 0x7b1   :  { %v3356_v47 = vadd.f32 0.5, %v3355_v45  ;;  %3644 = vmatprep.subr.bf16.mxu0 %v6179_v43  ;;  %3685 = vmatprep.subr.bf16.mxu1 %v6180_v10 }
 0x7b2   :  { %v3360_v53 = vadd.f32 0.5, %v3359_v51 }
 0x7b3   :  { %v3367_v3 = vmul.f32 %v4287_v50, %v3356_v47 }
 0x7b4   :  { %v3366_v36 = vmul.f32 %v3360_v53, %v5690_v57  ;;  %3645 = vmatpush1.bf16.msra.mxu0 %v5673_v1  ;;  %3686 = vmatpush1.bf16.msra.mxu1 %v5675_v16  ;;  %v4289_v57 = vpop.eup %4288  ;;  %v6187_v1 = vld [vmem:[#allocation57_spill] sm:$0xff]  ;;  %v6188_v16 = vld [vmem:[#allocation58_spill] sm:$0xff] }
 0x7b5   :  { %3646 = vmatprep.subr.bf16.mxu0 %v6181_v38  ;;  %3687 = vmatprep.subr.bf16.mxu1 %v6182_v55  ;;  %v3364_v4 = vmul.f32 0.5, %v4289_v57 }
 0x7b6   :  { %v5814_v18 = vadd.f32 %v3367_v3, %v3366_v36 }
 0x7b7   :  { %v3365_v49 = vadd.f32 0.5, %v3364_v4 }
 0x7b8   :  { %4290 = vtanh.f32 %v5814_v18  ;;  %3647 = vmatpush1.bf16.msra.mxu0 %v6183_v5  ;;  %3688 = vmatpush1.bf16.msra.mxu1 %v6184_v6 }
 0x7b9   :  { %3648 = vmatprep.subr.bf16.mxu0 %v6185_v52  ;;  %3689 = vmatprep.subr.bf16.mxu1 %v6186_v39 }
 0x7bc   :  { %3649 = vmatpush1.bf16.msra.mxu0 %v6187_v1  ;;  %3690 = vmatpush1.bf16.msra.mxu1 %v6188_v16 }
 0x7bd   :  { %3650 = vmatprep.subr.bf16.mxu0 %v6189_v27  ;;  %3691 = vmatprep.subr.bf16.mxu1 %v6190_v24 }
 0x7c0   :  { %3651 = vmatpush1.bf16.msra.mxu0 %v5713_v35  ;;  %3692 = vmatpush1.bf16.msra.mxu1 %v6191_v17  ;;  %v3601_v35 = vld [vmem:[#allocation14 + $0x1c] sm:$0xf] }
 0x7c1   :  { %3652 = vmatprep.subr.bf16.mxu0 %v5717_v41  ;;  %3693 = vmatprep.subr.bf16.mxu1 %v6192_v48 }
 0x7c2   :  { %v4291_v54 = vpop.eup %4290 }
 0x7c3   :  { %v3370_v13 = vmul.f32 %v4291_v54, %v3365_v49 }
 0x7c4   :  { %3653 = vmatpush1.bf16.msra.mxu0 %v5725_v7  ;;  %3694 = vmatpush1.bf16.msra.mxu1 %v5727_v32 }
 0x7c5   :  { %v3371_v15 = vpack.c.bf16 %v3370_v13, %v3370_v13  ;;  %3723 = vmatprep.subr.bf16.mxu0 %v5729_v0  ;;  %3764 = vmatprep.subr.bf16.mxu1 %v5731_v2 }
 0x7c7   :  { %3373 = vst [vmem:[#allocation17 + $0x18] sm:$0xf] %v3371_v15  ;;  %3671 = vmatmul.mubr.bf16.vlgmr.msra.gmra.mrb[60].mxu0 %v3371_v15  ;;  %3712 = vmatmul.mubr.bf16.vlgmr.msra.gmra.mrb[60].mxu1 %v3371_v15 }
 0x7c8   :  { %3724 = vmatpush1.bf16.msra.mxu0 %v5736_v56  ;;  %3765 = vmatpush1.bf16.msra.mxu1 %v5739_v19 }
 0x7c9   :  { %3755 = vmatprep.mubr.bf16.mxu0 %v6072_v37  ;;  %3796 = vmatprep.mubr.bf16.mxu1 %v6072_v37 }
 0x7d3   :  { %3988 = vmatmul.mubr.msk.bf16.vlgmr.msra.gmra.mrb[60].mxu0 %vm326_vm0, %v3601_v35  ;;  %3989 = vmatmul.mubr.msk.bf16.vlgmr.msra.gmra.mrb[60].mxu1 %vm326_vm0, %v3601_v35 }
 0x7d4   :  { %4367 = shalt.err (!%p4364_p6)
}
 0x7d5   :  { %s4368_s1 = scalar_lea.hbm %s5937_s11, 128 }
 0x7d6   :  { %p4369_p7 = scmp.ne.s32.totalorder %s5937_s11, %s4368_s1  ;;  %p4372_p8 = scmp.lt.u32.totalorder %s4368_s1, %s5937_s11 }
 0x7d8   :  { %p4374_p9 = pnand %p4372_p8, %p4369_p7 }
 0x7da   :  { %4377 = shalt.err (!%p4374_p9)
}
 0x7db   :  { %3898 = dma.vmem_to_hbm [thread:$0]  %s3896_s26, 128, %s5937_s11, [#allocation24]  }
 0x7dc   :  { %s4533_s11 = smov [#allocation20]   ;;  %s4534_s12 = smov [#allocation22]  }
 0x7dd   :  { %s3875_s25 = sshll.u32 %s4533_s11, 4  ;;  %s3885_s15 = sshll.u32 %s4534_s12, 4  ;;  %s3876_s25 = int_to_ptr.vmem [resolvable:$true] %s3875_s25  ;;  %s5852_s15 = int_to_ptr.vmem [resolvable:$true] %s3885_s15 }
 0x7de   :  { %s4378_s16 = scalar_lea.vmem %s3876_s25, 128  ;;  %p4383_p11 = scmp.lt.s32.totalorder %s3876_s25, %s3876_s25 }
 0x7df   :  { %p4379_p10 = scmp.ne.s32.totalorder %s3876_s25, %s4378_s16  ;;  %p4384_p12 = scmp.lt.s32.totalorder %s4378_s16, %s4378_s16 }
 0x7e1   :  { %p4385_p13 = por %p4384_p12, %p4383_p11 }
 0x7e3   :  { %p4386_p0 = pnand %p4385_p13, %p4379_p10 }
 0x87a   :  { %v3531_v37 = vpop.f32.mrb[56].mxu0  ;;  %v3572_v41 = vpop.f32.mrb[56].mxu1 }
 0x87b   :  { %v3579_v2 = vmul.f32 0.5, %v3531_v37  ;;  %v3533_v19 = vpop.f32.mrb[57].mxu0  ;;  %v3574_v0 = vpop.f32.mrb[57].mxu1 }
 0x87c   :  { %v3583_v32 = vmul.f32 0.5, %v3533_v19  ;;  %v3535_v7 = vpop.f32.mrb[58].mxu0  ;;  %v3576_v56 = vpop.f32.mrb[58].mxu1  ;;  %v3588_v11 = vmul.f32 0.5, %v3574_v0 }
 0x87d   :  { %4292 = vtanh.f32 %v3579_v2  ;;  %v3536_v14 = vpop.f32.mrb[59].mxu0  ;;  %v3577_v8 = vpop.f32.mrb[59].mxu1 }
 0x87e   :  { %4294 = vtanh.f32 %v3583_v32 }
 0x87f   :  { %4296 = vtanh.f32 %v3572_v41 }
 0x880   :  { %4298 = vtanh.f32 %v3588_v11 }
 0x887   :  { %v4293_v58 = vpop.eup %4292 }
 0x888   :  { %v4295_v60 = vpop.eup %4294  ;;  %v3581_v62 = vmul.f32 0.5, %v4293_v58 }
 0x889   :  { %v3585_v63 = vmul.f32 0.5, %v4295_v60  ;;  %v4297_v21 = vpop.eup %4296 }
 0x88a   :  { %v3582_v20 = vadd.f32 0.5, %v3581_v62 }
 0x88b   :  { %v3586_v28 = vadd.f32 0.5, %v3585_v63 }
 0x88c   :  { %v3593_v31 = vmul.f32 %v4297_v21, %v3582_v20 }
 0x88d   :  { %v3592_v33 = vmul.f32 %v3586_v28, %v5784_v61 }
 0x88f   :  { %v3594_v34 = vadd.f32 %v3593_v31, %v3592_v33 }
 0x891   :  { %4300 = vtanh.f32 %v3594_v34  ;;  %3830 = vst [vmem:[#allocation20] sm:$0xff] %v3594_v34 }
 0x892   :  { %4389 = shalt.err (!%p4386_p0)
}
 0x893   :  { %s4390_s19 = scalar_lea.hbm %s5935_s9, 128 }
 0x894   :  { %p4391_p1 = scmp.ne.s32.totalorder %s5935_s9, %s4390_s19  ;;  %p4394_p2 = scmp.lt.u32.totalorder %s4390_s19, %s5935_s9 }
 0x896   :  { %p4396_p3 = pnand %p4394_p2, %p4391_p1 }
 0x898   :  { %4399 = shalt.err (!%p4396_p3)
}
 0x899   :  { %3878 = dma.vmem_to_hbm [thread:$0]  %s3876_s25, 128, %s5935_s9, [#allocation21]   ;;  %v4299_v61 = vpop.eup %4298 }
 0x89a   :  { %s4400_s29 = scalar_lea.vmem %s5852_s15, 128  ;;  %p4405_p5 = scmp.lt.s32.totalorder %s5852_s15, %s5852_s15 }
 0x89b   :  { %p4401_p4 = scmp.ne.s32.totalorder %s5852_s15, %s4400_s29  ;;  %p4406_p6 = scmp.lt.s32.totalorder %s4400_s29, %s4400_s29 }
 0x89d   :  { %p4407_p7 = por %p4406_p6, %p4405_p5 }
 0x89f   :  { %p4408_p8 = pnand %p4407_p7, %p4401_p4 }
 0x8a1   :  { %4411 = shalt.err (!%p4408_p8)
}
 0x8a2   :  { %s4412_s1 = scalar_lea.hbm %s5936_s10, 128 }
 0x8a3   :  { %p4413_p9 = scmp.ne.s32.totalorder %s5936_s10, %s4412_s1  ;;  %p4416_p10 = scmp.lt.u32.totalorder %s4412_s1, %s5936_s10 }
 0x8a5   :  { %p4418_p11 = pnand %p4416_p10, %p4413_p9 }
 0x8a7   :  { %4421 = shalt.err (!%p4418_p11)
}
 0x8a8   :  { %3888 = dma.vmem_to_hbm [thread:$0]  %s5852_s15, 128, %s5936_s10, [#allocation21]   ;;  %v3590_v40 = vmul.f32 0.5, %v4299_v61  ;;  %v4301_v25 = vpop.eup %4300 }
 0x8a9   :  { %s4535_s24 = smov [#allocation16]  }
 0x8aa   :  { %v3591_v59 = vadd.f32 0.5, %v3590_v40  ;;  %s3840_s11 = sshll.u32 %s4535_s24, 4  ;;  %s3841_s11 = int_to_ptr.vmem [resolvable:$true] %s3840_s11 }
 0x8ab   :  { %s4422_s25 = scalar_lea.vmem %s3841_s11, 512  ;;  %p4427_p13 = scmp.lt.s32.totalorder %s3841_s11, %s3841_s11 }
 0x8ac   :  { %v3596_v42 = vmul.f32 %v4301_v25, %v3591_v59  ;;  %p4423_p12 = scmp.ne.s32.totalorder %s3841_s11, %s4422_s25  ;;  %p4428_p0 = scmp.lt.s32.totalorder %s4422_s25, %s4422_s25 }
 0x8ae   :  { %v3597_v22 = vpack.c.bf16 %v3596_v42, %v3596_v42  ;;  %3829 = vst [vmem:[#allocation19] sm:$0xff] %v3596_v42  ;;  %p4429_p1 = por %p4428_p0, %p4427_p13 }
 0x8b0   :  { %3599 = vst [vmem:[#allocation16 + $0x1c] sm:$0xf] %v3597_v22  ;;  %p4430_p2 = pnand %p4429_p1, %p4423_p12 }
 0x8b2   :  { %4433 = shalt.err (!%p4430_p2)
}
 0x8b3   :  { %s4434_s10 = scalar_lea.hbm %s5932_s6, 512 }
 0x8b4   :  { %p4435_p3 = scmp.ne.s32.totalorder %s5932_s6, %s4434_s10  ;;  %p4438_p4 = scmp.lt.u32.totalorder %s4434_s10, %s5932_s6 }
 0x8b6   :  { %p4440_p5 = pnand %p4438_p4, %p4435_p3 }
 0x8b8   :  { %4443 = shalt.err (!%p4440_p5)
}
 0x8b9   :  { %3846 = dma.vmem_to_hbm [thread:$0]  %s3841_s11, 512, %s5932_s6, [#allocation13], %s4509_s27, %s4509_s27, %s4510_s28   ;;  %v3757_v29 = vpop.f32.mrb[60].mxu0  ;;  %v3798_v12 = vpop.f32.mrb[60].mxu1 }
 0x8ba   :  { %v3805_v26 = vmul.f32 0.5, %v3757_v29  ;;  %v3759_v9 = vpop.f32.mrb[61].mxu0  ;;  %v3800_v23 = vpop.f32.mrb[61].mxu1  ;;  %s4536_s6 = smov [#allocation17]   ;;  %s4537_s22 = smov [#allocation19]  }
 0x8bb   :  { %v3809_v30 = vmul.f32 0.5, %v3759_v9  ;;  %v3761_v44 = vpop.f32.mrb[62].mxu0  ;;  %v3802_v45 = vpop.f32.mrb[62].mxu1  ;;  %v3814_v47 = vmul.f32 0.5, %v3800_v23  ;;  %s3852_s20 = sshll.u32 %s4536_s6, 4  ;;  %s3865_s5 = sshll.u32 %s4537_s22, 4  ;;  %s3853_s20 = int_to_ptr.vmem [resolvable:$true] %s3852_s20  ;;  %s3866_s5 = int_to_ptr.vmem [resolvable:$true] %s3865_s5 }
 0x8bc   :  { %4302 = vtanh.f32 %v3805_v26  ;;  %v3762_v51 = vpop.f32.mrb[63].mxu0  ;;  %v3803_v46 = vpop.f32.mrb[63].mxu1  ;;  %s4444_s26 = scalar_lea.vmem %s3853_s20, 512  ;;  %p4449_p7 = scmp.lt.s32.totalorder %s3853_s20, %s3853_s20 }
 0x8bd   :  { %4304 = vtanh.f32 %v3809_v30  ;;  %p4445_p6 = scmp.ne.s32.totalorder %s3853_s20, %s4444_s26  ;;  %p4450_p8 = scmp.lt.s32.totalorder %s4444_s26, %s4444_s26 }
 0x8be   :  { %4306 = vtanh.f32 %v3798_v12 }
 0x8bf   :  { %4308 = vtanh.f32 %v3814_v47  ;;  %p4451_p9 = por %p4450_p8, %p4449_p7 }
 0x8c1   :  { %p4452_p10 = pnand %p4451_p9, %p4445_p6 }
 0x8c6   :  { %v4303_v43 = vpop.eup %4302 }
 0x8c7   :  { %v4305_v10 = vpop.eup %4304  ;;  %v3807_v50 = vmul.f32 0.5, %v4303_v43 }
 0x8c8   :  { %v3811_v53 = vmul.f32 0.5, %v4305_v10  ;;  %v4307_v36 = vpop.eup %4306 }
 0x8c9   :  { %v3808_v3 = vadd.f32 0.5, %v3807_v50  ;;  %v4309_v52 = vpop.eup %4308 }
 0x8ca   :  { %v3812_v38 = vadd.f32 0.5, %v3811_v53  ;;  %v3816_v39 = vmul.f32 0.5, %v4309_v52 }
 0x8cb   :  { %v3819_v55 = vmul.f32 %v4307_v36, %v3808_v3 }
 0x8cc   :  { %v3818_v5 = vmul.f32 %v3812_v38, %v5814_v18  ;;  %v3817_v57 = vadd.f32 0.5, %v3816_v39 }
 0x8ce   :  { %v3820_v6 = vadd.f32 %v3819_v55, %v3818_v5 }
 0x8d0   :  { %4310 = vtanh.f32 %v3820_v6 }
 0x8da   :  { %v4311_v1 = vpop.eup %4310 }
 0x8db   :  { %v3822_v16 = vmul.f32 %v4311_v1, %v3817_v57 }
 0x8dd   :  { %v3823_v4 = vpack.c.bf16 %v3822_v16, %v3822_v16 }
 0x8df   :  { %3825 = vst [vmem:[#allocation17 + $0x1c] sm:$0xf] %v3823_v4 }
 0x8e0   :  { %4455 = shalt.err (!%p4452_p10)
}
 0x8e1   :  { %s4456_s14 = scalar_lea.hbm %s5933_s7, 512 }
 0x8e2   :  { %p4457_p11 = scmp.ne.s32.totalorder %s5933_s7, %s4456_s14  ;;  %p4460_p12 = scmp.lt.u32.totalorder %s4456_s14, %s5933_s7 }
 0x8e4   :  { %p4462_p13 = pnand %p4460_p12, %p4457_p11 }
 0x8e6   :  { %4465 = shalt.err (!%p4462_p13)
}
 0x8e7   :  { %3858 = dma.vmem_to_hbm [thread:$0]  %s3853_s20, 512, %s5933_s7, [#allocation18], %s4509_s27, %s4509_s27, %s4510_s28  }
 0x8e8   :  { %s4466_s23 = scalar_lea.vmem %s3866_s5, 128  ;;  %p4471_p1 = scmp.lt.s32.totalorder %s3866_s5, %s3866_s5 }
 0x8e9   :  { %p4467_p0 = scmp.ne.s32.totalorder %s3866_s5, %s4466_s23  ;;  %p4472_p2 = scmp.lt.s32.totalorder %s4466_s23, %s4466_s23 }
 0x8eb   :  { %p4473_p3 = por %p4472_p2, %p4471_p1 }
 0x8ed   :  { %p4474_p4 = pnand %p4473_p3, %p4467_p0 }
 0x8ef   :  { %4477 = shalt.err (!%p4474_p4)
}
 0x8f0   :  { %s4478_s25 = scalar_lea.hbm %s5934_s8, 128 }
 0x8f1   :  { %p4479_p5 = scmp.ne.s32.totalorder %s5934_s8, %s4478_s25  ;;  %p4482_p6 = scmp.lt.u32.totalorder %s4478_s25, %s5934_s8 }
 0x8f3   :  { %p4484_p7 = pnand %p4482_p6, %p4479_p5 }
 0x8f5   :  { %4487 = shalt.err (!%p4484_p7)
}
 0x8f6   :  { %3868 = dma.vmem_to_hbm [thread:$0]  %s3866_s5, 128, %s5934_s8, [#allocation18]  }
 0x8f7   :  { %4500 = dma.done.wait [#allocation13], 512  }
 0x8f8   :  { %4501 = vsyncadd [#allocation13], 4294966784 }
 0x8f9   :  { %4502 = dma.done.wait [#allocation18], 640  }
 0x8fa   :  { %4503 = vsyncadd [#allocation18], 4294966656 }
 0x8fb   :  { %4504 = dma.done.wait [#allocation21], 256  }
 0x8fc   :  { %4505 = vsyncadd [#allocation21], 4294967040 }
 0x8fd   :  { %4506 = dma.done.wait [#allocation24], 128  }
 0x8fe   :  { %4507 = vsyncadd [#allocation24], 4294967168 }
 0x8ff   :  { %3917 = vsyncpa [#allocation12], 1 }
 0x900   :  { %3918 = vsyncpa [#allocation15], 1 }
 0x901   :  { %3919 = vsyncpa [#allocation13], 1 }
 0x902   :  { %3920 = vsyncpa [#allocation18], 1 }
 0x903   :  { %3921 = vsyncpa [#allocation21], 1 }
 0x904   :  { %3922 = vsyncpa [#allocation24], 1 }
 0x905   :  { %3923 = vsyncmov [#allocation10] }
 0x908   :  { %s3924_s28 = vpop.sfrf %3923 }
 0x909   :  { %p3990_p8 = scmp.ne.s32.totalorder %s3924_s28, 0 }
 0x90b   :  { %3928 = shalt.err (%p3990_p8)  }
 0x90c   :  { %3930 = vsyncmov [#allocation10 + $0x1] }
 0x90f   :  { %s3931_s8 = vpop.sfrf %3930 }
 0x910   :  { %p3991_p9 = scmp.ne.s32.totalorder %s3931_s8, 0 }
 0x912   :  { %3935 = shalt.err (%p3991_p9)  }
 0x913   :  { %3937 = vsyncmov [#allocation10 + $0x2] }
 0x916   :  { %s3938_s17 = vpop.sfrf %3937 }
 0x917   :  { %p3992_p10 = scmp.ne.s32.totalorder %s3938_s17, 0 }
 0x919   :  { %3942 = shalt.err (%p3992_p10)  }
 0x91a   :  { %3944 = vsyncmov [#allocation10 + $0x3] }
 0x91d   :  { %s3945_s3 = vpop.sfrf %3944 }
 0x91e   :  { %p3993_p11 = scmp.ne.s32.totalorder %s3945_s3, 0 }
 0x920   :  { %3949 = shalt.err (%p3993_p11)  }

</bundles_post_ra>
